<compile_context>
chip_gen: v7x
topology: tpu7x:2x2x1
jax: 0.10.0
libtpu: 0.0.40
codegen_flags: <defaults>
</compile_context>

<pallas_src>
import functools

import jax
import jax.numpy as jnp
from jax.experimental import pallas as pl


def _full_spec(shape):
    """Full-array block (single VMEM tile) for grid=(1,)."""
    zeros = (0,) * len(shape)
    return pl.BlockSpec(shape, lambda i, _z=zeros: _z)


# ----------------------------------------------------------------------------
# Fused STA_MGCN_block kernel
# ----------------------------------------------------------------------------
def _sta_block_kernel(x_ref, a_ref, u1_ref, u2_ref, u3_ref, be_ref, ve_ref,
                      gw_ref, gb_ref, w1t_ref, w2t_ref, cb1_ref, cb2_ref,
                      rwt_ref, rb_ref, lng_ref, lnb_ref, o_ref):
    B, T, N, F = x_ref.shape
    tf = lng_ref.shape[-1]
    w_out = T - 2                       # dilated (1,3), pad=1, dilation=2 output width
    f32 = jnp.float32

    A = a_ref[...]                      # (3, N, N)
    U1 = u1_ref[...]                    # (N, 1)
    U2 = u2_ref[...]                    # (F, N)
    U3 = u3_ref[...]                    # (F, 1)
    be = be_ref[...]                    # (T, T)
    Ve = ve_ref[...]                    # (T, T)
    Wg = gw_ref[...]                    # (3, F, O)
    bg = gb_ref[...]                    # (3, 1, O)
    W1t = w1t_ref[...]                  # (3, O, tf)   tap-major, transposed (first tf channels)
    W2t = w2t_ref[...]                  # (3, O, tf)   (second tf channels)
    cb1 = cb1_ref[...]                  # (1, tf)
    cb2 = cb2_ref[...]                  # (1, tf)
    RWt = rwt_ref[...]                  # (F, tf)
    rb = rb_ref[...]                    # (1, tf)
    ln_g = lng_ref[...]                 # (1, tf)
    ln_b = lnb_ref[...]                 # (1, tf)

    for b in range(B):                  # tiny static batch -> unrolled
        xr = x_ref[b]                                     # (T, N, F)
        x_slices = [xr[tp] for tp in range(T)]            # each (N, F) = x[b,:,:,t]

        # ---- temporal attention (processed column-by-column; softmax over rows) ----
        xu1 = jnp.sum(xr * U1, axis=1)                    # (T, F)  = x·U1 over nodes
        lhs = jnp.dot(xu1, U2, preferred_element_type=f32)           # (T, N)

        sgc = []                                          # per-time multi-GCN output (N, O)
        for t in range(T):
            rcol = jnp.dot(x_slices[t], U3, preferred_element_type=f32)   # (N, 1) = rhs[:, t]
            pcol = jnp.dot(lhs, rcol, preferred_element_type=f32)         # (T, 1) = product[:, t]
            scol = jax.nn.sigmoid(pcol + be[:, t:t + 1])
            ecol = jnp.dot(Ve, scol, preferred_element_type=f32)          # (T, 1)
            ecol = ecol - jnp.max(ecol, axis=0, keepdims=True)
            eexp = jnp.exp(ecol)
            att = eexp / jnp.sum(eexp, axis=0, keepdims=True)             # (T, 1) = t_att[:, t]

            # attention-weighted graph signal at time t: (N, F)
            xt = x_slices[0] * att[0:1]
            for tp in range(1, T):
                xt = xt + x_slices[tp] * att[tp:tp + 1]

            # fused 3-graph GCN: sum_g ReLU(A_g @ xt @ W_g + b_g)
            gout = None
            for g in range(3):
                ax = jnp.dot(A[g], xt, preferred_element_type=f32)        # (N, F)
                axw = jnp.dot(ax, Wg[g], preferred_element_type=f32) + bg[g]
                hg = jnp.maximum(axw, 0.0)                                # (N, O)
                gout = hg if gout is None else gout + hg
            sgc.append(gout)

        # ---- dilated (1,3) temporal conv (pad=1, dilation=2) + tanh*sigmoid gate ----
        gate = []
        for w in range(w_out):
            y1 = jnp.zeros((N, tf), f32)
            y2 = jnp.zeros((N, tf), f32)
            for k in range(3):
                tau = w + 2 * k - 1                       # index into the (zero-padded) time axis
                if 0 <= tau < T:
                    y1 = y1 + jnp.dot(sgc[tau], W1t[k], preferred_element_type=f32)
                    y2 = y2 + jnp.dot(sgc[tau], W2t[k], preferred_element_type=f32)
            gate.append(jnp.tanh(y1 + cb1) * jax.nn.sigmoid(y2 + cb2))    # (N, tf)

        # ---- residual 1x1 conv + gate + ReLU + LayerNorm(tf), write (b, t) slice ----
        for t in range(T):
            r = jnp.dot(x_slices[t], RWt, preferred_element_type=f32) + rb   # (N, tf)
            gsel = gate[t] if w_out == T else gate[0]     # PyTorch broadcast rule (Wout==1 here)
            h = jnp.maximum(r + gsel, 0.0)
            mu = jnp.mean(h, axis=-1, keepdims=True)
            var = jnp.mean(jnp.square(h - mu), axis=-1, keepdims=True)
            o_ref[b, t] = (h - mu) * jax.lax.rsqrt(var + 1e-5) * ln_g + ln_b


def sta_block_fused(x_tnf, A, p):
    """One STA_MGCN block.  x_tnf: (B, T, N, F) -> (B, T, N, time_filter)."""
    B, T, N, F = x_tnf.shape
    tf = p["ln_g"].shape[0]
    w_out = T - 2
    if w_out not in (1, T):
        # PyTorch only broadcasts the conv output against the residual when
        # its width is 1 (or equals T); same restriction applies here.
        raise ValueError(f"unsupported temporal-conv output width {w_out}")

    tcw = p["tc_W"][:, :, 0, :]                                  # (2*tf, O, 3)
    args = [
        x_tnf, A,
        p["U1"].reshape(N, 1),
        p["U2"],
        p["U3"].reshape(F, 1),
        p["be"].reshape(T, T),
        p["Ve"],
        p["gcn_W"],
        p["gcn_b"],
        jnp.transpose(tcw[:tf], (2, 1, 0)),                      # (3, O, tf)
        jnp.transpose(tcw[tf:], (2, 1, 0)),                      # (3, O, tf)
        p["tc_b"][:tf].reshape(1, tf),
        p["tc_b"][tf:].reshape(1, tf),
        p["res_W"][:, :, 0, 0].T,                                # (F, tf)
        p["res_b"].reshape(1, tf),
        p["ln_g"].reshape(1, tf),
        p["ln_b"].reshape(1, tf),
    ]
    args = [a.astype(jnp.float32) for a in args]
    return pl.pallas_call(
        _sta_block_kernel,
        out_shape=jax.ShapeDtypeStruct((B, T, N, tf), jnp.float32),
        grid=(1,),
        in_specs=[_full_spec(a.shape) for a in args],
        out_specs=_full_spec((B, T, N, tf)),
    )(*args)


# ----------------------------------------------------------------------------
# Fused fc_3 head: ReLU -> MFDense(in, 32) -> ReLU -> MFDense(32, 2)
# ----------------------------------------------------------------------------
def _fc3_kernel(h_ref, e1_ref, w1_ref, b1_ref, e2_ref, w2_ref, b2_ref, o_ref):
    B, N, _ = h_ref.shape
    f32 = jnp.float32
    E1 = e1_ref[...]                    # (N, e1)
    W1 = w1_ref[...]                    # (e1, Din, H)
    b1 = b1_ref[...]                    # (e1, H)
    E2 = e2_ref[...]                    # (N, e2)
    W2 = w2_ref[...]                    # (e2, H, 2)
    b2 = b2_ref[...]                    # (e2, 2)
    bn1 = jnp.dot(E1, b1, preferred_element_type=f32)            # (N, H)
    bn2 = jnp.dot(E2, b2, preferred_element_type=f32)            # (N, 2)
    for b in range(B):
        h = jnp.maximum(h_ref[b], 0.0)                           # (N, Din)
        y1 = bn1
        for e in range(E1.shape[1]):
            y1 = y1 + E1[:, e:e + 1] * jnp.dot(h, W1[e], preferred_element_type=f32)
        y1 = jnp.maximum(y1, 0.0)                                # (N, H)
        y2 = bn2
        for e in range(E2.shape[1]):
            y2 = y2 + E2[:, e:e + 1] * jnp.dot(y1, W2[e], preferred_element_type=f32)
        o_ref[b] = y2                                            # (N, 2)


def fc3_fused(h, sp):
    B, N, _ = h.shape
    args = [h, sp["E1"], sp["W1"], sp["b1"], sp["E2"], sp["W2"], sp["b2"]]
    args = [a.astype(jnp.float32) for a in args]
    return pl.pallas_call(
        _fc3_kernel,
        out_shape=jax.ShapeDtypeStruct((B, N, 2), jnp.float32),
        grid=(1,),
        in_specs=[_full_spec(a.shape) for a in args],
        out_specs=_full_spec((B, N, 2)),
    )(*args)


# ----------------------------------------------------------------------------
# Forward-pass composition
# ----------------------------------------------------------------------------
def sta_submodule(x_tnf, A, sp):
    """x_tnf: (B, T, N, F) -> (B, N, 2)"""
    for bp in sp["blocks"]:
        x_tnf = sta_block_fused(x_tnf, A, bp)
    B, T, N, tf = x_tnf.shape
    # Flatten the block output to (B, N, tf*T) in PyTorch's (channel, time)
    # order, matching the reference .reshape on a (B, N, tf, T) tensor.
    h = jnp.transpose(x_tnf, (0, 2, 3, 1)).reshape(B, N, tf * T)
    return fc3_fused(h, sp)


def sta_mgcn_forward(x, A, params, Tw, Td):
    # x: (B, F, N, T_total)  ->  canonical kernel layout (B, T, N, F)
    x = jnp.transpose(x, (0, 3, 2, 1))
    x_tw = x[:, :Tw]
    x_td = x[:, Tw:Tw + Td]
    x_th = x[:, Tw + Td:]
    out_th = sta_submodule(x_th, A, params["h"])
    out_td = sta_submodule(x_td, A, params["d"])
    out_tw = sta_submodule(x_tw, A, params["w"])
    out = out_th * params["W_h"] + out_tw * params["W_w"] + out_td * params["W_d"]
    return jnp.maximum(out, 0.0)


# ----------------------------------------------------------------------------
# Deterministic parameter construction
# ----------------------------------------------------------------------------
def make_block_params(key, N, F_in, gcn_filter, tf, T):
    ks = jax.random.split(key, 11)
    s = 0.1
    return {
        "U1": jax.random.normal(ks[0], (N,), jnp.float32) * s,
        "U2": jax.random.normal(ks[1], (F_in, N), jnp.float32) * s,
        "U3": jax.random.normal(ks[2], (F_in,), jnp.float32) * s,
        "be": jax.random.normal(ks[3], (1, T, T), jnp.float32) * s,
        "Ve": jax.random.normal(ks[4], (T, T), jnp.float32) * s,
        "gcn_W": jax.random.normal(ks[5], (3, F_in, gcn_filter), jnp.float32) * s,
        "gcn_b": jax.random.normal(ks[6], (3, 1, gcn_filter), jnp.float32) * s,
        "tc_W": jax.random.normal(ks[7], (2 * tf, gcn_filter, 1, 3), jnp.float32) * s,
        "tc_b": jax.random.normal(ks[8], (2 * tf,), jnp.float32) * s,
        "res_W": jax.random.normal(ks[9], (tf, F_in, 1, 1), jnp.float32) * s,
        "res_b": jax.random.normal(ks[10], (tf,), jnp.float32) * s,
        "ln_g": jnp.ones((tf,), jnp.float32),
        "ln_b": jnp.zeros((tf,), jnp.float32),
    }


def make_submodule_params(key, nb_st_block, in_channels, gcn_filter, tf, T, N):
    keys = jax.random.split(key, nb_st_block + 6)
    blocks = [make_block_params(keys[0], N, in_channels, gcn_filter, tf, T)]
    for i in range(nb_st_block - 1):
        blocks.append(make_block_params(keys[1 + i], N, tf, gcn_filter, tf, T))
    s = 0.1
    return {
        "blocks": blocks,
        "E1": jax.random.normal(keys[-6], (N, 4), jnp.float32) * s,
        "W1": jax.random.normal(keys[-5], (4, T * tf, 32), jnp.float32) * s,
        "b1": jax.random.normal(keys[-4], (4, 32), jnp.float32) * s,
        "E2": jax.random.normal(keys[-3], (N, 4), jnp.float32) * s,
        "W2": jax.random.normal(keys[-2], (4, 32, 2), jnp.float32) * s,
        "b2": jax.random.normal(keys[-1], (4, 2), jnp.float32) * s,
    }


def make_model_params(key, nb_st_block, in_channels, gcn_filter, tf, N,
                      num_hours, num_days, num_weeks):
    kh, kd, kw, k1, k2, k3 = jax.random.split(key, 6)
    s = 0.1
    return {
        "h": make_submodule_params(kh, nb_st_block, in_channels, gcn_filter, tf, num_hours, N),
        "d": make_submodule_params(kd, nb_st_block, in_channels, gcn_filter, tf, num_days, N),
        # the "w" submodule always uses num_time_steps=3, as in the PyTorch reference
        "w": make_submodule_params(kw, nb_st_block, in_channels, gcn_filter, tf, 3, N),
        "W_h": jax.random.normal(k1, (N, 2), jnp.float32) * s,
        "W_d": jax.random.normal(k2, (N, 2), jnp.float32) * s,
        "W_w": jax.random.normal(k3, (N, 2), jnp.float32) * s,
    }


# ----------------------------------------------------------------------------
# Main
# ----------------------------------------------------------------------------
if __name__ == "__main__":
    # Small configuration consistent with the forward pass.
    # num_hours = num_days = num_weeks = 3 so the dilated (1,3) temporal conv
    # output (width T-2 = 1) broadcasts against the residual exactly as the
    # PyTorch reference requires.  K is treated as 1-hop GCN (see TODO above).
    B = 2
    in_channels = 2
    num_nodes = 8
    gcn_filter = 16
    time_filter = 8
    nb_st_block = 2
    num_hours, num_days, num_weeks = 3, 3, 3
    T_total = num_hours + num_days + num_weeks

    root = jax.random.PRNGKey(0)
    k_params, k_x, k_A = jax.random.split(root, 3)

    params = make_model_params(k_params, nb_st_block, in_channels, gcn_filter,
                               time_filter, num_nodes, num_hours, num_days, num_weeks)
    x = jax.random.normal(k_x, (B, in_channels, num_nodes, T_total), jnp.float32)
    A = jax.random.normal(k_A, (3, num_nodes, num_nodes), jnp.float32) * 0.3

    fwd = jax.jit(functools.partial(sta_mgcn_forward, Tw=num_weeks, Td=num_days))
    out = fwd(x, A, params)
    out = jax.block_until_ready(out)
    assert out.shape == (B, num_nodes, 2), out.shape
    print("KERNEL_OK")
</pallas_src>

<mosaic_0001>
module attributes {stable_mosaic.version = 11 : i64} {
  func.func @_sta_block_kernel(%arg0: i32, %arg1: memref<2x3x8x2xf32, #tpu.memory_space<vmem>>, %arg2: memref<3x8x8xf32, #tpu.memory_space<vmem>>, %arg3: memref<8x1xf32, #tpu.memory_space<vmem>>, %arg4: memref<2x8xf32, #tpu.memory_space<vmem>>, %arg5: memref<2x1xf32, #tpu.memory_space<vmem>>, %arg6: memref<3x3xf32, #tpu.memory_space<vmem>>, %arg7: memref<3x3xf32, #tpu.memory_space<vmem>>, %arg8: memref<3x2x16xf32, #tpu.memory_space<vmem>>, %arg9: memref<3x1x16xf32, #tpu.memory_space<vmem>>, %arg10: memref<3x16x8xf32, #tpu.memory_space<vmem>>, %arg11: memref<3x16x8xf32, #tpu.memory_space<vmem>>, %arg12: memref<1x8xf32, #tpu.memory_space<vmem>>, %arg13: memref<1x8xf32, #tpu.memory_space<vmem>>, %arg14: memref<2x8xf32, #tpu.memory_space<vmem>>, %arg15: memref<1x8xf32, #tpu.memory_space<vmem>>, %arg16: memref<1x8xf32, #tpu.memory_space<vmem>>, %arg17: memref<1x8xf32, #tpu.memory_space<vmem>>, %arg18: memref<2x3x8x8xf32, #tpu.memory_space<vmem>>) attributes {dimension_semantics = [#tpu.dimension_semantics<arbitrary>], iteration_bounds = array<i64: 1>, scalar_prefetch = 0 : i64, scratch_operands = 0 : i64, tpu.core_type = #tpu.core_type<tc>, window_params = [{pipeline_mode = #tpu.pipeline_mode<synchronous>, transform_indices = @transform_0, window_bounds = array<i64: 2, 3, 8, 2>}, {pipeline_mode = #tpu.pipeline_mode<synchronous>, transform_indices = @transform_1, window_bounds = array<i64: 3, 8, 8>}, {pipeline_mode = #tpu.pipeline_mode<synchronous>, transform_indices = @transform_2, window_bounds = array<i64: 8, 1>}, {pipeline_mode = #tpu.pipeline_mode<synchronous>, transform_indices = @transform_3, window_bounds = array<i64: 2, 8>}, {pipeline_mode = #tpu.pipeline_mode<synchronous>, transform_indices = @transform_4, window_bounds = array<i64: 2, 1>}, {pipeline_mode = #tpu.pipeline_mode<synchronous>, transform_indices = @transform_5, window_bounds = array<i64: 3, 3>}, {pipeline_mode = #tpu.pipeline_mode<synchronous>, transform_indices = @transform_6, window_bounds = array<i64: 3, 3>}, {pipeline_mode = #tpu.pipeline_mode<synchronous>, transform_indices = @transform_7, window_bounds = array<i64: 3, 2, 16>}, {pipeline_mode = #tpu.pipeline_mode<synchronous>, transform_indices = @transform_8, window_bounds = array<i64: 3, 1, 16>}, {pipeline_mode = #tpu.pipeline_mode<synchronous>, transform_indices = @transform_9, window_bounds = array<i64: 3, 16, 8>}, {pipeline_mode = #tpu.pipeline_mode<synchronous>, transform_indices = @transform_10, window_bounds = array<i64: 3, 16, 8>}, {pipeline_mode = #tpu.pipeline_mode<synchronous>, transform_indices = @transform_11, window_bounds = array<i64: 1, 8>}, {pipeline_mode = #tpu.pipeline_mode<synchronous>, transform_indices = @transform_12, window_bounds = array<i64: 1, 8>}, {pipeline_mode = #tpu.pipeline_mode<synchronous>, transform_indices = @transform_13, window_bounds = array<i64: 2, 8>}, {pipeline_mode = #tpu.pipeline_mode<synchronous>, transform_indices = @transform_14, window_bounds = array<i64: 1, 8>}, {pipeline_mode = #tpu.pipeline_mode<synchronous>, transform_indices = @transform_15, window_bounds = array<i64: 1, 8>}, {pipeline_mode = #tpu.pipeline_mode<synchronous>, transform_indices = @transform_16, window_bounds = array<i64: 1, 8>}, {pipeline_mode = #tpu.pipeline_mode<synchronous>, transform_indices = @transform_17, window_bounds = array<i64: 2, 3, 8, 8>}]} {
    %c0 = arith.constant 0 : index
    %c0_0 = arith.constant 0 : index
    %c0_1 = arith.constant 0 : index
    %0 = vector.load %arg2[%c0, %c0_0, %c0_1] : memref<3x8x8xf32, #tpu.memory_space<vmem>>, vector<3x8x8xf32>
    %c0_2 = arith.constant 0 : index
    %c0_3 = arith.constant 0 : index
    %1 = vector.load %arg3[%c0_2, %c0_3] : memref<8x1xf32, #tpu.memory_space<vmem>>, vector<8x1xf32>
    %c0_4 = arith.constant 0 : index
    %c0_5 = arith.constant 0 : index
    %2 = vector.load %arg4[%c0_4, %c0_5] : memref<2x8xf32, #tpu.memory_space<vmem>>, vector<2x8xf32>
    %c0_6 = arith.constant 0 : index
    %c0_7 = arith.constant 0 : index
    %3 = vector.load %arg5[%c0_6, %c0_7] : memref<2x1xf32, #tpu.memory_space<vmem>>, vector<2x1xf32>
    %c0_8 = arith.constant 0 : index
    %c0_9 = arith.constant 0 : index
    %4 = vector.load %arg6[%c0_8, %c0_9] : memref<3x3xf32, #tpu.memory_space<vmem>>, vector<3x3xf32>
    %c0_10 = arith.constant 0 : index
    %c0_11 = arith.constant 0 : index
    %5 = vector.load %arg7[%c0_10, %c0_11] : memref<3x3xf32, #tpu.memory_space<vmem>>, vector<3x3xf32>
    %c0_12 = arith.constant 0 : index
    %c0_13 = arith.constant 0 : index
    %c0_14 = arith.constant 0 : index
    %6 = vector.load %arg8[%c0_12, %c0_13, %c0_14] : memref<3x2x16xf32, #tpu.memory_space<vmem>>, vector<3x2x16xf32>
    %c0_15 = arith.constant 0 : index
    %c0_16 = arith.constant 0 : index
    %c0_17 = arith.constant 0 : index
    %7 = vector.load %arg9[%c0_15, %c0_16, %c0_17] : memref<3x1x16xf32, #tpu.memory_space<vmem>>, vector<3x1x16xf32>
    %c0_18 = arith.constant 0 : index
    %c0_19 = arith.constant 0 : index
    %c0_20 = arith.constant 0 : index
    %8 = vector.load %arg10[%c0_18, %c0_19, %c0_20] : memref<3x16x8xf32, #tpu.memory_space<vmem>>, vector<3x16x8xf32>
    %c0_21 = arith.constant 0 : index
    %c0_22 = arith.constant 0 : index
    %c0_23 = arith.constant 0 : index
    %9 = vector.load %arg11[%c0_21, %c0_22, %c0_23] : memref<3x16x8xf32, #tpu.memory_space<vmem>>, vector<3x16x8xf32>
    %c0_24 = arith.constant 0 : index
    %c0_25 = arith.constant 0 : index
    %10 = vector.load %arg12[%c0_24, %c0_25] : memref<1x8xf32, #tpu.memory_space<vmem>>, vector<1x8xf32>
    %c0_26 = arith.constant 0 : index
    %c0_27 = arith.constant 0 : index
    %11 = vector.load %arg13[%c0_26, %c0_27] : memref<1x8xf32, #tpu.memory_space<vmem>>, vector<1x8xf32>
    %c0_28 = arith.constant 0 : index
    %c0_29 = arith.constant 0 : index
    %12 = vector.load %arg14[%c0_28, %c0_29] : memref<2x8xf32, #tpu.memory_space<vmem>>, vector<2x8xf32>
    %c0_30 = arith.constant 0 : index
    %c0_31 = arith.constant 0 : index
    %13 = vector.load %arg15[%c0_30, %c0_31] : memref<1x8xf32, #tpu.memory_space<vmem>>, vector<1x8xf32>
    %c0_32 = arith.constant 0 : index
    %c0_33 = arith.constant 0 : index
    %14 = vector.load %arg16[%c0_32, %c0_33] : memref<1x8xf32, #tpu.memory_space<vmem>>, vector<1x8xf32>
    %c0_34 = arith.constant 0 : index
    %c0_35 = arith.constant 0 : index
    %15 = vector.load %arg17[%c0_34, %c0_35] : memref<1x8xf32, #tpu.memory_space<vmem>>, vector<1x8xf32>
    %c0_36 = arith.constant 0 : index
    %c0_37 = arith.constant 0 : index
    %c0_38 = arith.constant 0 : index
    %c0_39 = arith.constant 0 : index
    %16 = vector.load %arg1[%c0_36, %c0_37, %c0_38, %c0_39] : memref<2x3x8x2xf32, #tpu.memory_space<vmem>>, vector<1x3x8x2xf32>
    %17 = vector.shape_cast %16 : vector<1x3x8x2xf32> to vector<3x8x2xf32>
    %18 = vector.extract_strided_slice %17 {offsets = [0, 0, 0], sizes = [1, 8, 2], strides = [1, 1, 1]} : vector<3x8x2xf32> to vector<1x8x2xf32>
    %19 = vector.shape_cast %18 : vector<1x8x2xf32> to vector<8x2xf32>
    %20 = vector.extract_strided_slice %17 {offsets = [1, 0, 0], sizes = [1, 8, 2], strides = [1, 1, 1]} : vector<3x8x2xf32> to vector<1x8x2xf32>
    %21 = vector.shape_cast %20 : vector<1x8x2xf32> to vector<8x2xf32>
    %22 = vector.extract_strided_slice %17 {offsets = [2, 0, 0], sizes = [1, 8, 2], strides = [1, 1, 1]} : vector<3x8x2xf32> to vector<1x8x2xf32>
    %23 = vector.shape_cast %22 : vector<1x8x2xf32> to vector<8x2xf32>
    %24 = vector.shape_cast %1 : vector<8x1xf32> to vector<1x8x1xf32>
    %25 = vector.broadcast %24 : vector<1x8x1xf32> to vector<3x8x2xf32>
    %26 = arith.mulf %17, %25 : vector<3x8x2xf32>
    %cst = arith.constant dense<0.000000e+00> : vector<3x2xf32>
    %27 = vector.multi_reduction <add>, %26, %cst [1] : vector<3x8x2xf32> to vector<3x2xf32>
    %cst_40 = arith.constant dense<0.000000e+00> : vector<3x8xf32>
    %28 = tpu.matmul %27, %2, %cst_40 {dimension_numbers = #tpu.dot_dimension_numbers<[1], [0], [0], [1], [0, 0, 1, 1], [], []>} : vector<3x2xf32>, vector<2x8xf32>, vector<3x8xf32> -> vector<3x8xf32>
    %cst_41 = arith.constant dense<0.000000e+00> : vector<8x1xf32>
    %29 = tpu.matmul %21, %3, %cst_41 {dimension_numbers = #tpu.dot_dimension_numbers<[1], [0], [0], [1], [0, 0, 1, 1], [], []>} : vector<8x2xf32>, vector<2x1xf32>, vector<8x1xf32> -> vector<8x1xf32>
    %cst_42 = arith.constant dense<0.000000e+00> : vector<3x1xf32>
    %30 = tpu.matmul %28, %29, %cst_42 {dimension_numbers = #tpu.dot_dimension_numbers<[1], [0], [0], [1], [0, 0, 1, 1], [], []>} : vector<3x8xf32>, vector<8x1xf32>, vector<3x1xf32> -> vector<3x1xf32>
    %31 = vector.extract_strided_slice %4 {offsets = [0, 1], sizes = [3, 1], strides = [1, 1]} : vector<3x3xf32> to vector<3x1xf32>
    %32 = arith.addf %30, %31 : vector<3x1xf32>
    %33 = arith.negf %32 : vector<3x1xf32>
    %34 = math.exp %33 : vector<3x1xf32>
    %cst_43 = arith.constant 1.000000e+00 : f32
    %35 = vector.broadcast %cst_43 : f32 to vector<3x1xf32>
    %36 = arith.addf %35, %34 : vector<3x1xf32>
    %37 = arith.divf %35, %36 : vector<3x1xf32>
    %cst_44 = arith.constant dense<0.000000e+00> : vector<3x1xf32>
    %38 = tpu.matmul %5, %37, %cst_44 {dimension_numbers = #tpu.dot_dimension_numbers<[1], [0], [0], [1], [0, 0, 1, 1], [], []>} : vector<3x3xf32>, vector<3x1xf32>, vector<3x1xf32> -> vector<3x1xf32>
    %cst_45 = arith.constant dense<0xFF800000> : vector<1xf32>
    %39 = vector.multi_reduction <maximumf>, %38, %cst_45 [0] : vector<3x1xf32> to vector<1xf32>
    %40 = vector.shape_cast %39 : vector<1xf32> to vector<1x1xf32>
    %41 = vector.broadcast %40 : vector<1x1xf32> to vector<3x1xf32>
    %42 = arith.subf %38, %41 : vector<3x1xf32>
    %43 = math.exp %42 : vector<3x1xf32>
    %cst_46 = arith.constant dense<0.000000e+00> : vector<1xf32>
    %44 = vector.multi_reduction <add>, %43, %cst_46 [0] : vector<3x1xf32> to vector<1xf32>
    %45 = vector.shape_cast %44 : vector<1xf32> to vector<1x1xf32>
    %46 = vector.broadcast %45 : vector<1x1xf32> to vector<3x1xf32>
    %47 = arith.divf %43, %46 : vector<3x1xf32>
    %48 = vector.extract_strided_slice %47 {offsets = [0, 0], sizes = [1, 1], strides = [1, 1]} : vector<3x1xf32> to vector<1x1xf32>
    %49 = vector.broadcast %48 : vector<1x1xf32> to vector<8x2xf32>
    %50 = arith.mulf %19, %49 : vector<8x2xf32>
    %51 = vector.extract_strided_slice %47 {offsets = [1, 0], sizes = [1, 1], strides = [1, 1]} : vector<3x1xf32> to vector<1x1xf32>
    %52 = vector.broadcast %51 : vector<1x1xf32> to vector<8x2xf32>
    %53 = arith.mulf %21, %52 : vector<8x2xf32>
    %54 = arith.addf %50, %53 : vector<8x2xf32>
    %55 = vector.extract_strided_slice %47 {offsets = [2, 0], sizes = [1, 1], strides = [1, 1]} : vector<3x1xf32> to vector<1x1xf32>
    %56 = vector.broadcast %55 : vector<1x1xf32> to vector<8x2xf32>
    %57 = arith.mulf %23, %56 : vector<8x2xf32>
    %58 = arith.addf %54, %57 : vector<8x2xf32>
    %59 = vector.extract_strided_slice %0 {offsets = [0, 0, 0], sizes = [1, 8, 8], strides = [1, 1, 1]} : vector<3x8x8xf32> to vector<1x8x8xf32>
    %60 = vector.shape_cast %59 : vector<1x8x8xf32> to vector<8x8xf32>
    %cst_47 = arith.constant dense<0.000000e+00> : vector<8x2xf32>
    %61 = tpu.matmul %60, %58, %cst_47 {dimension_numbers = #tpu.dot_dimension_numbers<[1], [0], [0], [1], [0, 0, 1, 1], [], []>} : vector<8x8xf32>, vector<8x2xf32>, vector<8x2xf32> -> vector<8x2xf32>
    %62 = vector.extract_strided_slice %6 {offsets = [0, 0, 0], sizes = [1, 2, 16], strides = [1, 1, 1]} : vector<3x2x16xf32> to vector<1x2x16xf32>
    %63 = vector.shape_cast %62 : vector<1x2x16xf32> to vector<2x16xf32>
    %cst_48 = arith.constant dense<0.000000e+00> : vector<8x16xf32>
    %64 = tpu.matmul %61, %63, %cst_48 {dimension_numbers = #tpu.dot_dimension_numbers<[1], [0], [0], [1], [0, 0, 1, 1], [], []>} : vector<8x2xf32>, vector<2x16xf32>, vector<8x16xf32> -> vector<8x16xf32>
    %65 = vector.extract_strided_slice %7 {offsets = [0, 0, 0], sizes = [1, 1, 16], strides = [1, 1, 1]} : vector<3x1x16xf32> to vector<1x1x16xf32>
    %66 = vector.shape_cast %65 : vector<1x1x16xf32> to vector<1x16xf32>
    %67 = vector.broadcast %66 : vector<1x16xf32> to vector<8x16xf32>
    %68 = arith.addf %64, %67 : vector<8x16xf32>
    %cst_49 = arith.constant 0.000000e+00 : f32
    %69 = vector.broadcast %cst_49 : f32 to vector<8x16xf32>
    %70 = arith.maximumf %68, %69 : vector<8x16xf32>
    %71 = vector.extract_strided_slice %0 {offsets = [1, 0, 0], sizes = [1, 8, 8], strides = [1, 1, 1]} : vector<3x8x8xf32> to vector<1x8x8xf32>
    %72 = vector.shape_cast %71 : vector<1x8x8xf32> to vector<8x8xf32>
    %cst_50 = arith.constant dense<0.000000e+00> : vector<8x2xf32>
    %73 = tpu.matmul %72, %58, %cst_50 {dimension_numbers = #tpu.dot_dimension_numbers<[1], [0], [0], [1], [0, 0, 1, 1], [], []>} : vector<8x8xf32>, vector<8x2xf32>, vector<8x2xf32> -> vector<8x2xf32>
    %74 = vector.extract_strided_slice %6 {offsets = [1, 0, 0], sizes = [1, 2, 16], strides = [1, 1, 1]} : vector<3x2x16xf32> to vector<1x2x16xf32>
    %75 = vector.shape_cast %74 : vector<1x2x16xf32> to vector<2x16xf32>
    %cst_51 = arith.constant dense<0.000000e+00> : vector<8x16xf32>
    %76 = tpu.matmul %73, %75, %cst_51 {dimension_numbers = #tpu.dot_dimension_numbers<[1], [0], [0], [1], [0, 0, 1, 1], [], []>} : vector<8x2xf32>, vector<2x16xf32>, vector<8x16xf32> -> vector<8x16xf32>
    %77 = vector.extract_strided_slice %7 {offsets = [1, 0, 0], sizes = [1, 1, 16], strides = [1, 1, 1]} : vector<3x1x16xf32> to vector<1x1x16xf32>
    %78 = vector.shape_cast %77 : vector<1x1x16xf32> to vector<1x16xf32>
    %79 = vector.broadcast %78 : vector<1x16xf32> to vector<8x16xf32>
    %80 = arith.addf %76, %79 : vector<8x16xf32>
    %cst_52 = arith.constant 0.000000e+00 : f32
    %81 = vector.broadcast %cst_52 : f32 to vector<8x16xf32>
    %82 = arith.maximumf %80, %81 : vector<8x16xf32>
    %83 = arith.addf %70, %82 : vector<8x16xf32>
    %84 = vector.extract_strided_slice %0 {offsets = [2, 0, 0], sizes = [1, 8, 8], strides = [1, 1, 1]} : vector<3x8x8xf32> to vector<1x8x8xf32>
    %85 = vector.shape_cast %84 : vector<1x8x8xf32> to vector<8x8xf32>
    %cst_53 = arith.constant dense<0.000000e+00> : vector<8x2xf32>
    %86 = tpu.matmul %85, %58, %cst_53 {dimension_numbers = #tpu.dot_dimension_numbers<[1], [0], [0], [1], [0, 0, 1, 1], [], []>} : vector<8x8xf32>, vector<8x2xf32>, vector<8x2xf32> -> vector<8x2xf32>
    %87 = vector.extract_strided_slice %6 {offsets = [2, 0, 0], sizes = [1, 2, 16], strides = [1, 1, 1]} : vector<3x2x16xf32> to vector<1x2x16xf32>
    %88 = vector.shape_cast %87 : vector<1x2x16xf32> to vector<2x16xf32>
    %cst_54 = arith.constant dense<0.000000e+00> : vector<8x16xf32>
    %89 = tpu.matmul %86, %88, %cst_54 {dimension_numbers = #tpu.dot_dimension_numbers<[1], [0], [0], [1], [0, 0, 1, 1], [], []>} : vector<8x2xf32>, vector<2x16xf32>, vector<8x16xf32> -> vector<8x16xf32>
    %90 = vector.extract_strided_slice %7 {offsets = [2, 0, 0], sizes = [1, 1, 16], strides = [1, 1, 1]} : vector<3x1x16xf32> to vector<1x1x16xf32>
    %91 = vector.shape_cast %90 : vector<1x1x16xf32> to vector<1x16xf32>
    %92 = vector.broadcast %91 : vector<1x16xf32> to vector<8x16xf32>
    %93 = arith.addf %89, %92 : vector<8x16xf32>
    %cst_55 = arith.constant 0.000000e+00 : f32
    %94 = vector.broadcast %cst_55 : f32 to vector<8x16xf32>
    %95 = arith.maximumf %93, %94 : vector<8x16xf32>
    %96 = arith.addf %83, %95 : vector<8x16xf32>
    %cst_56 = arith.constant 0.000000e+00 : f32
    %97 = vector.broadcast %cst_56 : f32 to vector<8x8xf32>
    %cst_57 = arith.constant 0.000000e+00 : f32
    %98 = vector.broadcast %cst_57 : f32 to vector<8x8xf32>
    %99 = vector.extract_strided_slice %8 {offsets = [1, 0, 0], sizes = [1, 16, 8], strides = [1, 1, 1]} : vector<3x16x8xf32> to vector<1x16x8xf32>
    %100 = vector.shape_cast %99 : vector<1x16x8xf32> to vector<16x8xf32>
    %cst_58 = arith.constant dense<0.000000e+00> : vector<8x8xf32>
    %101 = tpu.matmul %96, %100, %cst_58 {dimension_numbers = #tpu.dot_dimension_numbers<[1], [0], [0], [1], [0, 0, 1, 1], [], []>} : vector<8x16xf32>, vector<16x8xf32>, vector<8x8xf32> -> vector<8x8xf32>
    %102 = arith.addf %97, %101 : vector<8x8xf32>
    %103 = vector.extract_strided_slice %9 {offsets = [1, 0, 0], sizes = [1, 16, 8], strides = [1, 1, 1]} : vector<3x16x8xf32> to vector<1x16x8xf32>
    %104 = vector.shape_cast %103 : vector<1x16x8xf32> to vector<16x8xf32>
    %cst_59 = arith.constant dense<0.000000e+00> : vector<8x8xf32>
    %105 = tpu.matmul %96, %104, %cst_59 {dimension_numbers = #tpu.dot_dimension_numbers<[1], [0], [0], [1], [0, 0, 1, 1], [], []>} : vector<8x16xf32>, vector<16x8xf32>, vector<8x8xf32> -> vector<8x8xf32>
    %106 = arith.addf %98, %105 : vector<8x8xf32>
    %107 = vector.broadcast %10 : vector<1x8xf32> to vector<8x8xf32>
    %108 = arith.addf %102, %107 : vector<8x8xf32>
    %109 = math.tanh %108 : vector<8x8xf32>
    %110 = vector.broadcast %11 : vector<1x8xf32> to vector<8x8xf32>
    %111 = arith.addf %106, %110 : vector<8x8xf32>
    %112 = arith.negf %111 : vector<8x8xf32>
    %113 = math.exp %112 : vector<8x8xf32>
    %cst_60 = arith.constant 1.000000e+00 : f32
    %114 = vector.broadcast %cst_60 : f32 to vector<8x8xf32>
    %115 = arith.addf %114, %113 : vector<8x8xf32>
    %116 = arith.divf %114, %115 : vector<8x8xf32>
    %117 = arith.mulf %109, %116 : vector<8x8xf32>
    %cst_61 = arith.constant dense<0.000000e+00> : vector<8x8xf32>
    %118 = tpu.matmul %19, %12, %cst_61 {dimension_numbers = #tpu.dot_dimension_numbers<[1], [0], [0], [1], [0, 0, 1, 1], [], []>} : vector<8x2xf32>, vector<2x8xf32>, vector<8x8xf32> -> vector<8x8xf32>
    %119 = vector.broadcast %13 : vector<1x8xf32> to vector<8x8xf32>
    %120 = arith.addf %118, %119 : vector<8x8xf32>
    %121 = arith.addf %120, %117 : vector<8x8xf32>
    %cst_62 = arith.constant 0.000000e+00 : f32
    %122 = vector.broadcast %cst_62 : f32 to vector<8x8xf32>
    %123 = arith.maximumf %121, %122 : vector<8x8xf32>
    %cst_63 = arith.constant dense<0.000000e+00> : vector<8xf32>
    %124 = vector.multi_reduction <add>, %123, %cst_63 [1] : vector<8x8xf32> to vector<8xf32>
    %125 = vector.shape_cast %124 : vector<8xf32> to vector<8x1xf32>
    %cst_64 = arith.constant 8.000000e+00 : f32
    %126 = vector.broadcast %cst_64 : f32 to vector<8x1xf32>
    %127 = arith.divf %125, %126 : vector<8x1xf32>
    %128 = vector.broadcast %127 : vector<8x1xf32> to vector<8x8xf32>
    %129 = arith.subf %123, %128 : vector<8x8xf32>
    %130 = arith.mulf %129, %129 : vector<8x8xf32>
    %cst_65 = arith.constant dense<0.000000e+00> : vector<8xf32>
    %131 = vector.multi_reduction <add>, %130, %cst_65 [1] : vector<8x8xf32> to vector<8xf32>
    %132 = vector.shape_cast %131 : vector<8xf32> to vector<8x1xf32>
    %cst_66 = arith.constant 8.000000e+00 : f32
    %133 = vector.broadcast %cst_66 : f32 to vector<8x1xf32>
    %134 = arith.divf %132, %133 : vector<8x1xf32>
    %135 = vector.broadcast %127 : vector<8x1xf32> to vector<8x8xf32>
    %136 = arith.subf %123, %135 : vector<8x8xf32>
    %cst_67 = arith.constant 9.99999974E-6 : f32
    %137 = vector.broadcast %cst_67 : f32 to vector<8x1xf32>
    %138 = arith.addf %134, %137 : vector<8x1xf32>
    %139 = math.rsqrt %138 : vector<8x1xf32>
    %140 = vector.broadcast %139 : vector<8x1xf32> to vector<8x8xf32>
    %141 = arith.mulf %136, %140 : vector<8x8xf32>
    %142 = vector.broadcast %14 : vector<1x8xf32> to vector<8x8xf32>
    %143 = arith.mulf %141, %142 : vector<8x8xf32>
    %144 = vector.broadcast %15 : vector<1x8xf32> to vector<8x8xf32>
    %145 = arith.addf %143, %144 : vector<8x8xf32>
    %c0_68 = arith.constant 0 : index
    %c0_69 = arith.constant 0 : index
    %c0_70 = arith.constant 0 : index
    %c0_71 = arith.constant 0 : index
    %146 = vector.load %arg18[%c0_68, %c0_69, %c0_70, %c0_71] : memref<2x3x8x8xf32, #tpu.memory_space<vmem>>, vector<1x1x8x8xf32>
    %147 = vector.shape_cast %146 : vector<1x1x8x8xf32> to vector<8x8xf32>
    %148 = vector.shape_cast %145 : vector<8x8xf32> to vector<1x1x8x8xf32>
    tpu.vector_store %arg18[%c0_68, %c0_69, %c0_70, %c0_71], %148 {strides = array<i32>} : memref<2x3x8x8xf32, #tpu.memory_space<vmem>>, vector<1x1x8x8xf32>,
    %cst_72 = arith.constant dense<0.000000e+00> : vector<8x8xf32>
    %149 = tpu.matmul %21, %12, %cst_72 {dimension_numbers = #tpu.dot_dimension_numbers<[1], [0], [0], [1], [0, 0, 1, 1], [], []>} : vector<8x2xf32>, vector<2x8xf32>, vector<8x8xf32> -> vector<8x8xf32>
    %150 = vector.broadcast %13 : vector<1x8xf32> to vector<8x8xf32>
    %151 = arith.addf %149, %150 : vector<8x8xf32>
    %152 = arith.addf %151, %117 : vector<8x8xf32>
    %cst_73 = arith.constant 0.000000e+00 : f32
    %153 = vector.broadcast %cst_73 : f32 to vector<8x8xf32>
    %154 = arith.maximumf %152, %153 : vector<8x8xf32>
    %cst_74 = arith.constant dense<0.000000e+00> : vector<8xf32>
    %155 = vector.multi_reduction <add>, %154, %cst_74 [1] : vector<8x8xf32> to vector<8xf32>
    %156 = vector.shape_cast %155 : vector<8xf32> to vector<8x1xf32>
    %cst_75 = arith.constant 8.000000e+00 : f32
    %157 = vector.broadcast %cst_75 : f32 to vector<8x1xf32>
    %158 = arith.divf %156, %157 : vector<8x1xf32>
    %159 = vector.broadcast %158 : vector<8x1xf32> to vector<8x8xf32>
    %160 = arith.subf %154, %159 : vector<8x8xf32>
    %161 = arith.mulf %160, %160 : vector<8x8xf32>
    %cst_76 = arith.constant dense<0.000000e+00> : vector<8xf32>
    %162 = vector.multi_reduction <add>, %161, %cst_76 [1] : vector<8x8xf32> to vector<8xf32>
    %163 = vector.shape_cast %162 : vector<8xf32> to vector<8x1xf32>
    %cst_77 = arith.constant 8.000000e+00 : f32
    %164 = vector.broadcast %cst_77 : f32 to vector<8x1xf32>
    %165 = arith.divf %163, %164 : vector<8x1xf32>
    %166 = vector.broadcast %158 : vector<8x1xf32> to vector<8x8xf32>
    %167 = arith.subf %154, %166 : vector<8x8xf32>
    %cst_78 = arith.constant 9.99999974E-6 : f32
    %168 = vector.broadcast %cst_78 : f32 to vector<8x1xf32>
    %169 = arith.addf %165, %168 : vector<8x1xf32>
    %170 = math.rsqrt %169 : vector<8x1xf32>
    %171 = vector.broadcast %170 : vector<8x1xf32> to vector<8x8xf32>
    %172 = arith.mulf %167, %171 : vector<8x8xf32>
    %173 = vector.broadcast %14 : vector<1x8xf32> to vector<8x8xf32>
    %174 = arith.mulf %172, %173 : vector<8x8xf32>
    %175 = vector.broadcast %15 : vector<1x8xf32> to vector<8x8xf32>
    %176 = arith.addf %174, %175 : vector<8x8xf32>
    %c0_79 = arith.constant 0 : index
    %c1 = arith.constant 1 : index
    %c0_80 = arith.constant 0 : index
    %c0_81 = arith.constant 0 : index
    %177 = vector.load %arg18[%c0_79, %c1, %c0_80, %c0_81] : memref<2x3x8x8xf32, #tpu.memory_space<vmem>>, vector<1x1x8x8xf32>
    %178 = vector.shape_cast %177 : vector<1x1x8x8xf32> to vector<8x8xf32>
    %179 = vector.shape_cast %176 : vector<8x8xf32> to vector<1x1x8x8xf32>
    tpu.vector_store %arg18[%c0_79, %c1, %c0_80, %c0_81], %179 {strides = array<i32>} : memref<2x3x8x8xf32, #tpu.memory_space<vmem>>, vector<1x1x8x8xf32>,
    %cst_82 = arith.constant dense<0.000000e+00> : vector<8x8xf32>
    %180 = tpu.matmul %23, %12, %cst_82 {dimension_numbers = #tpu.dot_dimension_numbers<[1], [0], [0], [1], [0, 0, 1, 1], [], []>} : vector<8x2xf32>, vector<2x8xf32>, vector<8x8xf32> -> vector<8x8xf32>
    %181 = vector.broadcast %13 : vector<1x8xf32> to vector<8x8xf32>
    %182 = arith.addf %180, %181 : vector<8x8xf32>
    %183 = arith.addf %182, %117 : vector<8x8xf32>
    %cst_83 = arith.constant 0.000000e+00 : f32
    %184 = vector.broadcast %cst_83 : f32 to vector<8x8xf32>
    %185 = arith.maximumf %183, %184 : vector<8x8xf32>
    %cst_84 = arith.constant dense<0.000000e+00> : vector<8xf32>
    %186 = vector.multi_reduction <add>, %185, %cst_84 [1] : vector<8x8xf32> to vector<8xf32>
    %187 = vector.shape_cast %186 : vector<8xf32> to vector<8x1xf32>
    %cst_85 = arith.constant 8.000000e+00 : f32
    %188 = vector.broadcast %cst_85 : f32 to vector<8x1xf32>
    %189 = arith.divf %187, %188 : vector<8x1xf32>
    %190 = vector.broadcast %189 : vector<8x1xf32> to vector<8x8xf32>
    %191 = arith.subf %185, %190 : vector<8x8xf32>
    %192 = arith.mulf %191, %191 : vector<8x8xf32>
    %cst_86 = arith.constant dense<0.000000e+00> : vector<8xf32>
    %193 = vector.multi_reduction <add>, %192, %cst_86 [1] : vector<8x8xf32> to vector<8xf32>
    %194 = vector.shape_cast %193 : vector<8xf32> to vector<8x1xf32>
    %cst_87 = arith.constant 8.000000e+00 : f32
    %195 = vector.broadcast %cst_87 : f32 to vector<8x1xf32>
    %196 = arith.divf %194, %195 : vector<8x1xf32>
    %197 = vector.broadcast %189 : vector<8x1xf32> to vector<8x8xf32>
    %198 = arith.subf %185, %197 : vector<8x8xf32>
    %cst_88 = arith.constant 9.99999974E-6 : f32
    %199 = vector.broadcast %cst_88 : f32 to vector<8x1xf32>
    %200 = arith.addf %196, %199 : vector<8x1xf32>
    %201 = math.rsqrt %200 : vector<8x1xf32>
    %202 = vector.broadcast %201 : vector<8x1xf32> to vector<8x8xf32>
    %203 = arith.mulf %198, %202 : vector<8x8xf32>
    %204 = vector.broadcast %14 : vector<1x8xf32> to vector<8x8xf32>
    %205 = arith.mulf %203, %204 : vector<8x8xf32>
    %206 = vector.broadcast %15 : vector<1x8xf32> to vector<8x8xf32>
    %207 = arith.addf %205, %206 : vector<8x8xf32>
    %c0_89 = arith.constant 0 : index
    %c2 = arith.constant 2 : index
    %c0_90 = arith.constant 0 : index
    %c0_91 = arith.constant 0 : index
    %208 = vector.load %arg18[%c0_89, %c2, %c0_90, %c0_91] : memref<2x3x8x8xf32, #tpu.memory_space<vmem>>, vector<1x1x8x8xf32>
    %209 = vector.shape_cast %208 : vector<1x1x8x8xf32> to vector<8x8xf32>
    %210 = vector.shape_cast %207 : vector<8x8xf32> to vector<1x1x8x8xf32>
    tpu.vector_store %arg18[%c0_89, %c2, %c0_90, %c0_91], %210 {strides = array<i32>} : memref<2x3x8x8xf32, #tpu.memory_space<vmem>>, vector<1x1x8x8xf32>,
    %c1_92 = arith.constant 1 : index
    %c0_93 = arith.constant 0 : index
    %c0_94 = arith.constant 0 : index
    %c0_95 = arith.constant 0 : index
    %211 = vector.load %arg1[%c1_92, %c0_93, %c0_94, %c0_95] : memref<2x3x8x2xf32, #tpu.memory_space<vmem>>, vector<1x3x8x2xf32>
    %212 = vector.shape_cast %211 : vector<1x3x8x2xf32> to vector<3x8x2xf32>
    %213 = vector.extract_strided_slice %212 {offsets = [0, 0, 0], sizes = [1, 8, 2], strides = [1, 1, 1]} : vector<3x8x2xf32> to vector<1x8x2xf32>
    %214 = vector.shape_cast %213 : vector<1x8x2xf32> to vector<8x2xf32>
    %215 = vector.extract_strided_slice %212 {offsets = [1, 0, 0], sizes = [1, 8, 2], strides = [1, 1, 1]} : vector<3x8x2xf32> to vector<1x8x2xf32>
    %216 = vector.shape_cast %215 : vector<1x8x2xf32> to vector<8x2xf32>
    %217 = vector.extract_strided_slice %212 {offsets = [2, 0, 0], sizes = [1, 8, 2], strides = [1, 1, 1]} : vector<3x8x2xf32> to vector<1x8x2xf32>
    %218 = vector.shape_cast %217 : vector<1x8x2xf32> to vector<8x2xf32>
    %219 = vector.shape_cast %1 : vector<8x1xf32> to vector<1x8x1xf32>
    %220 = vector.broadcast %219 : vector<1x8x1xf32> to vector<3x8x2xf32>
    %221 = arith.mulf %212, %220 : vector<3x8x2xf32>
    %cst_96 = arith.constant dense<0.000000e+00> : vector<3x2xf32>
    %222 = vector.multi_reduction <add>, %221, %cst_96 [1] : vector<3x8x2xf32> to vector<3x2xf32>
    %cst_97 = arith.constant dense<0.000000e+00> : vector<3x8xf32>
    %223 = tpu.matmul %222, %2, %cst_97 {dimension_numbers = #tpu.dot_dimension_numbers<[1], [0], [0], [1], [0, 0, 1, 1], [], []>} : vector<3x2xf32>, vector<2x8xf32>, vector<3x8xf32> -> vector<3x8xf32>
    %cst_98 = arith.constant dense<0.000000e+00> : vector<8x1xf32>
    %224 = tpu.matmul %216, %3, %cst_98 {dimension_numbers = #tpu.dot_dimension_numbers<[1], [0], [0], [1], [0, 0, 1, 1], [], []>} : vector<8x2xf32>, vector<2x1xf32>, vector<8x1xf32> -> vector<8x1xf32>
    %cst_99 = arith.constant dense<0.000000e+00> : vector<3x1xf32>
    %225 = tpu.matmul %223, %224, %cst_99 {dimension_numbers = #tpu.dot_dimension_numbers<[1], [0], [0], [1], [0, 0, 1, 1], [], []>} : vector<3x8xf32>, vector<8x1xf32>, vector<3x1xf32> -> vector<3x1xf32>
    %226 = vector.extract_strided_slice %4 {offsets = [0, 1], sizes = [3, 1], strides = [1, 1]} : vector<3x3xf32> to vector<3x1xf32>
    %227 = arith.addf %225, %226 : vector<3x1xf32>
    %228 = arith.negf %227 : vector<3x1xf32>
    %229 = math.exp %228 : vector<3x1xf32>
    %cst_100 = arith.constant 1.000000e+00 : f32
    %230 = vector.broadcast %cst_100 : f32 to vector<3x1xf32>
    %231 = arith.addf %230, %229 : vector<3x1xf32>
    %232 = arith.divf %230, %231 : vector<3x1xf32>
    %cst_101 = arith.constant dense<0.000000e+00> : vector<3x1xf32>
    %233 = tpu.matmul %5, %232, %cst_101 {dimension_numbers = #tpu.dot_dimension_numbers<[1], [0], [0], [1], [0, 0, 1, 1], [], []>} : vector<3x3xf32>, vector<3x1xf32>, vector<3x1xf32> -> vector<3x1xf32>
    %cst_102 = arith.constant dense<0xFF800000> : vector<1xf32>
    %234 = vector.multi_reduction <maximumf>, %233, %cst_102 [0] : vector<3x1xf32> to vector<1xf32>
    %235 = vector.shape_cast %234 : vector<1xf32> to vector<1x1xf32>
    %236 = vector.broadcast %235 : vector<1x1xf32> to vector<3x1xf32>
    %237 = arith.subf %233, %236 : vector<3x1xf32>
    %238 = math.exp %237 : vector<3x1xf32>
    %cst_103 = arith.constant dense<0.000000e+00> : vector<1xf32>
    %239 = vector.multi_reduction <add>, %238, %cst_103 [0] : vector<3x1xf32> to vector<1xf32>
    %240 = vector.shape_cast %239 : vector<1xf32> to vector<1x1xf32>
    %241 = vector.broadcast %240 : vector<1x1xf32> to vector<3x1xf32>
    %242 = arith.divf %238, %241 : vector<3x1xf32>
    %243 = vector.extract_strided_slice %242 {offsets = [0, 0], sizes = [1, 1], strides = [1, 1]} : vector<3x1xf32> to vector<1x1xf32>
    %244 = vector.broadcast %243 : vector<1x1xf32> to vector<8x2xf32>
    %245 = arith.mulf %214, %244 : vector<8x2xf32>
    %246 = vector.extract_strided_slice %242 {offsets = [1, 0], sizes = [1, 1], strides = [1, 1]} : vector<3x1xf32> to vector<1x1xf32>
    %247 = vector.broadcast %246 : vector<1x1xf32> to vector<8x2xf32>
    %248 = arith.mulf %216, %247 : vector<8x2xf32>
    %249 = arith.addf %245, %248 : vector<8x2xf32>
    %250 = vector.extract_strided_slice %242 {offsets = [2, 0], sizes = [1, 1], strides = [1, 1]} : vector<3x1xf32> to vector<1x1xf32>
    %251 = vector.broadcast %250 : vector<1x1xf32> to vector<8x2xf32>
    %252 = arith.mulf %218, %251 : vector<8x2xf32>
    %253 = arith.addf %249, %252 : vector<8x2xf32>
    %254 = vector.extract_strided_slice %0 {offsets = [0, 0, 0], sizes = [1, 8, 8], strides = [1, 1, 1]} : vector<3x8x8xf32> to vector<1x8x8xf32>
    %255 = vector.shape_cast %254 : vector<1x8x8xf32> to vector<8x8xf32>
    %cst_104 = arith.constant dense<0.000000e+00> : vector<8x2xf32>
    %256 = tpu.matmul %255, %253, %cst_104 {dimension_numbers = #tpu.dot_dimension_numbers<[1], [0], [0], [1], [0, 0, 1, 1], [], []>} : vector<8x8xf32>, vector<8x2xf32>, vector<8x2xf32> -> vector<8x2xf32>
    %257 = vector.extract_strided_slice %6 {offsets = [0, 0, 0], sizes = [1, 2, 16], strides = [1, 1, 1]} : vector<3x2x16xf32> to vector<1x2x16xf32>
    %258 = vector.shape_cast %257 : vector<1x2x16xf32> to vector<2x16xf32>
    %cst_105 = arith.constant dense<0.000000e+00> : vector<8x16xf32>
    %259 = tpu.matmul %256, %258, %cst_105 {dimension_numbers = #tpu.dot_dimension_numbers<[1], [0], [0], [1], [0, 0, 1, 1], [], []>} : vector<8x2xf32>, vector<2x16xf32>, vector<8x16xf32> -> vector<8x16xf32>
    %260 = vector.extract_strided_slice %7 {offsets = [0, 0, 0], sizes = [1, 1, 16], strides = [1, 1, 1]} : vector<3x1x16xf32> to vector<1x1x16xf32>
    %261 = vector.shape_cast %260 : vector<1x1x16xf32> to vector<1x16xf32>
    %262 = vector.broadcast %261 : vector<1x16xf32> to vector<8x16xf32>
    %263 = arith.addf %259, %262 : vector<8x16xf32>
    %cst_106 = arith.constant 0.000000e+00 : f32
    %264 = vector.broadcast %cst_106 : f32 to vector<8x16xf32>
    %265 = arith.maximumf %263, %264 : vector<8x16xf32>
    %266 = vector.extract_strided_slice %0 {offsets = [1, 0, 0], sizes = [1, 8, 8], strides = [1, 1, 1]} : vector<3x8x8xf32> to vector<1x8x8xf32>
    %267 = vector.shape_cast %266 : vector<1x8x8xf32> to vector<8x8xf32>
    %cst_107 = arith.constant dense<0.000000e+00> : vector<8x2xf32>
    %268 = tpu.matmul %267, %253, %cst_107 {dimension_numbers = #tpu.dot_dimension_numbers<[1], [0], [0], [1], [0, 0, 1, 1], [], []>} : vector<8x8xf32>, vector<8x2xf32>, vector<8x2xf32> -> vector<8x2xf32>
    %269 = vector.extract_strided_slice %6 {offsets = [1, 0, 0], sizes = [1, 2, 16], strides = [1, 1, 1]} : vector<3x2x16xf32> to vector<1x2x16xf32>
    %270 = vector.shape_cast %269 : vector<1x2x16xf32> to vector<2x16xf32>
    %cst_108 = arith.constant dense<0.000000e+00> : vector<8x16xf32>
    %271 = tpu.matmul %268, %270, %cst_108 {dimension_numbers = #tpu.dot_dimension_numbers<[1], [0], [0], [1], [0, 0, 1, 1], [], []>} : vector<8x2xf32>, vector<2x16xf32>, vector<8x16xf32> -> vector<8x16xf32>
    %272 = vector.extract_strided_slice %7 {offsets = [1, 0, 0], sizes = [1, 1, 16], strides = [1, 1, 1]} : vector<3x1x16xf32> to vector<1x1x16xf32>
    %273 = vector.shape_cast %272 : vector<1x1x16xf32> to vector<1x16xf32>
    %274 = vector.broadcast %273 : vector<1x16xf32> to vector<8x16xf32>
    %275 = arith.addf %271, %274 : vector<8x16xf32>
    %cst_109 = arith.constant 0.000000e+00 : f32
    %276 = vector.broadcast %cst_109 : f32 to vector<8x16xf32>
    %277 = arith.maximumf %275, %276 : vector<8x16xf32>
    %278 = arith.addf %265, %277 : vector<8x16xf32>
    %279 = vector.extract_strided_slice %0 {offsets = [2, 0, 0], sizes = [1, 8, 8], strides = [1, 1, 1]} : vector<3x8x8xf32> to vector<1x8x8xf32>
    %280 = vector.shape_cast %279 : vector<1x8x8xf32> to vector<8x8xf32>
    %cst_110 = arith.constant dense<0.000000e+00> : vector<8x2xf32>
    %281 = tpu.matmul %280, %253, %cst_110 {dimension_numbers = #tpu.dot_dimension_numbers<[1], [0], [0], [1], [0, 0, 1, 1], [], []>} : vector<8x8xf32>, vector<8x2xf32>, vector<8x2xf32> -> vector<8x2xf32>
    %282 = vector.extract_strided_slice %6 {offsets = [2, 0, 0], sizes = [1, 2, 16], strides = [1, 1, 1]} : vector<3x2x16xf32> to vector<1x2x16xf32>
    %283 = vector.shape_cast %282 : vector<1x2x16xf32> to vector<2x16xf32>
    %cst_111 = arith.constant dense<0.000000e+00> : vector<8x16xf32>
    %284 = tpu.matmul %281, %283, %cst_111 {dimension_numbers = #tpu.dot_dimension_numbers<[1], [0], [0], [1], [0, 0, 1, 1], [], []>} : vector<8x2xf32>, vector<2x16xf32>, vector<8x16xf32> -> vector<8x16xf32>
    %285 = vector.extract_strided_slice %7 {offsets = [2, 0, 0], sizes = [1, 1, 16], strides = [1, 1, 1]} : vector<3x1x16xf32> to vector<1x1x16xf32>
    %286 = vector.shape_cast %285 : vector<1x1x16xf32> to vector<1x16xf32>
    %287 = vector.broadcast %286 : vector<1x16xf32> to vector<8x16xf32>
    %288 = arith.addf %284, %287 : vector<8x16xf32>
    %cst_112 = arith.constant 0.000000e+00 : f32
    %289 = vector.broadcast %cst_112 : f32 to vector<8x16xf32>
    %290 = arith.maximumf %288, %289 : vector<8x16xf32>
    %291 = arith.addf %278, %290 : vector<8x16xf32>
    %cst_113 = arith.constant 0.000000e+00 : f32
    %292 = vector.broadcast %cst_113 : f32 to vector<8x8xf32>
    %cst_114 = arith.constant 0.000000e+00 : f32
    %293 = vector.broadcast %cst_114 : f32 to vector<8x8xf32>
    %294 = vector.extract_strided_slice %8 {offsets = [1, 0, 0], sizes = [1, 16, 8], strides = [1, 1, 1]} : vector<3x16x8xf32> to vector<1x16x8xf32>
    %295 = vector.shape_cast %294 : vector<1x16x8xf32> to vector<16x8xf32>
    %cst_115 = arith.constant dense<0.000000e+00> : vector<8x8xf32>
    %296 = tpu.matmul %291, %295, %cst_115 {dimension_numbers = #tpu.dot_dimension_numbers<[1], [0], [0], [1], [0, 0, 1, 1], [], []>} : vector<8x16xf32>, vector<16x8xf32>, vector<8x8xf32> -> vector<8x8xf32>
    %297 = arith.addf %292, %296 : vector<8x8xf32>
    %298 = vector.extract_strided_slice %9 {offsets = [1, 0, 0], sizes = [1, 16, 8], strides = [1, 1, 1]} : vector<3x16x8xf32> to vector<1x16x8xf32>
    %299 = vector.shape_cast %298 : vector<1x16x8xf32> to vector<16x8xf32>
    %cst_116 = arith.constant dense<0.000000e+00> : vector<8x8xf32>
    %300 = tpu.matmul %291, %299, %cst_116 {dimension_numbers = #tpu.dot_dimension_numbers<[1], [0], [0], [1], [0, 0, 1, 1], [], []>} : vector<8x16xf32>, vector<16x8xf32>, vector<8x8xf32> -> vector<8x8xf32>
    %301 = arith.addf %293, %300 : vector<8x8xf32>
    %302 = vector.broadcast %10 : vector<1x8xf32> to vector<8x8xf32>
    %303 = arith.addf %297, %302 : vector<8x8xf32>
    %304 = math.tanh %303 : vector<8x8xf32>
    %305 = vector.broadcast %11 : vector<1x8xf32> to vector<8x8xf32>
    %306 = arith.addf %301, %305 : vector<8x8xf32>
    %307 = arith.negf %306 : vector<8x8xf32>
    %308 = math.exp %307 : vector<8x8xf32>
    %cst_117 = arith.constant 1.000000e+00 : f32
    %309 = vector.broadcast %cst_117 : f32 to vector<8x8xf32>
    %310 = arith.addf %309, %308 : vector<8x8xf32>
    %311 = arith.divf %309, %310 : vector<8x8xf32>
    %312 = arith.mulf %304, %311 : vector<8x8xf32>
    %cst_118 = arith.constant dense<0.000000e+00> : vector<8x8xf32>
    %313 = tpu.matmul %214, %12, %cst_118 {dimension_numbers = #tpu.dot_dimension_numbers<[1], [0], [0], [1], [0, 0, 1, 1], [], []>} : vector<8x2xf32>, vector<2x8xf32>, vector<8x8xf32> -> vector<8x8xf32>
    %314 = vector.broadcast %13 : vector<1x8xf32> to vector<8x8xf32>
    %315 = arith.addf %313, %314 : vector<8x8xf32>
    %316 = arith.addf %315, %312 : vector<8x8xf32>
    %cst_119 = arith.constant 0.000000e+00 : f32
    %317 = vector.broadcast %cst_119 : f32 to vector<8x8xf32>
    %318 = arith.maximumf %316, %317 : vector<8x8xf32>
    %cst_120 = arith.constant dense<0.000000e+00> : vector<8xf32>
    %319 = vector.multi_reduction <add>, %318, %cst_120 [1] : vector<8x8xf32> to vector<8xf32>
    %320 = vector.shape_cast %319 : vector<8xf32> to vector<8x1xf32>
    %cst_121 = arith.constant 8.000000e+00 : f32
    %321 = vector.broadcast %cst_121 : f32 to vector<8x1xf32>
    %322 = arith.divf %320, %321 : vector<8x1xf32>
    %323 = vector.broadcast %322 : vector<8x1xf32> to vector<8x8xf32>
    %324 = arith.subf %318, %323 : vector<8x8xf32>
    %325 = arith.mulf %324, %324 : vector<8x8xf32>
    %cst_122 = arith.constant dense<0.000000e+00> : vector<8xf32>
    %326 = vector.multi_reduction <add>, %325, %cst_122 [1] : vector<8x8xf32> to vector<8xf32>
    %327 = vector.shape_cast %326 : vector<8xf32> to vector<8x1xf32>
    %cst_123 = arith.constant 8.000000e+00 : f32
    %328 = vector.broadcast %cst_123 : f32 to vector<8x1xf32>
    %329 = arith.divf %327, %328 : vector<8x1xf32>
    %330 = vector.broadcast %322 : vector<8x1xf32> to vector<8x8xf32>
    %331 = arith.subf %318, %330 : vector<8x8xf32>
    %cst_124 = arith.constant 9.99999974E-6 : f32
    %332 = vector.broadcast %cst_124 : f32 to vector<8x1xf32>
    %333 = arith.addf %329, %332 : vector<8x1xf32>
    %334 = math.rsqrt %333 : vector<8x1xf32>
    %335 = vector.broadcast %334 : vector<8x1xf32> to vector<8x8xf32>
    %336 = arith.mulf %331, %335 : vector<8x8xf32>
    %337 = vector.broadcast %14 : vector<1x8xf32> to vector<8x8xf32>
    %338 = arith.mulf %336, %337 : vector<8x8xf32>
    %339 = vector.broadcast %15 : vector<1x8xf32> to vector<8x8xf32>
    %340 = arith.addf %338, %339 : vector<8x8xf32>
    %c1_125 = arith.constant 1 : index
    %c0_126 = arith.constant 0 : index
    %c0_127 = arith.constant 0 : index
    %c0_128 = arith.constant 0 : index
    %341 = vector.load %arg18[%c1_125, %c0_126, %c0_127, %c0_128] : memref<2x3x8x8xf32, #tpu.memory_space<vmem>>, vector<1x1x8x8xf32>
    %342 = vector.shape_cast %341 : vector<1x1x8x8xf32> to vector<8x8xf32>
    %343 = vector.shape_cast %340 : vector<8x8xf32> to vector<1x1x8x8xf32>
    tpu.vector_store %arg18[%c1_125, %c0_126, %c0_127, %c0_128], %343 {strides = array<i32>} : memref<2x3x8x8xf32, #tpu.memory_space<vmem>>, vector<1x1x8x8xf32>,
    %cst_129 = arith.constant dense<0.000000e+00> : vector<8x8xf32>
    %344 = tpu.matmul %216, %12, %cst_129 {dimension_numbers = #tpu.dot_dimension_numbers<[1], [0], [0], [1], [0, 0, 1, 1], [], []>} : vector<8x2xf32>, vector<2x8xf32>, vector<8x8xf32> -> vector<8x8xf32>
    %345 = vector.broadcast %13 : vector<1x8xf32> to vector<8x8xf32>
    %346 = arith.addf %344, %345 : vector<8x8xf32>
    %347 = arith.addf %346, %312 : vector<8x8xf32>
    %cst_130 = arith.constant 0.000000e+00 : f32
    %348 = vector.broadcast %cst_130 : f32 to vector<8x8xf32>
    %349 = arith.maximumf %347, %348 : vector<8x8xf32>
    %cst_131 = arith.constant dense<0.000000e+00> : vector<8xf32>
    %350 = vector.multi_reduction <add>, %349, %cst_131 [1] : vector<8x8xf32> to vector<8xf32>
    %351 = vector.shape_cast %350 : vector<8xf32> to vector<8x1xf32>
    %cst_132 = arith.constant 8.000000e+00 : f32
    %352 = vector.broadcast %cst_132 : f32 to vector<8x1xf32>
    %353 = arith.divf %351, %352 : vector<8x1xf32>
    %354 = vector.broadcast %353 : vector<8x1xf32> to vector<8x8xf32>
    %355 = arith.subf %349, %354 : vector<8x8xf32>
    %356 = arith.mulf %355, %355 : vector<8x8xf32>
    %cst_133 = arith.constant dense<0.000000e+00> : vector<8xf32>
    %357 = vector.multi_reduction <add>, %356, %cst_133 [1] : vector<8x8xf32> to vector<8xf32>
    %358 = vector.shape_cast %357 : vector<8xf32> to vector<8x1xf32>
    %cst_134 = arith.constant 8.000000e+00 : f32
    %359 = vector.broadcast %cst_134 : f32 to vector<8x1xf32>
    %360 = arith.divf %358, %359 : vector<8x1xf32>
    %361 = vector.broadcast %353 : vector<8x1xf32> to vector<8x8xf32>
    %362 = arith.subf %349, %361 : vector<8x8xf32>
    %cst_135 = arith.constant 9.99999974E-6 : f32
    %363 = vector.broadcast %cst_135 : f32 to vector<8x1xf32>
    %364 = arith.addf %360, %363 : vector<8x1xf32>
    %365 = math.rsqrt %364 : vector<8x1xf32>
    %366 = vector.broadcast %365 : vector<8x1xf32> to vector<8x8xf32>
    %367 = arith.mulf %362, %366 : vector<8x8xf32>
    %368 = vector.broadcast %14 : vector<1x8xf32> to vector<8x8xf32>
    %369 = arith.mulf %367, %368 : vector<8x8xf32>
    %370 = vector.broadcast %15 : vector<1x8xf32> to vector<8x8xf32>
    %371 = arith.addf %369, %370 : vector<8x8xf32>
    %c1_136 = arith.constant 1 : index
    %c1_137 = arith.constant 1 : index
    %c0_138 = arith.constant 0 : index
    %c0_139 = arith.constant 0 : index
    %372 = vector.load %arg18[%c1_136, %c1_137, %c0_138, %c0_139] : memref<2x3x8x8xf32, #tpu.memory_space<vmem>>, vector<1x1x8x8xf32>
    %373 = vector.shape_cast %372 : vector<1x1x8x8xf32> to vector<8x8xf32>
    %374 = vector.shape_cast %371 : vector<8x8xf32> to vector<1x1x8x8xf32>
    tpu.vector_store %arg18[%c1_136, %c1_137, %c0_138, %c0_139], %374 {strides = array<i32>} : memref<2x3x8x8xf32, #tpu.memory_space<vmem>>, vector<1x1x8x8xf32>,
    %cst_140 = arith.constant dense<0.000000e+00> : vector<8x8xf32>
    %375 = tpu.matmul %218, %12, %cst_140 {dimension_numbers = #tpu.dot_dimension_numbers<[1], [0], [0], [1], [0, 0, 1, 1], [], []>} : vector<8x2xf32>, vector<2x8xf32>, vector<8x8xf32> -> vector<8x8xf32>
    %376 = vector.broadcast %13 : vector<1x8xf32> to vector<8x8xf32>
    %377 = arith.addf %375, %376 : vector<8x8xf32>
    %378 = arith.addf %377, %312 : vector<8x8xf32>
    %cst_141 = arith.constant 0.000000e+00 : f32
    %379 = vector.broadcast %cst_141 : f32 to vector<8x8xf32>
    %380 = arith.maximumf %378, %379 : vector<8x8xf32>
    %cst_142 = arith.constant dense<0.000000e+00> : vector<8xf32>
    %381 = vector.multi_reduction <add>, %380, %cst_142 [1] : vector<8x8xf32> to vector<8xf32>
    %382 = vector.shape_cast %381 : vector<8xf32> to vector<8x1xf32>
    %cst_143 = arith.constant 8.000000e+00 : f32
    %383 = vector.broadcast %cst_143 : f32 to vector<8x1xf32>
    %384 = arith.divf %382, %383 : vector<8x1xf32>
    %385 = vector.broadcast %384 : vector<8x1xf32> to vector<8x8xf32>
    %386 = arith.subf %380, %385 : vector<8x8xf32>
    %387 = arith.mulf %386, %386 : vector<8x8xf32>
    %cst_144 = arith.constant dense<0.000000e+00> : vector<8xf32>
    %388 = vector.multi_reduction <add>, %387, %cst_144 [1] : vector<8x8xf32> to vector<8xf32>
    %389 = vector.shape_cast %388 : vector<8xf32> to vector<8x1xf32>
    %cst_145 = arith.constant 8.000000e+00 : f32
    %390 = vector.broadcast %cst_145 : f32 to vector<8x1xf32>
    %391 = arith.divf %389, %390 : vector<8x1xf32>
    %392 = vector.broadcast %384 : vector<8x1xf32> to vector<8x8xf32>
    %393 = arith.subf %380, %392 : vector<8x8xf32>
    %cst_146 = arith.constant 9.99999974E-6 : f32
    %394 = vector.broadcast %cst_146 : f32 to vector<8x1xf32>
    %395 = arith.addf %391, %394 : vector<8x1xf32>
    %396 = math.rsqrt %395 : vector<8x1xf32>
    %397 = vector.broadcast %396 : vector<8x1xf32> to vector<8x8xf32>
    %398 = arith.mulf %393, %397 : vector<8x8xf32>
    %399 = vector.broadcast %14 : vector<1x8xf32> to vector<8x8xf32>
    %400 = arith.mulf %398, %399 : vector<8x8xf32>
    %401 = vector.broadcast %15 : vector<1x8xf32> to vector<8x8xf32>
    %402 = arith.addf %400, %401 : vector<8x8xf32>
    %c1_147 = arith.constant 1 : index
    %c2_148 = arith.constant 2 : index
    %c0_149 = arith.constant 0 : index
    %c0_150 = arith.constant 0 : index
    %403 = vector.load %arg18[%c1_147, %c2_148, %c0_149, %c0_150] : memref<2x3x8x8xf32, #tpu.memory_space<vmem>>, vector<1x1x8x8xf32>
    %404 = vector.shape_cast %403 : vector<1x1x8x8xf32> to vector<8x8xf32>
    %405 = vector.shape_cast %402 : vector<8x8xf32> to vector<1x1x8x8xf32>
    tpu.vector_store %arg18[%c1_147, %c2_148, %c0_149, %c0_150], %405 {strides = array<i32>} : memref<2x3x8x8xf32, #tpu.memory_space<vmem>>, vector<1x1x8x8xf32>,
    return
  }
  func.func @transform_0(%arg0: i32) -> (i32, i32, i32, i32) {
    %c0_i32 = arith.constant 0 : i32
    %c0_i32_0 = arith.constant 0 : i32
    %c0_i32_1 = arith.constant 0 : i32
    %c0_i32_2 = arith.constant 0 : i32
    %c0_i32_3 = arith.constant 0 : i32
    return %c0_i32, %c0_i32_0, %c0_i32_1, %c0_i32_2 : i32, i32, i32, i32
  }
  func.func @transform_1(%arg0: i32) -> (i32, i32, i32) {
    %c0_i32 = arith.constant 0 : i32
    %c0_i32_0 = arith.constant 0 : i32
    %c0_i32_1 = arith.constant 0 : i32
    %c0_i32_2 = arith.constant 0 : i32
    return %c0_i32, %c0_i32_0, %c0_i32_1 : i32, i32, i32
  }
  func.func @transform_2(%arg0: i32) -> (i32, i32) {
    %c0_i32 = arith.constant 0 : i32
    %c0_i32_0 = arith.constant 0 : i32
    %c0_i32_1 = arith.constant 0 : i32
    return %c0_i32, %c0_i32_0 : i32, i32
  }
  func.func @transform_3(%arg0: i32) -> (i32, i32) {
    %c0_i32 = arith.constant 0 : i32
    %c0_i32_0 = arith.constant 0 : i32
    %c0_i32_1 = arith.constant 0 : i32
    return %c0_i32, %c0_i32_0 : i32, i32
  }
  func.func @transform_4(%arg0: i32) -> (i32, i32) {
    %c0_i32 = arith.constant 0 : i32
    %c0_i32_0 = arith.constant 0 : i32
    %c0_i32_1 = arith.constant 0 : i32
    return %c0_i32, %c0_i32_0 : i32, i32
  }
  func.func @transform_5(%arg0: i32) -> (i32, i32) {
    %c0_i32 = arith.constant 0 : i32
    %c0_i32_0 = arith.constant 0 : i32
    %c0_i32_1 = arith.constant 0 : i32
    return %c0_i32, %c0_i32_0 : i32, i32
  }
  func.func @transform_6(%arg0: i32) -> (i32, i32) {
    %c0_i32 = arith.constant 0 : i32
    %c0_i32_0 = arith.constant 0 : i32
    %c0_i32_1 = arith.constant 0 : i32
    return %c0_i32, %c0_i32_0 : i32, i32
  }
  func.func @transform_7(%arg0: i32) -> (i32, i32, i32) {
    %c0_i32 = arith.constant 0 : i32
    %c0_i32_0 = arith.constant 0 : i32
    %c0_i32_1 = arith.constant 0 : i32
    %c0_i32_2 = arith.constant 0 : i32
    return %c0_i32, %c0_i32_0, %c0_i32_1 : i32, i32, i32
  }
  func.func @transform_8(%arg0: i32) -> (i32, i32, i32) {
    %c0_i32 = arith.constant 0 : i32
    %c0_i32_0 = arith.constant 0 : i32
    %c0_i32_1 = arith.constant 0 : i32
    %c0_i32_2 = arith.constant 0 : i32
    return %c0_i32, %c0_i32_0, %c0_i32_1 : i32, i32, i32
  }
  func.func @transform_9(%arg0: i32) -> (i32, i32, i32) {
    %c0_i32 = arith.constant 0 : i32
    %c0_i32_0 = arith.constant 0 : i32
    %c0_i32_1 = arith.constant 0 : i32
    %c0_i32_2 = arith.constant 0 : i32
    return %c0_i32, %c0_i32_0, %c0_i32_1 : i32, i32, i32
  }
  func.func @transform_10(%arg0: i32) -> (i32, i32, i32) {
    %c0_i32 = arith.constant 0 : i32
    %c0_i32_0 = arith.constant 0 : i32
    %c0_i32_1 = arith.constant 0 : i32
    %c0_i32_2 = arith.constant 0 : i32
    return %c0_i32, %c0_i32_0, %c0_i32_1 : i32, i32, i32
  }
  func.func @transform_11(%arg0: i32) -> (i32, i32) {
    %c0_i32 = arith.constant 0 : i32
    %c0_i32_0 = arith.constant 0 : i32
    %c0_i32_1 = arith.constant 0 : i32
    return %c0_i32, %c0_i32_0 : i32, i32
  }
  func.func @transform_12(%arg0: i32) -> (i32, i32) {
    %c0_i32 = arith.constant 0 : i32
    %c0_i32_0 = arith.constant 0 : i32
    %c0_i32_1 = arith.constant 0 : i32
    return %c0_i32, %c0_i32_0 : i32, i32
  }
  func.func @transform_13(%arg0: i32) -> (i32, i32) {
    %c0_i32 = arith.constant 0 : i32
    %c0_i32_0 = arith.constant 0 : i32
    %c0_i32_1 = arith.constant 0 : i32
    return %c0_i32, %c0_i32_0 : i32, i32
  }
  func.func @transform_14(%arg0: i32) -> (i32, i32) {
    %c0_i32 = arith.constant 0 : i32
    %c0_i32_0 = arith.constant 0 : i32
    %c0_i32_1 = arith.constant 0 : i32
    return %c0_i32, %c0_i32_0 : i32, i32
  }
  func.func @transform_15(%arg0: i32) -> (i32, i32) {
    %c0_i32 = arith.constant 0 : i32
    %c0_i32_0 = arith.constant 0 : i32
    %c0_i32_1 = arith.constant 0 : i32
    return %c0_i32, %c0_i32_0 : i32, i32
  }
  func.func @transform_16(%arg0: i32) -> (i32, i32) {
    %c0_i32 = arith.constant 0 : i32
    %c0_i32_0 = arith.constant 0 : i32
    %c0_i32_1 = arith.constant 0 : i32
    return %c0_i32, %c0_i32_0 : i32, i32
  }
  func.func @transform_17(%arg0: i32) -> (i32, i32, i32, i32) {
    %c0_i32 = arith.constant 0 : i32
    %c0_i32_0 = arith.constant 0 : i32
    %c0_i32_1 = arith.constant 0 : i32
    %c0_i32_2 = arith.constant 0 : i32
    %c0_i32_3 = arith.constant 0 : i32
    return %c0_i32, %c0_i32_0, %c0_i32_1, %c0_i32_2 : i32, i32, i32, i32
  }
}

module attributes {stable_mosaic.version = 11 : i64} {
  func.func @_sta_block_kernel(%arg0: i32, %arg1: memref<2x3x8x8xf32, #tpu.memory_space<vmem>>, %arg2: memref<3x8x8xf32, #tpu.memory_space<vmem>>, %arg3: memref<8x1xf32, #tpu.memory_space<vmem>>, %arg4: memref<8x8xf32, #tpu.memory_space<vmem>>, %arg5: memref<8x1xf32, #tpu.memory_space<vmem>>, %arg6: memref<3x3xf32, #tpu.memory_space<vmem>>, %arg7: memref<3x3xf32, #tpu.memory_space<vmem>>, %arg8: memref<3x8x16xf32, #tpu.memory_space<vmem>>, %arg9: memref<3x1x16xf32, #tpu.memory_space<vmem>>, %arg10: memref<3x16x8xf32, #tpu.memory_space<vmem>>, %arg11: memref<3x16x8xf32, #tpu.memory_space<vmem>>, %arg12: memref<1x8xf32, #tpu.memory_space<vmem>>, %arg13: memref<1x8xf32, #tpu.memory_space<vmem>>, %arg14: memref<8x8xf32, #tpu.memory_space<vmem>>, %arg15: memref<1x8xf32, #tpu.memory_space<vmem>>, %arg16: memref<1x8xf32, #tpu.memory_space<vmem>>, %arg17: memref<1x8xf32, #tpu.memory_space<vmem>>, %arg18: memref<2x3x8x8xf32, #tpu.memory_space<vmem>>) attributes {dimension_semantics = [#tpu.dimension_semantics<arbitrary>], iteration_bounds = array<i64: 1>, scalar_prefetch = 0 : i64, scratch_operands = 0 : i64, tpu.core_type = #tpu.core_type<tc>, window_params = [{pipeline_mode = #tpu.pipeline_mode<synchronous>, transform_indices = @transform_0, window_bounds = array<i64: 2, 3, 8, 8>}, {pipeline_mode = #tpu.pipeline_mode<synchronous>, transform_indices = @transform_1, window_bounds = array<i64: 3, 8, 8>}, {pipeline_mode = #tpu.pipeline_mode<synchronous>, transform_indices = @transform_2, window_bounds = array<i64: 8, 1>}, {pipeline_mode = #tpu.pipeline_mode<synchronous>, transform_indices = @transform_3, window_bounds = array<i64: 8, 8>}, {pipeline_mode = #tpu.pipeline_mode<synchronous>, transform_indices = @transform_4, window_bounds = array<i64: 8, 1>}, {pipeline_mode = #tpu.pipeline_mode<synchronous>, transform_indices = @transform_5, window_bounds = array<i64: 3, 3>}, {pipeline_mode = #tpu.pipeline_mode<synchronous>, transform_indices = @transform_6, window_bounds = array<i64: 3, 3>}, {pipeline_mode = #tpu.pipeline_mode<synchronous>, transform_indices = @transform_7, window_bounds = array<i64: 3, 8, 16>}, {pipeline_mode = #tpu.pipeline_mode<synchronous>, transform_indices = @transform_8, window_bounds = array<i64: 3, 1, 16>}, {pipeline_mode = #tpu.pipeline_mode<synchronous>, transform_indices = @transform_9, window_bounds = array<i64: 3, 16, 8>}, {pipeline_mode = #tpu.pipeline_mode<synchronous>, transform_indices = @transform_10, window_bounds = array<i64: 3, 16, 8>}, {pipeline_mode = #tpu.pipeline_mode<synchronous>, transform_indices = @transform_11, window_bounds = array<i64: 1, 8>}, {pipeline_mode = #tpu.pipeline_mode<synchronous>, transform_indices = @transform_12, window_bounds = array<i64: 1, 8>}, {pipeline_mode = #tpu.pipeline_mode<synchronous>, transform_indices = @transform_13, window_bounds = array<i64: 8, 8>}, {pipeline_mode = #tpu.pipeline_mode<synchronous>, transform_indices = @transform_14, window_bounds = array<i64: 1, 8>}, {pipeline_mode = #tpu.pipeline_mode<synchronous>, transform_indices = @transform_15, window_bounds = array<i64: 1, 8>}, {pipeline_mode = #tpu.pipeline_mode<synchronous>, transform_indices = @transform_16, window_bounds = array<i64: 1, 8>}, {pipeline_mode = #tpu.pipeline_mode<synchronous>, transform_indices = @transform_17, window_bounds = array<i64: 2, 3, 8, 8>}]} {
    %c0 = arith.constant 0 : index
    %c0_0 = arith.constant 0 : index
    %c0_1 = arith.constant 0 : index
    %0 = vector.load %arg2[%c0, %c0_0, %c0_1] : memref<3x8x8xf32, #tpu.memory_space<vmem>>, vector<3x8x8xf32>
    %c0_2 = arith.constant 0 : index
    %c0_3 = arith.constant 0 : index
    %1 = vector.load %arg3[%c0_2, %c0_3] : memref<8x1xf32, #tpu.memory_space<vmem>>, vector<8x1xf32>
    %c0_4 = arith.constant 0 : index
    %c0_5 = arith.constant 0 : index
    %2 = vector.load %arg4[%c0_4, %c0_5] : memref<8x8xf32, #tpu.memory_space<vmem>>, vector<8x8xf32>
    %c0_6 = arith.constant 0 : index
    %c0_7 = arith.constant 0 : index
    %3 = vector.load %arg5[%c0_6, %c0_7] : memref<8x1xf32, #tpu.memory_space<vmem>>, vector<8x1xf32>
    %c0_8 = arith.constant 0 : index
    %c0_9 = arith.constant 0 : index
    %4 = vector.load %arg6[%c0_8, %c0_9] : memref<3x3xf32, #tpu.memory_space<vmem>>, vector<3x3xf32>
    %c0_10 = arith.constant 0 : index
    %c0_11 = arith.constant 0 : index
    %5 = vector.load %arg7[%c0_10, %c0_11] : memref<3x3xf32, #tpu.memory_space<vmem>>, vector<3x3xf32>
    %c0_12 = arith.constant 0 : index
    %c0_13 = arith.constant 0 : index
    %c0_14 = arith.constant 0 : index
    %6 = vector.load %arg8[%c0_12, %c0_13, %c0_14] : memref<3x8x16xf32, #tpu.memory_space<vmem>>, vector<3x8x16xf32>
    %c0_15 = arith.constant 0 : index
    %c0_16 = arith.constant 0 : index
    %c0_17 = arith.constant 0 : index
    %7 = vector.load %arg9[%c0_15, %c0_16, %c0_17] : memref<3x1x16xf32, #tpu.memory_space<vmem>>, vector<3x1x16xf32>
    %c0_18 = arith.constant 0 : index
    %c0_19 = arith.constant 0 : index
    %c0_20 = arith.constant 0 : index
    %8 = vector.load %arg10[%c0_18, %c0_19, %c0_20] : memref<3x16x8xf32, #tpu.memory_space<vmem>>, vector<3x16x8xf32>
    %c0_21 = arith.constant 0 : index
    %c0_22 = arith.constant 0 : index
    %c0_23 = arith.constant 0 : index
    %9 = vector.load %arg11[%c0_21, %c0_22, %c0_23] : memref<3x16x8xf32, #tpu.memory_space<vmem>>, vector<3x16x8xf32>
    %c0_24 = arith.constant 0 : index
    %c0_25 = arith.constant 0 : index
    %10 = vector.load %arg12[%c0_24, %c0_25] : memref<1x8xf32, #tpu.memory_space<vmem>>, vector<1x8xf32>
    %c0_26 = arith.constant 0 : index
    %c0_27 = arith.constant 0 : index
    %11 = vector.load %arg13[%c0_26, %c0_27] : memref<1x8xf32, #tpu.memory_space<vmem>>, vector<1x8xf32>
    %c0_28 = arith.constant 0 : index
    %c0_29 = arith.constant 0 : index
    %12 = vector.load %arg14[%c0_28, %c0_29] : memref<8x8xf32, #tpu.memory_space<vmem>>, vector<8x8xf32>
    %c0_30 = arith.constant 0 : index
    %c0_31 = arith.constant 0 : index
    %13 = vector.load %arg15[%c0_30, %c0_31] : memref<1x8xf32, #tpu.memory_space<vmem>>, vector<1x8xf32>
    %c0_32 = arith.constant 0 : index
    %c0_33 = arith.constant 0 : index
    %14 = vector.load %arg16[%c0_32, %c0_33] : memref<1x8xf32, #tpu.memory_space<vmem>>, vector<1x8xf32>
    %c0_34 = arith.constant 0 : index
    %c0_35 = arith.constant 0 : index
    %15 = vector.load %arg17[%c0_34, %c0_35] : memref<1x8xf32, #tpu.memory_space<vmem>>, vector<1x8xf32>
    %c0_36 = arith.constant 0 : index
    %c0_37 = arith.constant 0 : index
    %c0_38 = arith.constant 0 : index
    %c0_39 = arith.constant 0 : index
    %16 = vector.load %arg1[%c0_36, %c0_37, %c0_38, %c0_39] : memref<2x3x8x8xf32, #tpu.memory_space<vmem>>, vector<1x3x8x8xf32>
    %17 = vector.shape_cast %16 : vector<1x3x8x8xf32> to vector<3x8x8xf32>
    %18 = vector.extract_strided_slice %17 {offsets = [0, 0, 0], sizes = [1, 8, 8], strides = [1, 1, 1]} : vector<3x8x8xf32> to vector<1x8x8xf32>
    %19 = vector.shape_cast %18 : vector<1x8x8xf32> to vector<8x8xf32>
    %20 = vector.extract_strided_slice %17 {offsets = [1, 0, 0], sizes = [1, 8, 8], strides = [1, 1, 1]} : vector<3x8x8xf32> to vector<1x8x8xf32>
    %21 = vector.shape_cast %20 : vector<1x8x8xf32> to vector<8x8xf32>
    %22 = vector.extract_strided_slice %17 {offsets = [2, 0, 0], sizes = [1, 8, 8], strides = [1, 1, 1]} : vector<3x8x8xf32> to vector<1x8x8xf32>
    %23 = vector.shape_cast %22 : vector<1x8x8xf32> to vector<8x8xf32>
    %24 = vector.shape_cast %1 : vector<8x1xf32> to vector<1x8x1xf32>
    %25 = vector.broadcast %24 : vector<1x8x1xf32> to vector<3x8x8xf32>
    %26 = arith.mulf %17, %25 : vector<3x8x8xf32>
    %cst = arith.constant dense<0.000000e+00> : vector<3x8xf32>
    %27 = vector.multi_reduction <add>, %26, %cst [1] : vector<3x8x8xf32> to vector<3x8xf32>
    %cst_40 = arith.constant dense<0.000000e+00> : vector<3x8xf32>
    %28 = tpu.matmul %27, %2, %cst_40 {dimension_numbers = #tpu.dot_dimension_numbers<[1], [0], [0], [1], [0, 0, 1, 1], [], []>} : vector<3x8xf32>, vector<8x8xf32>, vector<3x8xf32> -> vector<3x8xf32>
    %cst_41 = arith.constant dense<0.000000e+00> : vector<8x1xf32>
    %29 = tpu.matmul %21, %3, %cst_41 {dimension_numbers = #tpu.dot_dimension_numbers<[1], [0], [0], [1], [0, 0, 1, 1], [], []>} : vector<8x8xf32>, vector<8x1xf32>, vector<8x1xf32> -> vector<8x1xf32>
    %cst_42 = arith.constant dense<0.000000e+00> : vector<3x1xf32>
    %30 = tpu.matmul %28, %29, %cst_42 {dimension_numbers = #tpu.dot_dimension_numbers<[1], [0], [0], [1], [0, 0, 1, 1], [], []>} : vector<3x8xf32>, vector<8x1xf32>, vector<3x1xf32> -> vector<3x1xf32>
    %31 = vector.extract_strided_slice %4 {offsets = [0, 1], sizes = [3, 1], strides = [1, 1]} : vector<3x3xf32> to vector<3x1xf32>
    %32 = arith.addf %30, %31 : vector<3x1xf32>
    %33 = arith.negf %32 : vector<3x1xf32>
    %34 = math.exp %33 : vector<3x1xf32>
    %cst_43 = arith.constant 1.000000e+00 : f32
    %35 = vector.broadcast %cst_43 : f32 to vector<3x1xf32>
    %36 = arith.addf %35, %34 : vector<3x1xf32>
    %37 = arith.divf %35, %36 : vector<3x1xf32>
    %cst_44 = arith.constant dense<0.000000e+00> : vector<3x1xf32>
    %38 = tpu.matmul %5, %37, %cst_44 {dimension_numbers = #tpu.dot_dimension_numbers<[1], [0], [0], [1], [0, 0, 1, 1], [], []>} : vector<3x3xf32>, vector<3x1xf32>, vector<3x1xf32> -> vector<3x1xf32>
    %cst_45 = arith.constant dense<0xFF800000> : vector<1xf32>
    %39 = vector.multi_reduction <maximumf>, %38, %cst_45 [0] : vector<3x1xf32> to vector<1xf32>
    %40 = vector.shape_cast %39 : vector<1xf32> to vector<1x1xf32>
    %41 = vector.broadcast %40 : vector<1x1xf32> to vector<3x1xf32>
    %42 = arith.subf %38, %41 : vector<3x1xf32>
    %43 = math.exp %42 : vector<3x1xf32>
    %cst_46 = arith.constant dense<0.000000e+00> : vector<1xf32>
    %44 = vector.multi_reduction <add>, %43, %cst_46 [0] : vector<3x1xf32> to vector<1xf32>
    %45 = vector.shape_cast %44 : vector<1xf32> to vector<1x1xf32>
    %46 = vector.broadcast %45 : vector<1x1xf32> to vector<3x1xf32>
    %47 = arith.divf %43, %46 : vector<3x1xf32>
    %48 = vector.extract_strided_slice %47 {offsets = [0, 0], sizes = [1, 1], strides = [1, 1]} : vector<3x1xf32> to vector<1x1xf32>
    %49 = vector.broadcast %48 : vector<1x1xf32> to vector<8x8xf32>
    %50 = arith.mulf %19, %49 : vector<8x8xf32>
    %51 = vector.extract_strided_slice %47 {offsets = [1, 0], sizes = [1, 1], strides = [1, 1]} : vector<3x1xf32> to vector<1x1xf32>
    %52 = vector.broadcast %51 : vector<1x1xf32> to vector<8x8xf32>
    %53 = arith.mulf %21, %52 : vector<8x8xf32>
    %54 = arith.addf %50, %53 : vector<8x8xf32>
    %55 = vector.extract_strided_slice %47 {offsets = [2, 0], sizes = [1, 1], strides = [1, 1]} : vector<3x1xf32> to vector<1x1xf32>
    %56 = vector.broadcast %55 : vector<1x1xf32> to vector<8x8xf32>
    %57 = arith.mulf %23, %56 : vector<8x8xf32>
    %58 = arith.addf %54, %57 : vector<8x8xf32>
    %59 = vector.extract_strided_slice %0 {offsets = [0, 0, 0], sizes = [1, 8, 8], strides = [1, 1, 1]} : vector<3x8x8xf32> to vector<1x8x8xf32>
    %60 = vector.shape_cast %59 : vector<1x8x8xf32> to vector<8x8xf32>
    %cst_47 = arith.constant dense<0.000000e+00> : vector<8x8xf32>
    %61 = tpu.matmul %60, %58, %cst_47 {dimension_numbers = #tpu.dot_dimension_numbers<[1], [0], [0], [1], [0, 0, 1, 1], [], []>} : vector<8x8xf32>, vector<8x8xf32>, vector<8x8xf32> -> vector<8x8xf32>
    %62 = vector.extract_strided_slice %6 {offsets = [0, 0, 0], sizes = [1, 8, 16], strides = [1, 1, 1]} : vector<3x8x16xf32> to vector<1x8x16xf32>
    %63 = vector.shape_cast %62 : vector<1x8x16xf32> to vector<8x16xf32>
    %cst_48 = arith.constant dense<0.000000e+00> : vector<8x16xf32>
    %64 = tpu.matmul %61, %63, %cst_48 {dimension_numbers = #tpu.dot_dimension_numbers<[1], [0], [0], [1], [0, 0, 1, 1], [], []>} : vector<8x8xf32>, vector<8x16xf32>, vector<8x16xf32> -> vector<8x16xf32>
    %65 = vector.extract_strided_slice %7 {offsets = [0, 0, 0], sizes = [1, 1, 16], strides = [1, 1, 1]} : vector<3x1x16xf32> to vector<1x1x16xf32>
    %66 = vector.shape_cast %65 : vector<1x1x16xf32> to vector<1x16xf32>
    %67 = vector.broadcast %66 : vector<1x16xf32> to vector<8x16xf32>
    %68 = arith.addf %64, %67 : vector<8x16xf32>
    %cst_49 = arith.constant 0.000000e+00 : f32
    %69 = vector.broadcast %cst_49 : f32 to vector<8x16xf32>
    %70 = arith.maximumf %68, %69 : vector<8x16xf32>
    %71 = vector.extract_strided_slice %0 {offsets = [1, 0, 0], sizes = [1, 8, 8], strides = [1, 1, 1]} : vector<3x8x8xf32> to vector<1x8x8xf32>
    %72 = vector.shape_cast %71 : vector<1x8x8xf32> to vector<8x8xf32>
    %cst_50 = arith.constant dense<0.000000e+00> : vector<8x8xf32>
    %73 = tpu.matmul %72, %58, %cst_50 {dimension_numbers = #tpu.dot_dimension_numbers<[1], [0], [0], [1], [0, 0, 1, 1], [], []>} : vector<8x8xf32>, vector<8x8xf32>, vector<8x8xf32> -> vector<8x8xf32>
    %74 = vector.extract_strided_slice %6 {offsets = [1, 0, 0], sizes = [1, 8, 16], strides = [1, 1, 1]} : vector<3x8x16xf32> to vector<1x8x16xf32>
    %75 = vector.shape_cast %74 : vector<1x8x16xf32> to vector<8x16xf32>
    %cst_51 = arith.constant dense<0.000000e+00> : vector<8x16xf32>
    %76 = tpu.matmul %73, %75, %cst_51 {dimension_numbers = #tpu.dot_dimension_numbers<[1], [0], [0], [1], [0, 0, 1, 1], [], []>} : vector<8x8xf32>, vector<8x16xf32>, vector<8x16xf32> -> vector<8x16xf32>
    %77 = vector.extract_strided_slice %7 {offsets = [1, 0, 0], sizes = [1, 1, 16], strides = [1, 1, 1]} : vector<3x1x16xf32> to vector<1x1x16xf32>
    %78 = vector.shape_cast %77 : vector<1x1x16xf32> to vector<1x16xf32>
    %79 = vector.broadcast %78 : vector<1x16xf32> to vector<8x16xf32>
    %80 = arith.addf %76, %79 : vector<8x16xf32>
    %cst_52 = arith.constant 0.000000e+00 : f32
    %81 = vector.broadcast %cst_52 : f32 to vector<8x16xf32>
    %82 = arith.maximumf %80, %81 : vector<8x16xf32>
    %83 = arith.addf %70, %82 : vector<8x16xf32>
    %84 = vector.extract_strided_slice %0 {offsets = [2, 0, 0], sizes = [1, 8, 8], strides = [1, 1, 1]} : vector<3x8x8xf32> to vector<1x8x8xf32>
    %85 = vector.shape_cast %84 : vector<1x8x8xf32> to vector<8x8xf32>
    %cst_53 = arith.constant dense<0.000000e+00> : vector<8x8xf32>
    %86 = tpu.matmul %85, %58, %cst_53 {dimension_numbers = #tpu.dot_dimension_numbers<[1], [0], [0], [1], [0, 0, 1, 1], [], []>} : vector<8x8xf32>, vector<8x8xf32>, vector<8x8xf32> -> vector<8x8xf32>
    %87 = vector.extract_strided_slice %6 {offsets = [2, 0, 0], sizes = [1, 8, 16], strides = [1, 1, 1]} : vector<3x8x16xf32> to vector<1x8x16xf32>
    %88 = vector.shape_cast %87 : vector<1x8x16xf32> to vector<8x16xf32>
    %cst_54 = arith.constant dense<0.000000e+00> : vector<8x16xf32>
    %89 = tpu.matmul %86, %88, %cst_54 {dimension_numbers = #tpu.dot_dimension_numbers<[1], [0], [0], [1], [0, 0, 1, 1], [], []>} : vector<8x8xf32>, vector<8x16xf32>, vector<8x16xf32> -> vector<8x16xf32>
    %90 = vector.extract_strided_slice %7 {offsets = [2, 0, 0], sizes = [1, 1, 16], strides = [1, 1, 1]} : vector<3x1x16xf32> to vector<1x1x16xf32>
    %91 = vector.shape_cast %90 : vector<1x1x16xf32> to vector<1x16xf32>
    %92 = vector.broadcast %91 : vector<1x16xf32> to vector<8x16xf32>
    %93 = arith.addf %89, %92 : vector<8x16xf32>
    %cst_55 = arith.constant 0.000000e+00 : f32
    %94 = vector.broadcast %cst_55 : f32 to vector<8x16xf32>
    %95 = arith.maximumf %93, %94 : vector<8x16xf32>
    %96 = arith.addf %83, %95 : vector<8x16xf32>
    %cst_56 = arith.constant 0.000000e+00 : f32
    %97 = vector.broadcast %cst_56 : f32 to vector<8x8xf32>
    %cst_57 = arith.constant 0.000000e+00 : f32
    %98 = vector.broadcast %cst_57 : f32 to vector<8x8xf32>
    %99 = vector.extract_strided_slice %8 {offsets = [1, 0, 0], sizes = [1, 16, 8], strides = [1, 1, 1]} : vector<3x16x8xf32> to vector<1x16x8xf32>
    %100 = vector.shape_cast %99 : vector<1x16x8xf32> to vector<16x8xf32>
    %cst_58 = arith.constant dense<0.000000e+00> : vector<8x8xf32>
    %101 = tpu.matmul %96, %100, %cst_58 {dimension_numbers = #tpu.dot_dimension_numbers<[1], [0], [0], [1], [0, 0, 1, 1], [], []>} : vector<8x16xf32>, vector<16x8xf32>, vector<8x8xf32> -> vector<8x8xf32>
    %102 = arith.addf %97, %101 : vector<8x8xf32>
    %103 = vector.extract_strided_slice %9 {offsets = [1, 0, 0], sizes = [1, 16, 8], strides = [1, 1, 1]} : vector<3x16x8xf32> to vector<1x16x8xf32>
    %104 = vector.shape_cast %103 : vector<1x16x8xf32> to vector<16x8xf32>
    %cst_59 = arith.constant dense<0.000000e+00> : vector<8x8xf32>
    %105 = tpu.matmul %96, %104, %cst_59 {dimension_numbers = #tpu.dot_dimension_numbers<[1], [0], [0], [1], [0, 0, 1, 1], [], []>} : vector<8x16xf32>, vector<16x8xf32>, vector<8x8xf32> -> vector<8x8xf32>
    %106 = arith.addf %98, %105 : vector<8x8xf32>
    %107 = vector.broadcast %10 : vector<1x8xf32> to vector<8x8xf32>
    %108 = arith.addf %102, %107 : vector<8x8xf32>
    %109 = math.tanh %108 : vector<8x8xf32>
    %110 = vector.broadcast %11 : vector<1x8xf32> to vector<8x8xf32>
    %111 = arith.addf %106, %110 : vector<8x8xf32>
    %112 = arith.negf %111 : vector<8x8xf32>
    %113 = math.exp %112 : vector<8x8xf32>
    %cst_60 = arith.constant 1.000000e+00 : f32
    %114 = vector.broadcast %cst_60 : f32 to vector<8x8xf32>
    %115 = arith.addf %114, %113 : vector<8x8xf32>
    %116 = arith.divf %114, %115 : vector<8x8xf32>
    %117 = arith.mulf %109, %116 : vector<8x8xf32>
    %cst_61 = arith.constant dense<0.000000e+00> : vector<8x8xf32>
    %118 = tpu.matmul %19, %12, %cst_61 {dimension_numbers = #tpu.dot_dimension_numbers<[1], [0], [0], [1], [0, 0, 1, 1], [], []>} : vector<8x8xf32>, vector<8x8xf32>, vector<8x8xf32> -> vector<8x8xf32>
    %119 = vector.broadcast %13 : vector<1x8xf32> to vector<8x8xf32>
    %120 = arith.addf %118, %119 : vector<8x8xf32>
    %121 = arith.addf %120, %117 : vector<8x8xf32>
    %cst_62 = arith.constant 0.000000e+00 : f32
    %122 = vector.broadcast %cst_62 : f32 to vector<8x8xf32>
    %123 = arith.maximumf %121, %122 : vector<8x8xf32>
    %cst_63 = arith.constant dense<0.000000e+00> : vector<8xf32>
    %124 = vector.multi_reduction <add>, %123, %cst_63 [1] : vector<8x8xf32> to vector<8xf32>
    %125 = vector.shape_cast %124 : vector<8xf32> to vector<8x1xf32>
    %cst_64 = arith.constant 8.000000e+00 : f32
    %126 = vector.broadcast %cst_64 : f32 to vector<8x1xf32>
    %127 = arith.divf %125, %126 : vector<8x1xf32>
    %128 = vector.broadcast %127 : vector<8x1xf32> to vector<8x8xf32>
    %129 = arith.subf %123, %128 : vector<8x8xf32>
    %130 = arith.mulf %129, %129 : vector<8x8xf32>
    %cst_65 = arith.constant dense<0.000000e+00> : vector<8xf32>
    %131 = vector.multi_reduction <add>, %130, %cst_65 [1] : vector<8x8xf32> to vector<8xf32>
    %132 = vector.shape_cast %131 : vector<8xf32> to vector<8x1xf32>
    %cst_66 = arith.constant 8.000000e+00 : f32
    %133 = vector.broadcast %cst_66 : f32 to vector<8x1xf32>
    %134 = arith.divf %132, %133 : vector<8x1xf32>
    %135 = vector.broadcast %127 : vector<8x1xf32> to vector<8x8xf32>
    %136 = arith.subf %123, %135 : vector<8x8xf32>
    %cst_67 = arith.constant 9.99999974E-6 : f32
    %137 = vector.broadcast %cst_67 : f32 to vector<8x1xf32>
    %138 = arith.addf %134, %137 : vector<8x1xf32>
    %139 = math.rsqrt %138 : vector<8x1xf32>
    %140 = vector.broadcast %139 : vector<8x1xf32> to vector<8x8xf32>
    %141 = arith.mulf %136, %140 : vector<8x8xf32>
    %142 = vector.broadcast %14 : vector<1x8xf32> to vector<8x8xf32>
    %143 = arith.mulf %141, %142 : vector<8x8xf32>
    %144 = vector.broadcast %15 : vector<1x8xf32> to vector<8x8xf32>
    %145 = arith.addf %143, %144 : vector<8x8xf32>
    %c0_68 = arith.constant 0 : index
    %c0_69 = arith.constant 0 : index
    %c0_70 = arith.constant 0 : index
    %c0_71 = arith.constant 0 : index
    %146 = vector.load %arg18[%c0_68, %c0_69, %c0_70, %c0_71] : memref<2x3x8x8xf32, #tpu.memory_space<vmem>>, vector<1x1x8x8xf32>
    %147 = vector.shape_cast %146 : vector<1x1x8x8xf32> to vector<8x8xf32>
    %148 = vector.shape_cast %145 : vector<8x8xf32> to vector<1x1x8x8xf32>
    tpu.vector_store %arg18[%c0_68, %c0_69, %c0_70, %c0_71], %148 {strides = array<i32>} : memref<2x3x8x8xf32, #tpu.memory_space<vmem>>, vector<1x1x8x8xf32>,
    %cst_72 = arith.constant dense<0.000000e+00> : vector<8x8xf32>
    %149 = tpu.matmul %21, %12, %cst_72 {dimension_numbers = #tpu.dot_dimension_numbers<[1], [0], [0], [1], [0, 0, 1, 1], [], []>} : vector<8x8xf32>, vector<8x8xf32>, vector<8x8xf32> -> vector<8x8xf32>
    %150 = vector.broadcast %13 : vector<1x8xf32> to vector<8x8xf32>
    %151 = arith.addf %149, %150 : vector<8x8xf32>
    %152 = arith.addf %151, %117 : vector<8x8xf32>
    %cst_73 = arith.constant 0.000000e+00 : f32
    %153 = vector.broadcast %cst_73 : f32 to vector<8x8xf32>
    %154 = arith.maximumf %152, %153 : vector<8x8xf32>
    %cst_74 = arith.constant dense<0.000000e+00> : vector<8xf32>
    %155 = vector.multi_reduction <add>, %154, %cst_74 [1] : vector<8x8xf32> to vector<8xf32>
    %156 = vector.shape_cast %155 : vector<8xf32> to vector<8x1xf32>
    %cst_75 = arith.constant 8.000000e+00 : f32
    %157 = vector.broadcast %cst_75 : f32 to vector<8x1xf32>
    %158 = arith.divf %156, %157 : vector<8x1xf32>
    %159 = vector.broadcast %158 : vector<8x1xf32> to vector<8x8xf32>
    %160 = arith.subf %154, %159 : vector<8x8xf32>
    %161 = arith.mulf %160, %160 : vector<8x8xf32>
    %cst_76 = arith.constant dense<0.000000e+00> : vector<8xf32>
    %162 = vector.multi_reduction <add>, %161, %cst_76 [1] : vector<8x8xf32> to vector<8xf32>
    %163 = vector.shape_cast %162 : vector<8xf32> to vector<8x1xf32>
    %cst_77 = arith.constant 8.000000e+00 : f32
    %164 = vector.broadcast %cst_77 : f32 to vector<8x1xf32>
    %165 = arith.divf %163, %164 : vector<8x1xf32>
    %166 = vector.broadcast %158 : vector<8x1xf32> to vector<8x8xf32>
    %167 = arith.subf %154, %166 : vector<8x8xf32>
    %cst_78 = arith.constant 9.99999974E-6 : f32
    %168 = vector.broadcast %cst_78 : f32 to vector<8x1xf32>
    %169 = arith.addf %165, %168 : vector<8x1xf32>
    %170 = math.rsqrt %169 : vector<8x1xf32>
    %171 = vector.broadcast %170 : vector<8x1xf32> to vector<8x8xf32>
    %172 = arith.mulf %167, %171 : vector<8x8xf32>
    %173 = vector.broadcast %14 : vector<1x8xf32> to vector<8x8xf32>
    %174 = arith.mulf %172, %173 : vector<8x8xf32>
    %175 = vector.broadcast %15 : vector<1x8xf32> to vector<8x8xf32>
    %176 = arith.addf %174, %175 : vector<8x8xf32>
    %c0_79 = arith.constant 0 : index
    %c1 = arith.constant 1 : index
    %c0_80 = arith.constant 0 : index
    %c0_81 = arith.constant 0 : index
    %177 = vector.load %arg18[%c0_79, %c1, %c0_80, %c0_81] : memref<2x3x8x8xf32, #tpu.memory_space<vmem>>, vector<1x1x8x8xf32>
    %178 = vector.shape_cast %177 : vector<1x1x8x8xf32> to vector<8x8xf32>
    %179 = vector.shape_cast %176 : vector<8x8xf32> to vector<1x1x8x8xf32>
    tpu.vector_store %arg18[%c0_79, %c1, %c0_80, %c0_81], %179 {strides = array<i32>} : memref<2x3x8x8xf32, #tpu.memory_space<vmem>>, vector<1x1x8x8xf32>,
    %cst_82 = arith.constant dense<0.000000e+00> : vector<8x8xf32>
    %180 = tpu.matmul %23, %12, %cst_82 {dimension_numbers = #tpu.dot_dimension_numbers<[1], [0], [0], [1], [0, 0, 1, 1], [], []>} : vector<8x8xf32>, vector<8x8xf32>, vector<8x8xf32> -> vector<8x8xf32>
    %181 = vector.broadcast %13 : vector<1x8xf32> to vector<8x8xf32>
    %182 = arith.addf %180, %181 : vector<8x8xf32>
    %183 = arith.addf %182, %117 : vector<8x8xf32>
    %cst_83 = arith.constant 0.000000e+00 : f32
    %184 = vector.broadcast %cst_83 : f32 to vector<8x8xf32>
    %185 = arith.maximumf %183, %184 : vector<8x8xf32>
    %cst_84 = arith.constant dense<0.000000e+00> : vector<8xf32>
    %186 = vector.multi_reduction <add>, %185, %cst_84 [1] : vector<8x8xf32> to vector<8xf32>
    %187 = vector.shape_cast %186 : vector<8xf32> to vector<8x1xf32>
    %cst_85 = arith.constant 8.000000e+00 : f32
    %188 = vector.broadcast %cst_85 : f32 to vector<8x1xf32>
    %189 = arith.divf %187, %188 : vector<8x1xf32>
    %190 = vector.broadcast %189 : vector<8x1xf32> to vector<8x8xf32>
    %191 = arith.subf %185, %190 : vector<8x8xf32>
    %192 = arith.mulf %191, %191 : vector<8x8xf32>
    %cst_86 = arith.constant dense<0.000000e+00> : vector<8xf32>
    %193 = vector.multi_reduction <add>, %192, %cst_86 [1] : vector<8x8xf32> to vector<8xf32>
    %194 = vector.shape_cast %193 : vector<8xf32> to vector<8x1xf32>
    %cst_87 = arith.constant 8.000000e+00 : f32
    %195 = vector.broadcast %cst_87 : f32 to vector<8x1xf32>
    %196 = arith.divf %194, %195 : vector<8x1xf32>
    %197 = vector.broadcast %189 : vector<8x1xf32> to vector<8x8xf32>
    %198 = arith.subf %185, %197 : vector<8x8xf32>
    %cst_88 = arith.constant 9.99999974E-6 : f32
    %199 = vector.broadcast %cst_88 : f32 to vector<8x1xf32>
    %200 = arith.addf %196, %199 : vector<8x1xf32>
    %201 = math.rsqrt %200 : vector<8x1xf32>
    %202 = vector.broadcast %201 : vector<8x1xf32> to vector<8x8xf32>
    %203 = arith.mulf %198, %202 : vector<8x8xf32>
    %204 = vector.broadcast %14 : vector<1x8xf32> to vector<8x8xf32>
    %205 = arith.mulf %203, %204 : vector<8x8xf32>
    %206 = vector.broadcast %15 : vector<1x8xf32> to vector<8x8xf32>
    %207 = arith.addf %205, %206 : vector<8x8xf32>
    %c0_89 = arith.constant 0 : index
    %c2 = arith.constant 2 : index
    %c0_90 = arith.constant 0 : index
    %c0_91 = arith.constant 0 : index
    %208 = vector.load %arg18[%c0_89, %c2, %c0_90, %c0_91] : memref<2x3x8x8xf32, #tpu.memory_space<vmem>>, vector<1x1x8x8xf32>
    %209 = vector.shape_cast %208 : vector<1x1x8x8xf32> to vector<8x8xf32>
    %210 = vector.shape_cast %207 : vector<8x8xf32> to vector<1x1x8x8xf32>
    tpu.vector_store %arg18[%c0_89, %c2, %c0_90, %c0_91], %210 {strides = array<i32>} : memref<2x3x8x8xf32, #tpu.memory_space<vmem>>, vector<1x1x8x8xf32>,
    %c1_92 = arith.constant 1 : index
    %c0_93 = arith.constant 0 : index
    %c0_94 = arith.constant 0 : index
    %c0_95 = arith.constant 0 : index
    %211 = vector.load %arg1[%c1_92, %c0_93, %c0_94, %c0_95] : memref<2x3x8x8xf32, #tpu.memory_space<vmem>>, vector<1x3x8x8xf32>
    %212 = vector.shape_cast %211 : vector<1x3x8x8xf32> to vector<3x8x8xf32>
    %213 = vector.extract_strided_slice %212 {offsets = [0, 0, 0], sizes = [1, 8, 8], strides = [1, 1, 1]} : vector<3x8x8xf32> to vector<1x8x8xf32>
    %214 = vector.shape_cast %213 : vector<1x8x8xf32> to vector<8x8xf32>
    %215 = vector.extract_strided_slice %212 {offsets = [1, 0, 0], sizes = [1, 8, 8], strides = [1, 1, 1]} : vector<3x8x8xf32> to vector<1x8x8xf32>
    %216 = vector.shape_cast %215 : vector<1x8x8xf32> to vector<8x8xf32>
    %217 = vector.extract_strided_slice %212 {offsets = [2, 0, 0], sizes = [1, 8, 8], strides = [1, 1, 1]} : vector<3x8x8xf32> to vector<1x8x8xf32>
    %218 = vector.shape_cast %217 : vector<1x8x8xf32> to vector<8x8xf32>
    %219 = vector.shape_cast %1 : vector<8x1xf32> to vector<1x8x1xf32>
    %220 = vector.broadcast %219 : vector<1x8x1xf32> to vector<3x8x8xf32>
    %221 = arith.mulf %212, %220 : vector<3x8x8xf32>
    %cst_96 = arith.constant dense<0.000000e+00> : vector<3x8xf32>
    %222 = vector.multi_reduction <add>, %221, %cst_96 [1] : vector<3x8x8xf32> to vector<3x8xf32>
    %cst_97 = arith.constant dense<0.000000e+00> : vector<3x8xf32>
    %223 = tpu.matmul %222, %2, %cst_97 {dimension_numbers = #tpu.dot_dimension_numbers<[1], [0], [0], [1], [0, 0, 1, 1], [], []>} : vector<3x8xf32>, vector<8x8xf32>, vector<3x8xf32> -> vector<3x8xf32>
    %cst_98 = arith.constant dense<0.000000e+00> : vector<8x1xf32>
    %224 = tpu.matmul %216, %3, %cst_98 {dimension_numbers = #tpu.dot_dimension_numbers<[1], [0], [0], [1], [0, 0, 1, 1], [], []>} : vector<8x8xf32>, vector<8x1xf32>, vector<8x1xf32> -> vector<8x1xf32>
    %cst_99 = arith.constant dense<0.000000e+00> : vector<3x1xf32>
    %225 = tpu.matmul %223, %224, %cst_99 {dimension_numbers = #tpu.dot_dimension_numbers<[1], [0], [0], [1], [0, 0, 1, 1], [], []>} : vector<3x8xf32>, vector<8x1xf32>, vector<3x1xf32> -> vector<3x1xf32>
    %226 = vector.extract_strided_slice %4 {offsets = [0, 1], sizes = [3, 1], strides = [1, 1]} : vector<3x3xf32> to vector<3x1xf32>
    %227 = arith.addf %225, %226 : vector<3x1xf32>
    %228 = arith.negf %227 : vector<3x1xf32>
    %229 = math.exp %228 : vector<3x1xf32>
    %cst_100 = arith.constant 1.000000e+00 : f32
    %230 = vector.broadcast %cst_100 : f32 to vector<3x1xf32>
    %231 = arith.addf %230, %229 : vector<3x1xf32>
    %232 = arith.divf %230, %231 : vector<3x1xf32>
    %cst_101 = arith.constant dense<0.000000e+00> : vector<3x1xf32>
    %233 = tpu.matmul %5, %232, %cst_101 {dimension_numbers = #tpu.dot_dimension_numbers<[1], [0], [0], [1], [0, 0, 1, 1], [], []>} : vector<3x3xf32>, vector<3x1xf32>, vector<3x1xf32> -> vector<3x1xf32>
    %cst_102 = arith.constant dense<0xFF800000> : vector<1xf32>
    %234 = vector.multi_reduction <maximumf>, %233, %cst_102 [0] : vector<3x1xf32> to vector<1xf32>
    %235 = vector.shape_cast %234 : vector<1xf32> to vector<1x1xf32>
    %236 = vector.broadcast %235 : vector<1x1xf32> to vector<3x1xf32>
    %237 = arith.subf %233, %236 : vector<3x1xf32>
    %238 = math.exp %237 : vector<3x1xf32>
    %cst_103 = arith.constant dense<0.000000e+00> : vector<1xf32>
    %239 = vector.multi_reduction <add>, %238, %cst_103 [0] : vector<3x1xf32> to vector<1xf32>
    %240 = vector.shape_cast %239 : vector<1xf32> to vector<1x1xf32>
    %241 = vector.broadcast %240 : vector<1x1xf32> to vector<3x1xf32>
    %242 = arith.divf %238, %241 : vector<3x1xf32>
    %243 = vector.extract_strided_slice %242 {offsets = [0, 0], sizes = [1, 1], strides = [1, 1]} : vector<3x1xf32> to vector<1x1xf32>
    %244 = vector.broadcast %243 : vector<1x1xf32> to vector<8x8xf32>
    %245 = arith.mulf %214, %244 : vector<8x8xf32>
    %246 = vector.extract_strided_slice %242 {offsets = [1, 0], sizes = [1, 1], strides = [1, 1]} : vector<3x1xf32> to vector<1x1xf32>
    %247 = vector.broadcast %246 : vector<1x1xf32> to vector<8x8xf32>
    %248 = arith.mulf %216, %247 : vector<8x8xf32>
    %249 = arith.addf %245, %248 : vector<8x8xf32>
    %250 = vector.extract_strided_slice %242 {offsets = [2, 0], sizes = [1, 1], strides = [1, 1]} : vector<3x1xf32> to vector<1x1xf32>
    %251 = vector.broadcast %250 : vector<1x1xf32> to vector<8x8xf32>
    %252 = arith.mulf %218, %251 : vector<8x8xf32>
    %253 = arith.addf %249, %252 : vector<8x8xf32>
    %254 = vector.extract_strided_slice %0 {offsets = [0, 0, 0], sizes = [1, 8, 8], strides = [1, 1, 1]} : vector<3x8x8xf32> to vector<1x8x8xf32>
    %255 = vector.shape_cast %254 : vector<1x8x8xf32> to vector<8x8xf32>
    %cst_104 = arith.constant dense<0.000000e+00> : vector<8x8xf32>
    %256 = tpu.matmul %255, %253, %cst_104 {dimension_numbers = #tpu.dot_dimension_numbers<[1], [0], [0], [1], [0, 0, 1, 1], [], []>} : vector<8x8xf32>, vector<8x8xf32>, vector<8x8xf32> -> vector<8x8xf32>
    %257 = vector.extract_strided_slice %6 {offsets = [0, 0, 0], sizes = [1, 8, 16], strides = [1, 1, 1]} : vector<3x8x16xf32> to vector<1x8x16xf32>
    %258 = vector.shape_cast %257 : vector<1x8x16xf32> to vector<8x16xf32>
    %cst_105 = arith.constant dense<0.000000e+00> : vector<8x16xf32>
    %259 = tpu.matmul %256, %258, %cst_105 {dimension_numbers = #tpu.dot_dimension_numbers<[1], [0], [0], [1], [0, 0, 1, 1], [], []>} : vector<8x8xf32>, vector<8x16xf32>, vector<8x16xf32> -> vector<8x16xf32>
    %260 = vector.extract_strided_slice %7 {offsets = [0, 0, 0], sizes = [1, 1, 16], strides = [1, 1, 1]} : vector<3x1x16xf32> to vector<1x1x16xf32>
    %261 = vector.shape_cast %260 : vector<1x1x16xf32> to vector<1x16xf32>
    %262 = vector.broadcast %261 : vector<1x16xf32> to vector<8x16xf32>
    %263 = arith.addf %259, %262 : vector<8x16xf32>
    %cst_106 = arith.constant 0.000000e+00 : f32
    %264 = vector.broadcast %cst_106 : f32 to vector<8x16xf32>
    %265 = arith.maximumf %263, %264 : vector<8x16xf32>
    %266 = vector.extract_strided_slice %0 {offsets = [1, 0, 0], sizes = [1, 8, 8], strides = [1, 1, 1]} : vector<3x8x8xf32> to vector<1x8x8xf32>
    %267 = vector.shape_cast %266 : vector<1x8x8xf32> to vector<8x8xf32>
    %cst_107 = arith.constant dense<0.000000e+00> : vector<8x8xf32>
    %268 = tpu.matmul %267, %253, %cst_107 {dimension_numbers = #tpu.dot_dimension_numbers<[1], [0], [0], [1], [0, 0, 1, 1], [], []>} : vector<8x8xf32>, vector<8x8xf32>, vector<8x8xf32> -> vector<8x8xf32>
    %269 = vector.extract_strided_slice %6 {offsets = [1, 0, 0], sizes = [1, 8, 16], strides = [1, 1, 1]} : vector<3x8x16xf32> to vector<1x8x16xf32>
    %270 = vector.shape_cast %269 : vector<1x8x16xf32> to vector<8x16xf32>
    %cst_108 = arith.constant dense<0.000000e+00> : vector<8x16xf32>
    %271 = tpu.matmul %268, %270, %cst_108 {dimension_numbers = #tpu.dot_dimension_numbers<[1], [0], [0], [1], [0, 0, 1, 1], [], []>} : vector<8x8xf32>, vector<8x16xf32>, vector<8x16xf32> -> vector<8x16xf32>
    %272 = vector.extract_strided_slice %7 {offsets = [1, 0, 0], sizes = [1, 1, 16], strides = [1, 1, 1]} : vector<3x1x16xf32> to vector<1x1x16xf32>
    %273 = vector.shape_cast %272 : vector<1x1x16xf32> to vector<1x16xf32>
    %274 = vector.broadcast %273 : vector<1x16xf32> to vector<8x16xf32>
    %275 = arith.addf %271, %274 : vector<8x16xf32>
    %cst_109 = arith.constant 0.000000e+00 : f32
    %276 = vector.broadcast %cst_109 : f32 to vector<8x16xf32>
    %277 = arith.maximumf %275, %276 : vector<8x16xf32>
    %278 = arith.addf %265, %277 : vector<8x16xf32>
    %279 = vector.extract_strided_slice %0 {offsets = [2, 0, 0], sizes = [1, 8, 8], strides = [1, 1, 1]} : vector<3x8x8xf32> to vector<1x8x8xf32>
    %280 = vector.shape_cast %279 : vector<1x8x8xf32> to vector<8x8xf32>
    %cst_110 = arith.constant dense<0.000000e+00> : vector<8x8xf32>
    %281 = tpu.matmul %280, %253, %cst_110 {dimension_numbers = #tpu.dot_dimension_numbers<[1], [0], [0], [1], [0, 0, 1, 1], [], []>} : vector<8x8xf32>, vector<8x8xf32>, vector<8x8xf32> -> vector<8x8xf32>
    %282 = vector.extract_strided_slice %6 {offsets = [2, 0, 0], sizes = [1, 8, 16], strides = [1, 1, 1]} : vector<3x8x16xf32> to vector<1x8x16xf32>
    %283 = vector.shape_cast %282 : vector<1x8x16xf32> to vector<8x16xf32>
    %cst_111 = arith.constant dense<0.000000e+00> : vector<8x16xf32>
    %284 = tpu.matmul %281, %283, %cst_111 {dimension_numbers = #tpu.dot_dimension_numbers<[1], [0], [0], [1], [0, 0, 1, 1], [], []>} : vector<8x8xf32>, vector<8x16xf32>, vector<8x16xf32> -> vector<8x16xf32>
    %285 = vector.extract_strided_slice %7 {offsets = [2, 0, 0], sizes = [1, 1, 16], strides = [1, 1, 1]} : vector<3x1x16xf32> to vector<1x1x16xf32>
    %286 = vector.shape_cast %285 : vector<1x1x16xf32> to vector<1x16xf32>
    %287 = vector.broadcast %286 : vector<1x16xf32> to vector<8x16xf32>
    %288 = arith.addf %284, %287 : vector<8x16xf32>
    %cst_112 = arith.constant 0.000000e+00 : f32
    %289 = vector.broadcast %cst_112 : f32 to vector<8x16xf32>
    %290 = arith.maximumf %288, %289 : vector<8x16xf32>
    %291 = arith.addf %278, %290 : vector<8x16xf32>
    %cst_113 = arith.constant 0.000000e+00 : f32
    %292 = vector.broadcast %cst_113 : f32 to vector<8x8xf32>
    %cst_114 = arith.constant 0.000000e+00 : f32
    %293 = vector.broadcast %cst_114 : f32 to vector<8x8xf32>
    %294 = vector.extract_strided_slice %8 {offsets = [1, 0, 0], sizes = [1, 16, 8], strides = [1, 1, 1]} : vector<3x16x8xf32> to vector<1x16x8xf32>
    %295 = vector.shape_cast %294 : vector<1x16x8xf32> to vector<16x8xf32>
    %cst_115 = arith.constant dense<0.000000e+00> : vector<8x8xf32>
    %296 = tpu.matmul %291, %295, %cst_115 {dimension_numbers = #tpu.dot_dimension_numbers<[1], [0], [0], [1], [0, 0, 1, 1], [], []>} : vector<8x16xf32>, vector<16x8xf32>, vector<8x8xf32> -> vector<8x8xf32>
    %297 = arith.addf %292, %296 : vector<8x8xf32>
    %298 = vector.extract_strided_slice %9 {offsets = [1, 0, 0], sizes = [1, 16, 8], strides = [1, 1, 1]} : vector<3x16x8xf32> to vector<1x16x8xf32>
    %299 = vector.shape_cast %298 : vector<1x16x8xf32> to vector<16x8xf32>
    %cst_116 = arith.constant dense<0.000000e+00> : vector<8x8xf32>
    %300 = tpu.matmul %291, %299, %cst_116 {dimension_numbers = #tpu.dot_dimension_numbers<[1], [0], [0], [1], [0, 0, 1, 1], [], []>} : vector<8x16xf32>, vector<16x8xf32>, vector<8x8xf32> -> vector<8x8xf32>
    %301 = arith.addf %293, %300 : vector<8x8xf32>
    %302 = vector.broadcast %10 : vector<1x8xf32> to vector<8x8xf32>
    %303 = arith.addf %297, %302 : vector<8x8xf32>
    %304 = math.tanh %303 : vector<8x8xf32>
    %305 = vector.broadcast %11 : vector<1x8xf32> to vector<8x8xf32>
    %306 = arith.addf %301, %305 : vector<8x8xf32>
    %307 = arith.negf %306 : vector<8x8xf32>
    %308 = math.exp %307 : vector<8x8xf32>
    %cst_117 = arith.constant 1.000000e+00 : f32
    %309 = vector.broadcast %cst_117 : f32 to vector<8x8xf32>
    %310 = arith.addf %309, %308 : vector<8x8xf32>
    %311 = arith.divf %309, %310 : vector<8x8xf32>
    %312 = arith.mulf %304, %311 : vector<8x8xf32>
    %cst_118 = arith.constant dense<0.000000e+00> : vector<8x8xf32>
    %313 = tpu.matmul %214, %12, %cst_118 {dimension_numbers = #tpu.dot_dimension_numbers<[1], [0], [0], [1], [0, 0, 1, 1], [], []>} : vector<8x8xf32>, vector<8x8xf32>, vector<8x8xf32> -> vector<8x8xf32>
    %314 = vector.broadcast %13 : vector<1x8xf32> to vector<8x8xf32>
    %315 = arith.addf %313, %314 : vector<8x8xf32>
    %316 = arith.addf %315, %312 : vector<8x8xf32>
    %cst_119 = arith.constant 0.000000e+00 : f32
    %317 = vector.broadcast %cst_119 : f32 to vector<8x8xf32>
    %318 = arith.maximumf %316, %317 : vector<8x8xf32>
    %cst_120 = arith.constant dense<0.000000e+00> : vector<8xf32>
    %319 = vector.multi_reduction <add>, %318, %cst_120 [1] : vector<8x8xf32> to vector<8xf32>
    %320 = vector.shape_cast %319 : vector<8xf32> to vector<8x1xf32>
    %cst_121 = arith.constant 8.000000e+00 : f32
    %321 = vector.broadcast %cst_121 : f32 to vector<8x1xf32>
    %322 = arith.divf %320, %321 : vector<8x1xf32>
    %323 = vector.broadcast %322 : vector<8x1xf32> to vector<8x8xf32>
    %324 = arith.subf %318, %323 : vector<8x8xf32>
    %325 = arith.mulf %324, %324 : vector<8x8xf32>
    %cst_122 = arith.constant dense<0.000000e+00> : vector<8xf32>
    %326 = vector.multi_reduction <add>, %325, %cst_122 [1] : vector<8x8xf32> to vector<8xf32>
    %327 = vector.shape_cast %326 : vector<8xf32> to vector<8x1xf32>
    %cst_123 = arith.constant 8.000000e+00 : f32
    %328 = vector.broadcast %cst_123 : f32 to vector<8x1xf32>
    %329 = arith.divf %327, %328 : vector<8x1xf32>
    %330 = vector.broadcast %322 : vector<8x1xf32> to vector<8x8xf32>
    %331 = arith.subf %318, %330 : vector<8x8xf32>
    %cst_124 = arith.constant 9.99999974E-6 : f32
    %332 = vector.broadcast %cst_124 : f32 to vector<8x1xf32>
    %333 = arith.addf %329, %332 : vector<8x1xf32>
    %334 = math.rsqrt %333 : vector<8x1xf32>
    %335 = vector.broadcast %334 : vector<8x1xf32> to vector<8x8xf32>
    %336 = arith.mulf %331, %335 : vector<8x8xf32>
    %337 = vector.broadcast %14 : vector<1x8xf32> to vector<8x8xf32>
    %338 = arith.mulf %336, %337 : vector<8x8xf32>
    %339 = vector.broadcast %15 : vector<1x8xf32> to vector<8x8xf32>
    %340 = arith.addf %338, %339 : vector<8x8xf32>
    %c1_125 = arith.constant 1 : index
    %c0_126 = arith.constant 0 : index
    %c0_127 = arith.constant 0 : index
    %c0_128 = arith.constant 0 : index
    %341 = vector.load %arg18[%c1_125, %c0_126, %c0_127, %c0_128] : memref<2x3x8x8xf32, #tpu.memory_space<vmem>>, vector<1x1x8x8xf32>
    %342 = vector.shape_cast %341 : vector<1x1x8x8xf32> to vector<8x8xf32>
    %343 = vector.shape_cast %340 : vector<8x8xf32> to vector<1x1x8x8xf32>
    tpu.vector_store %arg18[%c1_125, %c0_126, %c0_127, %c0_128], %343 {strides = array<i32>} : memref<2x3x8x8xf32, #tpu.memory_space<vmem>>, vector<1x1x8x8xf32>,
    %cst_129 = arith.constant dense<0.000000e+00> : vector<8x8xf32>
    %344 = tpu.matmul %216, %12, %cst_129 {dimension_numbers = #tpu.dot_dimension_numbers<[1], [0], [0], [1], [0, 0, 1, 1], [], []>} : vector<8x8xf32>, vector<8x8xf32>, vector<8x8xf32> -> vector<8x8xf32>
    %345 = vector.broadcast %13 : vector<1x8xf32> to vector<8x8xf32>
    %346 = arith.addf %344, %345 : vector<8x8xf32>
    %347 = arith.addf %346, %312 : vector<8x8xf32>
    %cst_130 = arith.constant 0.000000e+00 : f32
    %348 = vector.broadcast %cst_130 : f32 to vector<8x8xf32>
    %349 = arith.maximumf %347, %348 : vector<8x8xf32>
    %cst_131 = arith.constant dense<0.000000e+00> : vector<8xf32>
    %350 = vector.multi_reduction <add>, %349, %cst_131 [1] : vector<8x8xf32> to vector<8xf32>
    %351 = vector.shape_cast %350 : vector<8xf32> to vector<8x1xf32>
    %cst_132 = arith.constant 8.000000e+00 : f32
    %352 = vector.broadcast %cst_132 : f32 to vector<8x1xf32>
    %353 = arith.divf %351, %352 : vector<8x1xf32>
    %354 = vector.broadcast %353 : vector<8x1xf32> to vector<8x8xf32>
    %355 = arith.subf %349, %354 : vector<8x8xf32>
    %356 = arith.mulf %355, %355 : vector<8x8xf32>
    %cst_133 = arith.constant dense<0.000000e+00> : vector<8xf32>
    %357 = vector.multi_reduction <add>, %356, %cst_133 [1] : vector<8x8xf32> to vector<8xf32>
    %358 = vector.shape_cast %357 : vector<8xf32> to vector<8x1xf32>
    %cst_134 = arith.constant 8.000000e+00 : f32
    %359 = vector.broadcast %cst_134 : f32 to vector<8x1xf32>
    %360 = arith.divf %358, %359 : vector<8x1xf32>
    %361 = vector.broadcast %353 : vector<8x1xf32> to vector<8x8xf32>
    %362 = arith.subf %349, %361 : vector<8x8xf32>
    %cst_135 = arith.constant 9.99999974E-6 : f32
    %363 = vector.broadcast %cst_135 : f32 to vector<8x1xf32>
    %364 = arith.addf %360, %363 : vector<8x1xf32>
    %365 = math.rsqrt %364 : vector<8x1xf32>
    %366 = vector.broadcast %365 : vector<8x1xf32> to vector<8x8xf32>
    %367 = arith.mulf %362, %366 : vector<8x8xf32>
    %368 = vector.broadcast %14 : vector<1x8xf32> to vector<8x8xf32>
    %369 = arith.mulf %367, %368 : vector<8x8xf32>
    %370 = vector.broadcast %15 : vector<1x8xf32> to vector<8x8xf32>
    %371 = arith.addf %369, %370 : vector<8x8xf32>
    %c1_136 = arith.constant 1 : index
    %c1_137 = arith.constant 1 : index
    %c0_138 = arith.constant 0 : index
    %c0_139 = arith.constant 0 : index
    %372 = vector.load %arg18[%c1_136, %c1_137, %c0_138, %c0_139] : memref<2x3x8x8xf32, #tpu.memory_space<vmem>>, vector<1x1x8x8xf32>
    %373 = vector.shape_cast %372 : vector<1x1x8x8xf32> to vector<8x8xf32>
    %374 = vector.shape_cast %371 : vector<8x8xf32> to vector<1x1x8x8xf32>
    tpu.vector_store %arg18[%c1_136, %c1_137, %c0_138, %c0_139], %374 {strides = array<i32>} : memref<2x3x8x8xf32, #tpu.memory_space<vmem>>, vector<1x1x8x8xf32>,
    %cst_140 = arith.constant dense<0.000000e+00> : vector<8x8xf32>
    %375 = tpu.matmul %218, %12, %cst_140 {dimension_numbers = #tpu.dot_dimension_numbers<[1], [0], [0], [1], [0, 0, 1, 1], [], []>} : vector<8x8xf32>, vector<8x8xf32>, vector<8x8xf32> -> vector<8x8xf32>
    %376 = vector.broadcast %13 : vector<1x8xf32> to vector<8x8xf32>
    %377 = arith.addf %375, %376 : vector<8x8xf32>
    %378 = arith.addf %377, %312 : vector<8x8xf32>
    %cst_141 = arith.constant 0.000000e+00 : f32
    %379 = vector.broadcast %cst_141 : f32 to vector<8x8xf32>
    %380 = arith.maximumf %378, %379 : vector<8x8xf32>
    %cst_142 = arith.constant dense<0.000000e+00> : vector<8xf32>
    %381 = vector.multi_reduction <add>, %380, %cst_142 [1] : vector<8x8xf32> to vector<8xf32>
    %382 = vector.shape_cast %381 : vector<8xf32> to vector<8x1xf32>
    %cst_143 = arith.constant 8.000000e+00 : f32
    %383 = vector.broadcast %cst_143 : f32 to vector<8x1xf32>
    %384 = arith.divf %382, %383 : vector<8x1xf32>
    %385 = vector.broadcast %384 : vector<8x1xf32> to vector<8x8xf32>
    %386 = arith.subf %380, %385 : vector<8x8xf32>
    %387 = arith.mulf %386, %386 : vector<8x8xf32>
    %cst_144 = arith.constant dense<0.000000e+00> : vector<8xf32>
    %388 = vector.multi_reduction <add>, %387, %cst_144 [1] : vector<8x8xf32> to vector<8xf32>
    %389 = vector.shape_cast %388 : vector<8xf32> to vector<8x1xf32>
    %cst_145 = arith.constant 8.000000e+00 : f32
    %390 = vector.broadcast %cst_145 : f32 to vector<8x1xf32>
    %391 = arith.divf %389, %390 : vector<8x1xf32>
    %392 = vector.broadcast %384 : vector<8x1xf32> to vector<8x8xf32>
    %393 = arith.subf %380, %392 : vector<8x8xf32>
    %cst_146 = arith.constant 9.99999974E-6 : f32
    %394 = vector.broadcast %cst_146 : f32 to vector<8x1xf32>
    %395 = arith.addf %391, %394 : vector<8x1xf32>
    %396 = math.rsqrt %395 : vector<8x1xf32>
    %397 = vector.broadcast %396 : vector<8x1xf32> to vector<8x8xf32>
    %398 = arith.mulf %393, %397 : vector<8x8xf32>
    %399 = vector.broadcast %14 : vector<1x8xf32> to vector<8x8xf32>
    %400 = arith.mulf %398, %399 : vector<8x8xf32>
    %401 = vector.broadcast %15 : vector<1x8xf32> to vector<8x8xf32>
    %402 = arith.addf %400, %401 : vector<8x8xf32>
    %c1_147 = arith.constant 1 : index
    %c2_148 = arith.constant 2 : index
    %c0_149 = arith.constant 0 : index
    %c0_150 = arith.constant 0 : index
    %403 = vector.load %arg18[%c1_147, %c2_148, %c0_149, %c0_150] : memref<2x3x8x8xf32, #tpu.memory_space<vmem>>, vector<1x1x8x8xf32>
    %404 = vector.shape_cast %403 : vector<1x1x8x8xf32> to vector<8x8xf32>
    %405 = vector.shape_cast %402 : vector<8x8xf32> to vector<1x1x8x8xf32>
    tpu.vector_store %arg18[%c1_147, %c2_148, %c0_149, %c0_150], %405 {strides = array<i32>} : memref<2x3x8x8xf32, #tpu.memory_space<vmem>>, vector<1x1x8x8xf32>,
    return
  }
  func.func @transform_0(%arg0: i32) -> (i32, i32, i32, i32) {
    %c0_i32 = arith.constant 0 : i32
    %c0_i32_0 = arith.constant 0 : i32
    %c0_i32_1 = arith.constant 0 : i32
    %c0_i32_2 = arith.constant 0 : i32
    %c0_i32_3 = arith.constant 0 : i32
    return %c0_i32, %c0_i32_0, %c0_i32_1, %c0_i32_2 : i32, i32, i32, i32
  }
  func.func @transform_1(%arg0: i32) -> (i32, i32, i32) {
    %c0_i32 = arith.constant 0 : i32
    %c0_i32_0 = arith.constant 0 : i32
    %c0_i32_1 = arith.constant 0 : i32
    %c0_i32_2 = arith.constant 0 : i32
    return %c0_i32, %c0_i32_0, %c0_i32_1 : i32, i32, i32
  }
  func.func @transform_2(%arg0: i32) -> (i32, i32) {
    %c0_i32 = arith.constant 0 : i32
    %c0_i32_0 = arith.constant 0 : i32
    %c0_i32_1 = arith.constant 0 : i32
    return %c0_i32, %c0_i32_0 : i32, i32
  }
  func.func @transform_3(%arg0: i32) -> (i32, i32) {
    %c0_i32 = arith.constant 0 : i32
    %c0_i32_0 = arith.constant 0 : i32
    %c0_i32_1 = arith.constant 0 : i32
    return %c0_i32, %c0_i32_0 : i32, i32
  }
  func.func @transform_4(%arg0: i32) -> (i32, i32) {
    %c0_i32 = arith.constant 0 : i32
    %c0_i32_0 = arith.constant 0 : i32
    %c0_i32_1 = arith.constant 0 : i32
    return %c0_i32, %c0_i32_0 : i32, i32
  }
  func.func @transform_5(%arg0: i32) -> (i32, i32) {
    %c0_i32 = arith.constant 0 : i32
    %c0_i32_0 = arith.constant 0 : i32
    %c0_i32_1 = arith.constant 0 : i32
    return %c0_i32, %c0_i32_0 : i32, i32
  }
  func.func @transform_6(%arg0: i32) -> (i32, i32) {
    %c0_i32 = arith.constant 0 : i32
    %c0_i32_0 = arith.constant 0 : i32
    %c0_i32_1 = arith.constant 0 : i32
    return %c0_i32, %c0_i32_0 : i32, i32
  }
  func.func @transform_7(%arg0: i32) -> (i32, i32, i32) {
    %c0_i32 = arith.constant 0 : i32
    %c0_i32_0 = arith.constant 0 : i32
    %c0_i32_1 = arith.constant 0 : i32
    %c0_i32_2 = arith.constant 0 : i32
    return %c0_i32, %c0_i32_0, %c0_i32_1 : i32, i32, i32
  }
  func.func @transform_8(%arg0: i32) -> (i32, i32, i32) {
    %c0_i32 = arith.constant 0 : i32
    %c0_i32_0 = arith.constant 0 : i32
    %c0_i32_1 = arith.constant 0 : i32
    %c0_i32_2 = arith.constant 0 : i32
    return %c0_i32, %c0_i32_0, %c0_i32_1 : i32, i32, i32
  }
  func.func @transform_9(%arg0: i32) -> (i32, i32, i32) {
    %c0_i32 = arith.constant 0 : i32
    %c0_i32_0 = arith.constant 0 : i32
    %c0_i32_1 = arith.constant 0 : i32
    %c0_i32_2 = arith.constant 0 : i32
    return %c0_i32, %c0_i32_0, %c0_i32_1 : i32, i32, i32
  }
  func.func @transform_10(%arg0: i32) -> (i32, i32, i32) {
    %c0_i32 = arith.constant 0 : i32
    %c0_i32_0 = arith.constant 0 : i32
    %c0_i32_1 = arith.constant 0 : i32
    %c0_i32_2 = arith.constant 0 : i32
    return %c0_i32, %c0_i32_0, %c0_i32_1 : i32, i32, i32
  }
  func.func @transform_11(%arg0: i32) -> (i32, i32) {
    %c0_i32 = arith.constant 0 : i32
    %c0_i32_0 = arith.constant 0 : i32
    %c0_i32_1 = arith.constant 0 : i32
    return %c0_i32, %c0_i32_0 : i32, i32
  }
  func.func @transform_12(%arg0: i32) -> (i32, i32) {
    %c0_i32 = arith.constant 0 : i32
    %c0_i32_0 = arith.constant 0 : i32
    %c0_i32_1 = arith.constant 0 : i32
    return %c0_i32, %c0_i32_0 : i32, i32
  }
  func.func @transform_13(%arg0: i32) -> (i32, i32) {
    %c0_i32 = arith.constant 0 : i32
    %c0_i32_0 = arith.constant 0 : i32
    %c0_i32_1 = arith.constant 0 : i32
    return %c0_i32, %c0_i32_0 : i32, i32
  }
  func.func @transform_14(%arg0: i32) -> (i32, i32) {
    %c0_i32 = arith.constant 0 : i32
    %c0_i32_0 = arith.constant 0 : i32
    %c0_i32_1 = arith.constant 0 : i32
    return %c0_i32, %c0_i32_0 : i32, i32
  }
  func.func @transform_15(%arg0: i32) -> (i32, i32) {
    %c0_i32 = arith.constant 0 : i32
    %c0_i32_0 = arith.constant 0 : i32
    %c0_i32_1 = arith.constant 0 : i32
    return %c0_i32, %c0_i32_0 : i32, i32
  }
  func.func @transform_16(%arg0: i32) -> (i32, i32) {
    %c0_i32 = arith.constant 0 : i32
    %c0_i32_0 = arith.constant 0 : i32
    %c0_i32_1 = arith.constant 0 : i32
    return %c0_i32, %c0_i32_0 : i32, i32
  }
  func.func @transform_17(%arg0: i32) -> (i32, i32, i32, i32) {
    %c0_i32 = arith.constant 0 : i32
    %c0_i32_0 = arith.constant 0 : i32
    %c0_i32_1 = arith.constant 0 : i32
    %c0_i32_2 = arith.constant 0 : i32
    %c0_i32_3 = arith.constant 0 : i32
    return %c0_i32, %c0_i32_0, %c0_i32_1, %c0_i32_2 : i32, i32, i32, i32
  }
}

module attributes {stable_mosaic.version = 11 : i64} {
  func.func @_fc3_kernel(%arg0: i32, %arg1: memref<2x8x24xf32, #tpu.memory_space<vmem>>, %arg2: memref<8x4xf32, #tpu.memory_space<vmem>>, %arg3: memref<4x24x32xf32, #tpu.memory_space<vmem>>, %arg4: memref<4x32xf32, #tpu.memory_space<vmem>>, %arg5: memref<8x4xf32, #tpu.memory_space<vmem>>, %arg6: memref<4x32x2xf32, #tpu.memory_space<vmem>>, %arg7: memref<4x2xf32, #tpu.memory_space<vmem>>, %arg8: memref<2x8x2xf32, #tpu.memory_space<vmem>>) attributes {dimension_semantics = [#tpu.dimension_semantics<arbitrary>], iteration_bounds = array<i64: 1>, scalar_prefetch = 0 : i64, scratch_operands = 0 : i64, tpu.core_type = #tpu.core_type<tc>, window_params = [{pipeline_mode = #tpu.pipeline_mode<synchronous>, transform_indices = @transform_0, window_bounds = array<i64: 2, 8, 24>}, {pipeline_mode = #tpu.pipeline_mode<synchronous>, transform_indices = @transform_1, window_bounds = array<i64: 8, 4>}, {pipeline_mode = #tpu.pipeline_mode<synchronous>, transform_indices = @transform_2, window_bounds = array<i64: 4, 24, 32>}, {pipeline_mode = #tpu.pipeline_mode<synchronous>, transform_indices = @transform_3, window_bounds = array<i64: 4, 32>}, {pipeline_mode = #tpu.pipeline_mode<synchronous>, transform_indices = @transform_4, window_bounds = array<i64: 8, 4>}, {pipeline_mode = #tpu.pipeline_mode<synchronous>, transform_indices = @transform_5, window_bounds = array<i64: 4, 32, 2>}, {pipeline_mode = #tpu.pipeline_mode<synchronous>, transform_indices = @transform_6, window_bounds = array<i64: 4, 2>}, {pipeline_mode = #tpu.pipeline_mode<synchronous>, transform_indices = @transform_7, window_bounds = array<i64: 2, 8, 2>}]} {
    %c0 = arith.constant 0 : index
    %c0_0 = arith.constant 0 : index
    %0 = vector.load %arg2[%c0, %c0_0] : memref<8x4xf32, #tpu.memory_space<vmem>>, vector<8x4xf32>
    %c0_1 = arith.constant 0 : index
    %c0_2 = arith.constant 0 : index
    %c0_3 = arith.constant 0 : index
    %1 = vector.load %arg3[%c0_1, %c0_2, %c0_3] : memref<4x24x32xf32, #tpu.memory_space<vmem>>, vector<4x24x32xf32>
    %c0_4 = arith.constant 0 : index
    %c0_5 = arith.constant 0 : index
    %2 = vector.load %arg4[%c0_4, %c0_5] : memref<4x32xf32, #tpu.memory_space<vmem>>, vector<4x32xf32>
    %c0_6 = arith.constant 0 : index
    %c0_7 = arith.constant 0 : index
    %3 = vector.load %arg5[%c0_6, %c0_7] : memref<8x4xf32, #tpu.memory_space<vmem>>, vector<8x4xf32>
    %c0_8 = arith.constant 0 : index
    %c0_9 = arith.constant 0 : index
    %c0_10 = arith.constant 0 : index
    %4 = vector.load %arg6[%c0_8, %c0_9, %c0_10] : memref<4x32x2xf32, #tpu.memory_space<vmem>>, vector<4x32x2xf32>
    %c0_11 = arith.constant 0 : index
    %c0_12 = arith.constant 0 : index
    %5 = vector.load %arg7[%c0_11, %c0_12] : memref<4x2xf32, #tpu.memory_space<vmem>>, vector<4x2xf32>
    %cst = arith.constant dense<0.000000e+00> : vector<8x32xf32>
    %6 = tpu.matmul %0, %2, %cst {dimension_numbers = #tpu.dot_dimension_numbers<[1], [0], [0], [1], [0, 0, 1, 1], [], []>} : vector<8x4xf32>, vector<4x32xf32>, vector<8x32xf32> -> vector<8x32xf32>
    %cst_13 = arith.constant dense<0.000000e+00> : vector<8x2xf32>
    %7 = tpu.matmul %3, %5, %cst_13 {dimension_numbers = #tpu.dot_dimension_numbers<[1], [0], [0], [1], [0, 0, 1, 1], [], []>} : vector<8x4xf32>, vector<4x2xf32>, vector<8x2xf32> -> vector<8x2xf32>
    %c0_14 = arith.constant 0 : index
    %c0_15 = arith.constant 0 : index
    %c0_16 = arith.constant 0 : index
    %8 = vector.load %arg1[%c0_14, %c0_15, %c0_16] : memref<2x8x24xf32, #tpu.memory_space<vmem>>, vector<1x8x24xf32>
    %9 = vector.shape_cast %8 : vector<1x8x24xf32> to vector<8x24xf32>
    %cst_17 = arith.constant 0.000000e+00 : f32
    %10 = vector.broadcast %cst_17 : f32 to vector<8x24xf32>
    %11 = arith.maximumf %9, %10 : vector<8x24xf32>
    %12 = vector.extract_strided_slice %0 {offsets = [0, 0], sizes = [8, 1], strides = [1, 1]} : vector<8x4xf32> to vector<8x1xf32>
    %13 = vector.extract_strided_slice %1 {offsets = [0, 0, 0], sizes = [1, 24, 32], strides = [1, 1, 1]} : vector<4x24x32xf32> to vector<1x24x32xf32>
    %14 = vector.shape_cast %13 : vector<1x24x32xf32> to vector<24x32xf32>
    %cst_18 = arith.constant dense<0.000000e+00> : vector<8x32xf32>
    %15 = tpu.matmul %11, %14, %cst_18 {dimension_numbers = #tpu.dot_dimension_numbers<[1], [0], [0], [1], [0, 0, 1, 1], [], []>} : vector<8x24xf32>, vector<24x32xf32>, vector<8x32xf32> -> vector<8x32xf32>
    %16 = vector.broadcast %12 : vector<8x1xf32> to vector<8x32xf32>
    %17 = arith.mulf %16, %15 : vector<8x32xf32>
    %18 = arith.addf %6, %17 : vector<8x32xf32>
    %19 = vector.extract_strided_slice %0 {offsets = [0, 1], sizes = [8, 1], strides = [1, 1]} : vector<8x4xf32> to vector<8x1xf32>
    %20 = vector.extract_strided_slice %1 {offsets = [1, 0, 0], sizes = [1, 24, 32], strides = [1, 1, 1]} : vector<4x24x32xf32> to vector<1x24x32xf32>
    %21 = vector.shape_cast %20 : vector<1x24x32xf32> to vector<24x32xf32>
    %cst_19 = arith.constant dense<0.000000e+00> : vector<8x32xf32>
    %22 = tpu.matmul %11, %21, %cst_19 {dimension_numbers = #tpu.dot_dimension_numbers<[1], [0], [0], [1], [0, 0, 1, 1], [], []>} : vector<8x24xf32>, vector<24x32xf32>, vector<8x32xf32> -> vector<8x32xf32>
    %23 = vector.broadcast %19 : vector<8x1xf32> to vector<8x32xf32>
    %24 = arith.mulf %23, %22 : vector<8x32xf32>
    %25 = arith.addf %18, %24 : vector<8x32xf32>
    %26 = vector.extract_strided_slice %0 {offsets = [0, 2], sizes = [8, 1], strides = [1, 1]} : vector<8x4xf32> to vector<8x1xf32>
    %27 = vector.extract_strided_slice %1 {offsets = [2, 0, 0], sizes = [1, 24, 32], strides = [1, 1, 1]} : vector<4x24x32xf32> to vector<1x24x32xf32>
    %28 = vector.shape_cast %27 : vector<1x24x32xf32> to vector<24x32xf32>
    %cst_20 = arith.constant dense<0.000000e+00> : vector<8x32xf32>
    %29 = tpu.matmul %11, %28, %cst_20 {dimension_numbers = #tpu.dot_dimension_numbers<[1], [0], [0], [1], [0, 0, 1, 1], [], []>} : vector<8x24xf32>, vector<24x32xf32>, vector<8x32xf32> -> vector<8x32xf32>
    %30 = vector.broadcast %26 : vector<8x1xf32> to vector<8x32xf32>
    %31 = arith.mulf %30, %29 : vector<8x32xf32>
    %32 = arith.addf %25, %31 : vector<8x32xf32>
    %33 = vector.extract_strided_slice %0 {offsets = [0, 3], sizes = [8, 1], strides = [1, 1]} : vector<8x4xf32> to vector<8x1xf32>
    %34 = vector.extract_strided_slice %1 {offsets = [3, 0, 0], sizes = [1, 24, 32], strides = [1, 1, 1]} : vector<4x24x32xf32> to vector<1x24x32xf32>
    %35 = vector.shape_cast %34 : vector<1x24x32xf32> to vector<24x32xf32>
    %cst_21 = arith.constant dense<0.000000e+00> : vector<8x32xf32>
    %36 = tpu.matmul %11, %35, %cst_21 {dimension_numbers = #tpu.dot_dimension_numbers<[1], [0], [0], [1], [0, 0, 1, 1], [], []>} : vector<8x24xf32>, vector<24x32xf32>, vector<8x32xf32> -> vector<8x32xf32>
    %37 = vector.broadcast %33 : vector<8x1xf32> to vector<8x32xf32>
    %38 = arith.mulf %37, %36 : vector<8x32xf32>
    %39 = arith.addf %32, %38 : vector<8x32xf32>
    %cst_22 = arith.constant 0.000000e+00 : f32
    %40 = vector.broadcast %cst_22 : f32 to vector<8x32xf32>
    %41 = arith.maximumf %39, %40 : vector<8x32xf32>
    %42 = vector.extract_strided_slice %3 {offsets = [0, 0], sizes = [8, 1], strides = [1, 1]} : vector<8x4xf32> to vector<8x1xf32>
    %43 = vector.extract_strided_slice %4 {offsets = [0, 0, 0], sizes = [1, 32, 2], strides = [1, 1, 1]} : vector<4x32x2xf32> to vector<1x32x2xf32>
    %44 = vector.shape_cast %43 : vector<1x32x2xf32> to vector<32x2xf32>
    %cst_23 = arith.constant dense<0.000000e+00> : vector<8x2xf32>
    %45 = tpu.matmul %41, %44, %cst_23 {dimension_numbers = #tpu.dot_dimension_numbers<[1], [0], [0], [1], [0, 0, 1, 1], [], []>} : vector<8x32xf32>, vector<32x2xf32>, vector<8x2xf32> -> vector<8x2xf32>
    %46 = vector.broadcast %42 : vector<8x1xf32> to vector<8x2xf32>
    %47 = arith.mulf %46, %45 : vector<8x2xf32>
    %48 = arith.addf %7, %47 : vector<8x2xf32>
    %49 = vector.extract_strided_slice %3 {offsets = [0, 1], sizes = [8, 1], strides = [1, 1]} : vector<8x4xf32> to vector<8x1xf32>
    %50 = vector.extract_strided_slice %4 {offsets = [1, 0, 0], sizes = [1, 32, 2], strides = [1, 1, 1]} : vector<4x32x2xf32> to vector<1x32x2xf32>
    %51 = vector.shape_cast %50 : vector<1x32x2xf32> to vector<32x2xf32>
    %cst_24 = arith.constant dense<0.000000e+00> : vector<8x2xf32>
    %52 = tpu.matmul %41, %51, %cst_24 {dimension_numbers = #tpu.dot_dimension_numbers<[1], [0], [0], [1], [0, 0, 1, 1], [], []>} : vector<8x32xf32>, vector<32x2xf32>, vector<8x2xf32> -> vector<8x2xf32>
    %53 = vector.broadcast %49 : vector<8x1xf32> to vector<8x2xf32>
    %54 = arith.mulf %53, %52 : vector<8x2xf32>
    %55 = arith.addf %48, %54 : vector<8x2xf32>
    %56 = vector.extract_strided_slice %3 {offsets = [0, 2], sizes = [8, 1], strides = [1, 1]} : vector<8x4xf32> to vector<8x1xf32>
    %57 = vector.extract_strided_slice %4 {offsets = [2, 0, 0], sizes = [1, 32, 2], strides = [1, 1, 1]} : vector<4x32x2xf32> to vector<1x32x2xf32>
    %58 = vector.shape_cast %57 : vector<1x32x2xf32> to vector<32x2xf32>
    %cst_25 = arith.constant dense<0.000000e+00> : vector<8x2xf32>
    %59 = tpu.matmul %41, %58, %cst_25 {dimension_numbers = #tpu.dot_dimension_numbers<[1], [0], [0], [1], [0, 0, 1, 1], [], []>} : vector<8x32xf32>, vector<32x2xf32>, vector<8x2xf32> -> vector<8x2xf32>
    %60 = vector.broadcast %56 : vector<8x1xf32> to vector<8x2xf32>
    %61 = arith.mulf %60, %59 : vector<8x2xf32>
    %62 = arith.addf %55, %61 : vector<8x2xf32>
    %63 = vector.extract_strided_slice %3 {offsets = [0, 3], sizes = [8, 1], strides = [1, 1]} : vector<8x4xf32> to vector<8x1xf32>
    %64 = vector.extract_strided_slice %4 {offsets = [3, 0, 0], sizes = [1, 32, 2], strides = [1, 1, 1]} : vector<4x32x2xf32> to vector<1x32x2xf32>
    %65 = vector.shape_cast %64 : vector<1x32x2xf32> to vector<32x2xf32>
    %cst_26 = arith.constant dense<0.000000e+00> : vector<8x2xf32>
    %66 = tpu.matmul %41, %65, %cst_26 {dimension_numbers = #tpu.dot_dimension_numbers<[1], [0], [0], [1], [0, 0, 1, 1], [], []>} : vector<8x32xf32>, vector<32x2xf32>, vector<8x2xf32> -> vector<8x2xf32>
    %67 = vector.broadcast %63 : vector<8x1xf32> to vector<8x2xf32>
    %68 = arith.mulf %67, %66 : vector<8x2xf32>
    %69 = arith.addf %62, %68 : vector<8x2xf32>
    %c0_27 = arith.constant 0 : index
    %c0_28 = arith.constant 0 : index
    %c0_29 = arith.constant 0 : index
    %70 = vector.load %arg8[%c0_27, %c0_28, %c0_29] : memref<2x8x2xf32, #tpu.memory_space<vmem>>, vector<1x8x2xf32>
    %71 = vector.shape_cast %70 : vector<1x8x2xf32> to vector<8x2xf32>
    %72 = vector.shape_cast %69 : vector<8x2xf32> to vector<1x8x2xf32>
    tpu.vector_store %arg8[%c0_27, %c0_28, %c0_29], %72 {strides = array<i32>} : memref<2x8x2xf32, #tpu.memory_space<vmem>>, vector<1x8x2xf32>,
    %c1 = arith.constant 1 : index
    %c0_30 = arith.constant 0 : index
    %c0_31 = arith.constant 0 : index
    %73 = vector.load %arg1[%c1, %c0_30, %c0_31] : memref<2x8x24xf32, #tpu.memory_space<vmem>>, vector<1x8x24xf32>
    %74 = vector.shape_cast %73 : vector<1x8x24xf32> to vector<8x24xf32>
    %cst_32 = arith.constant 0.000000e+00 : f32
    %75 = vector.broadcast %cst_32 : f32 to vector<8x24xf32>
    %76 = arith.maximumf %74, %75 : vector<8x24xf32>
    %77 = vector.extract_strided_slice %0 {offsets = [0, 0], sizes = [8, 1], strides = [1, 1]} : vector<8x4xf32> to vector<8x1xf32>
    %78 = vector.extract_strided_slice %1 {offsets = [0, 0, 0], sizes = [1, 24, 32], strides = [1, 1, 1]} : vector<4x24x32xf32> to vector<1x24x32xf32>
    %79 = vector.shape_cast %78 : vector<1x24x32xf32> to vector<24x32xf32>
    %cst_33 = arith.constant dense<0.000000e+00> : vector<8x32xf32>
    %80 = tpu.matmul %76, %79, %cst_33 {dimension_numbers = #tpu.dot_dimension_numbers<[1], [0], [0], [1], [0, 0, 1, 1], [], []>} : vector<8x24xf32>, vector<24x32xf32>, vector<8x32xf32> -> vector<8x32xf32>
    %81 = vector.broadcast %77 : vector<8x1xf32> to vector<8x32xf32>
    %82 = arith.mulf %81, %80 : vector<8x32xf32>
    %83 = arith.addf %6, %82 : vector<8x32xf32>
    %84 = vector.extract_strided_slice %0 {offsets = [0, 1], sizes = [8, 1], strides = [1, 1]} : vector<8x4xf32> to vector<8x1xf32>
    %85 = vector.extract_strided_slice %1 {offsets = [1, 0, 0], sizes = [1, 24, 32], strides = [1, 1, 1]} : vector<4x24x32xf32> to vector<1x24x32xf32>
    %86 = vector.shape_cast %85 : vector<1x24x32xf32> to vector<24x32xf32>
    %cst_34 = arith.constant dense<0.000000e+00> : vector<8x32xf32>
    %87 = tpu.matmul %76, %86, %cst_34 {dimension_numbers = #tpu.dot_dimension_numbers<[1], [0], [0], [1], [0, 0, 1, 1], [], []>} : vector<8x24xf32>, vector<24x32xf32>, vector<8x32xf32> -> vector<8x32xf32>
    %88 = vector.broadcast %84 : vector<8x1xf32> to vector<8x32xf32>
    %89 = arith.mulf %88, %87 : vector<8x32xf32>
    %90 = arith.addf %83, %89 : vector<8x32xf32>
    %91 = vector.extract_strided_slice %0 {offsets = [0, 2], sizes = [8, 1], strides = [1, 1]} : vector<8x4xf32> to vector<8x1xf32>
    %92 = vector.extract_strided_slice %1 {offsets = [2, 0, 0], sizes = [1, 24, 32], strides = [1, 1, 1]} : vector<4x24x32xf32> to vector<1x24x32xf32>
    %93 = vector.shape_cast %92 : vector<1x24x32xf32> to vector<24x32xf32>
    %cst_35 = arith.constant dense<0.000000e+00> : vector<8x32xf32>
    %94 = tpu.matmul %76, %93, %cst_35 {dimension_numbers = #tpu.dot_dimension_numbers<[1], [0], [0], [1], [0, 0, 1, 1], [], []>} : vector<8x24xf32>, vector<24x32xf32>, vector<8x32xf32> -> vector<8x32xf32>
    %95 = vector.broadcast %91 : vector<8x1xf32> to vector<8x32xf32>
    %96 = arith.mulf %95, %94 : vector<8x32xf32>
    %97 = arith.addf %90, %96 : vector<8x32xf32>
    %98 = vector.extract_strided_slice %0 {offsets = [0, 3], sizes = [8, 1], strides = [1, 1]} : vector<8x4xf32> to vector<8x1xf32>
    %99 = vector.extract_strided_slice %1 {offsets = [3, 0, 0], sizes = [1, 24, 32], strides = [1, 1, 1]} : vector<4x24x32xf32> to vector<1x24x32xf32>
    %100 = vector.shape_cast %99 : vector<1x24x32xf32> to vector<24x32xf32>
    %cst_36 = arith.constant dense<0.000000e+00> : vector<8x32xf32>
    %101 = tpu.matmul %76, %100, %cst_36 {dimension_numbers = #tpu.dot_dimension_numbers<[1], [0], [0], [1], [0, 0, 1, 1], [], []>} : vector<8x24xf32>, vector<24x32xf32>, vector<8x32xf32> -> vector<8x32xf32>
    %102 = vector.broadcast %98 : vector<8x1xf32> to vector<8x32xf32>
    %103 = arith.mulf %102, %101 : vector<8x32xf32>
    %104 = arith.addf %97, %103 : vector<8x32xf32>
    %cst_37 = arith.constant 0.000000e+00 : f32
    %105 = vector.broadcast %cst_37 : f32 to vector<8x32xf32>
    %106 = arith.maximumf %104, %105 : vector<8x32xf32>
    %107 = vector.extract_strided_slice %3 {offsets = [0, 0], sizes = [8, 1], strides = [1, 1]} : vector<8x4xf32> to vector<8x1xf32>
    %108 = vector.extract_strided_slice %4 {offsets = [0, 0, 0], sizes = [1, 32, 2], strides = [1, 1, 1]} : vector<4x32x2xf32> to vector<1x32x2xf32>
    %109 = vector.shape_cast %108 : vector<1x32x2xf32> to vector<32x2xf32>
    %cst_38 = arith.constant dense<0.000000e+00> : vector<8x2xf32>
    %110 = tpu.matmul %106, %109, %cst_38 {dimension_numbers = #tpu.dot_dimension_numbers<[1], [0], [0], [1], [0, 0, 1, 1], [], []>} : vector<8x32xf32>, vector<32x2xf32>, vector<8x2xf32> -> vector<8x2xf32>
    %111 = vector.broadcast %107 : vector<8x1xf32> to vector<8x2xf32>
    %112 = arith.mulf %111, %110 : vector<8x2xf32>
    %113 = arith.addf %7, %112 : vector<8x2xf32>
    %114 = vector.extract_strided_slice %3 {offsets = [0, 1], sizes = [8, 1], strides = [1, 1]} : vector<8x4xf32> to vector<8x1xf32>
    %115 = vector.extract_strided_slice %4 {offsets = [1, 0, 0], sizes = [1, 32, 2], strides = [1, 1, 1]} : vector<4x32x2xf32> to vector<1x32x2xf32>
    %116 = vector.shape_cast %115 : vector<1x32x2xf32> to vector<32x2xf32>
    %cst_39 = arith.constant dense<0.000000e+00> : vector<8x2xf32>
    %117 = tpu.matmul %106, %116, %cst_39 {dimension_numbers = #tpu.dot_dimension_numbers<[1], [0], [0], [1], [0, 0, 1, 1], [], []>} : vector<8x32xf32>, vector<32x2xf32>, vector<8x2xf32> -> vector<8x2xf32>
    %118 = vector.broadcast %114 : vector<8x1xf32> to vector<8x2xf32>
    %119 = arith.mulf %118, %117 : vector<8x2xf32>
    %120 = arith.addf %113, %119 : vector<8x2xf32>
    %121 = vector.extract_strided_slice %3 {offsets = [0, 2], sizes = [8, 1], strides = [1, 1]} : vector<8x4xf32> to vector<8x1xf32>
    %122 = vector.extract_strided_slice %4 {offsets = [2, 0, 0], sizes = [1, 32, 2], strides = [1, 1, 1]} : vector<4x32x2xf32> to vector<1x32x2xf32>
    %123 = vector.shape_cast %122 : vector<1x32x2xf32> to vector<32x2xf32>
    %cst_40 = arith.constant dense<0.000000e+00> : vector<8x2xf32>
    %124 = tpu.matmul %106, %123, %cst_40 {dimension_numbers = #tpu.dot_dimension_numbers<[1], [0], [0], [1], [0, 0, 1, 1], [], []>} : vector<8x32xf32>, vector<32x2xf32>, vector<8x2xf32> -> vector<8x2xf32>
    %125 = vector.broadcast %121 : vector<8x1xf32> to vector<8x2xf32>
    %126 = arith.mulf %125, %124 : vector<8x2xf32>
    %127 = arith.addf %120, %126 : vector<8x2xf32>
    %128 = vector.extract_strided_slice %3 {offsets = [0, 3], sizes = [8, 1], strides = [1, 1]} : vector<8x4xf32> to vector<8x1xf32>
    %129 = vector.extract_strided_slice %4 {offsets = [3, 0, 0], sizes = [1, 32, 2], strides = [1, 1, 1]} : vector<4x32x2xf32> to vector<1x32x2xf32>
    %130 = vector.shape_cast %129 : vector<1x32x2xf32> to vector<32x2xf32>
    %cst_41 = arith.constant dense<0.000000e+00> : vector<8x2xf32>
    %131 = tpu.matmul %106, %130, %cst_41 {dimension_numbers = #tpu.dot_dimension_numbers<[1], [0], [0], [1], [0, 0, 1, 1], [], []>} : vector<8x32xf32>, vector<32x2xf32>, vector<8x2xf32> -> vector<8x2xf32>
    %132 = vector.broadcast %128 : vector<8x1xf32> to vector<8x2xf32>
    %133 = arith.mulf %132, %131 : vector<8x2xf32>
    %134 = arith.addf %127, %133 : vector<8x2xf32>
    %c1_42 = arith.constant 1 : index
    %c0_43 = arith.constant 0 : index
    %c0_44 = arith.constant 0 : index
    %135 = vector.load %arg8[%c1_42, %c0_43, %c0_44] : memref<2x8x2xf32, #tpu.memory_space<vmem>>, vector<1x8x2xf32>
    %136 = vector.shape_cast %135 : vector<1x8x2xf32> to vector<8x2xf32>
    %137 = vector.shape_cast %134 : vector<8x2xf32> to vector<1x8x2xf32>
    tpu.vector_store %arg8[%c1_42, %c0_43, %c0_44], %137 {strides = array<i32>} : memref<2x8x2xf32, #tpu.memory_space<vmem>>, vector<1x8x2xf32>,
    return
  }
  func.func @transform_0(%arg0: i32) -> (i32, i32, i32) {
    %c0_i32 = arith.constant 0 : i32
    %c0_i32_0 = arith.constant 0 : i32
    %c0_i32_1 = arith.constant 0 : i32
    %c0_i32_2 = arith.constant 0 : i32
    return %c0_i32, %c0_i32_0, %c0_i32_1 : i32, i32, i32
  }
  func.func @transform_1(%arg0: i32) -> (i32, i32) {
    %c0_i32 = arith.constant 0 : i32
    %c0_i32_0 = arith.constant 0 : i32
    %c0_i32_1 = arith.constant 0 : i32
    return %c0_i32, %c0_i32_0 : i32, i32
  }
  func.func @transform_2(%arg0: i32) -> (i32, i32, i32) {
    %c0_i32 = arith.constant 0 : i32
    %c0_i32_0 = arith.constant 0 : i32
    %c0_i32_1 = arith.constant 0 : i32
    %c0_i32_2 = arith.constant 0 : i32
    return %c0_i32, %c0_i32_0, %c0_i32_1 : i32, i32, i32
  }
  func.func @transform_3(%arg0: i32) -> (i32, i32) {
    %c0_i32 = arith.constant 0 : i32
    %c0_i32_0 = arith.constant 0 : i32
    %c0_i32_1 = arith.constant 0 : i32
    return %c0_i32, %c0_i32_0 : i32, i32
  }
  func.func @transform_4(%arg0: i32) -> (i32, i32) {
    %c0_i32 = arith.constant 0 : i32
    %c0_i32_0 = arith.constant 0 : i32
    %c0_i32_1 = arith.constant 0 : i32
    return %c0_i32, %c0_i32_0 : i32, i32
  }
  func.func @transform_5(%arg0: i32) -> (i32, i32, i32) {
    %c0_i32 = arith.constant 0 : i32
    %c0_i32_0 = arith.constant 0 : i32
    %c0_i32_1 = arith.constant 0 : i32
    %c0_i32_2 = arith.constant 0 : i32
    return %c0_i32, %c0_i32_0, %c0_i32_1 : i32, i32, i32
  }
  func.func @transform_6(%arg0: i32) -> (i32, i32) {
    %c0_i32 = arith.constant 0 : i32
    %c0_i32_0 = arith.constant 0 : i32
    %c0_i32_1 = arith.constant 0 : i32
    return %c0_i32, %c0_i32_0 : i32, i32
  }
  func.func @transform_7(%arg0: i32) -> (i32, i32, i32) {
    %c0_i32 = arith.constant 0 : i32
    %c0_i32_0 = arith.constant 0 : i32
    %c0_i32_1 = arith.constant 0 : i32
    %c0_i32_2 = arith.constant 0 : i32
    return %c0_i32, %c0_i32_0, %c0_i32_1 : i32, i32, i32
  }
}

</mosaic_0001>

<bundles_post_ra>
// kernel: sta_mgcn_forward.11
= control target key start
LH: loop header
LB: loop body
LE: loop exit
PB: predicated region body
PF: predicated region fallthrough
CT: control target
= control target key end

     0   :  { %vm62_vm0 = vcmask 1043456   ;;  %vm58_vm1 = vcmask 31744   ;;  %v1779_v0 = vmov 0.0   ;;  %vm1780_vm2 = vmmov 0   ;;  %s2128_s3 = inlined_call_operand.vmem [shape: f32[4,32], index: 3, kind: input, shape index: {}]   ;;  %s2129_s1 = inlined_call_operand.vmem [shape: f32[8,4], index: 1, kind: input, shape index: {}]   ;;  %s2130_s6 = inlined_call_operand.vmem [shape: f32[4,2], index: 6, kind: input, shape index: {}]   ;;  %s2131_s2 = inlined_call_operand.vmem [shape: f32[4,24,32], index: 2, kind: input, shape index: {}]   ;;  %s2132_s4 = inlined_call_operand.vmem [shape: f32[8,4], index: 4, kind: input, shape index: {}]   ;;  %s2133_s0 = inlined_call_operand.vmem [shape: f32[2,8,24], index: 0, kind: input, shape index: {}]   ;;  %s2134_s5 = inlined_call_operand.vmem [shape: f32[4,32,2], index: 5, kind: input, shape index: {}]   ;;  %s2135_s7 = inlined_call_operand.vmem [shape: f32[2,8,2], index: 7, kind: output, shape index: {}]  }
   0x1   :  { %1523 = vmatprep.subr.mxu0 %v1779_v0  ;;  %v39_v1 = vld [vmem:[%s2128_s3] sm:$0xf]  ;;  %1525 = vmatprep.mubr.msk.f32.mxu0 %vm1780_vm2, %v1779_v0  ;;  %v28_v5 = vld [vmem:[%s2131_s2 + $0x8] sm:$0xff]  ;;  %v30_v8 = vld [vmem:[%s2131_s2 + $0x18] sm:$0xff]  ;;  %v1781_v10 = vmov 0.0|0.0   ;;  %vm214_vm3 = vcmask 195584  }
   0x2   :  { %v1835_v2 = vld [vmem:[%s2129_s1] sm:$0xff]  ;;  %1524 = vmatpush3.msk.msra.mxu0 %vm62_vm0, %v39_v1  ;;  %1528 = vmatprep.subr.mxu1 %v1779_v0  ;;  %v33_v13 = vld [vmem:[%s2131_s2 + $0x30] sm:$0xff]  ;;  %v34_v14 = vld [vmem:[%s2131_s2 + $0x38] sm:$0xff]  ;;  %v1782_v22 = vmov 0   ;;  %v1783_v25 = vmov 2   ;;  %v1784_v26 = vmov 1  }
   0x3   :  { %v57_v3 = vld [vmem:[%s2130_s6] sm:$0xf]  ;;  %1526 = vmatmul.mubr.msk.f32.vlgmr.msra.gmra.mrb[0].mxu0 %vm58_vm1, %v1835_v2  ;;  %1693 = vmatprep.subr.bf16.mxu0 %v1781_v10  ;;  %v1886_v15 = vld [vmem:[%s2131_s2 + $0x10] sm:$0xff]  ;;  %v36_v17 = vld [vmem:[%s2131_s2 + $0x48] sm:$0xff]  ;;  %v1897_v19 = vpack.c.bf16 %v34_v14, %v33_v13  ;;  %v1785_v27 = vmov 3   ;;  %vm523_vm4 = vcmask 261120  }
   0x4   :  { %v27_v4 = vld [vmem:[%s2131_s2] sm:$0xff]  ;;  %1529 = vmatpush3.msk.msra.mxu1 %vm62_vm0, %v57_v3  ;;  %1530 = vmatprep.mubr.msk.f32.mxu1 %vm1780_vm2, %v1779_v0  ;;  %v37_v18 = vld [vmem:[%s2131_s2 + $0x50] sm:$0xff]  ;;  %v1903_v20 = vld [vmem:[%s2131_s2 + $0x28] sm:$0xff]  ;;  %vm831_vm5 = vcmask 15360  }
   0x5   :  { %v1851_v6 = vpack.c.bf16 %v28_v5, %v27_v4  ;;  %v1856_v7 = vld [vmem:[%s2132_s4] sm:$0xff]  ;;  %1696 = vmatprep.subr.bf16.mxu1 %v1781_v10  ;;  %1539 = vmatprep.mubr.msk.f32.mxu0 %vm1780_vm2, %v1779_v0  ;;  %v1908_v21 = vpack.c.bf16 %v37_v18, %v36_v17  ;;  %v1929_v24 = vld [vmem:[%s2131_s2 + $0x58] sm:$0xff]  ;;  %v42_v29 = vld [vmem:[%s2134_s5 + $0x8] sm:$0xff] }
   0x6   :  { %v31_v9 = vld [vmem:[%s2131_s2 + $0x20] sm:$0xff]  ;;  %1531 = vmatmul.mubr.msk.f32.vlgmr.msra.gmra.mrb[0].mxu1 %vm58_vm1, %v1856_v7  ;;  %1772 = vset.pattern.permute.xlu0 %v1782_v22  ;;  %v46_v32 = vld [vmem:[%s2134_s5 + $0x28] sm:$0xff]  ;;  %v43_v34 = vld [vmem:[%s2134_s5 + $0x10] sm:$0xff] }
   0x7   :  { %v1867_v11 = vpack.c.bf16 %v31_v9, %v30_v8  ;;  %v212_v12 = vld [vmem:[%s2133_s0] sm:$0xff]  ;;  %1695 = vmatpush3.bf16.msra.mxu0 %v1851_v6  ;;  %1548 = vmatprep.mubr.msk.f32.mxu1 %vm1780_vm2, %v1779_v0  ;;  %v44_v35 = vld [vmem:[%s2134_s5 + $0x18] sm:$0xff]  ;;  %v47_v36 = vld [vmem:[%s2134_s5 + $0x30] sm:$0xff] }
   0x8   :  { %1537 = vmatprep.subr.mxu0 %v1779_v0  ;;  %v213_v16 = vmax.f32 %v212_v12, 0.0  ;;  %v1919_v23 = vld [vmem:[%s2131_s2 + $0x40] sm:$0xff]  ;;  %289 = vperm.xlu0 %1772, %v1835_v2   ;;  %v1980_v37 = vpack.c.bf16 %v44_v35, %v43_v34  ;;  %v48_v38 = vld [vmem:[%s2134_s5 + $0x38] sm:$0xff]  ;;  %v50_v1 = vld [vmem:[%s2134_s5 + $0x48] sm:$0xff] }
   0x9   :  { %1698 = vmatpush3.bf16.msra.mxu1 %v1867_v11  ;;  %1774 = vset.pattern.permute.xlu1 %v1783_v25  ;;  %v41_v28 = vld [vmem:[%s2134_s5] sm:$0xff]  ;;  %v1985_v39 = vpack.c.bf16 %v48_v38, %v47_v36  ;;  %v54_v3 = vld [vmem:[%s2134_s5 + $0x68] sm:$0xff]  ;;  %v51_v8 = vld [vmem:[%s2134_s5 + $0x50] sm:$0xff] }
   0xa   :  { %1546 = vmatprep.subr.mxu1 %v1779_v0  ;;  %441 = vperm.xlu1 %1774, %v1835_v2   ;;  %v45_v30 = vld [vmem:[%s2134_s5 + $0x20] sm:$0xff]  ;;  %v1960_v31 = vpack.c.bf16 %v42_v29, %v41_v28  ;;  %v52_v12 = vld [vmem:[%s2134_s5 + $0x58] sm:$0xff]  ;;  %v55_v13 = vld [vmem:[%s2134_s5 + $0x70] sm:$0xff] }
   0xb   :  { %1538 = vmatpush3.msra.mxu0 %v1886_v15  ;;  %v1965_v33 = vpack.c.bf16 %v46_v32, %v45_v30  ;;  %v49_v60 = vld [vmem:[%s2134_s5 + $0x40] sm:$0xff]  ;;  %v56_v14 = vld [vmem:[%s2134_s5 + $0x78] sm:$0xff]  ;;  %v1437_v18 = vld [vmem:[%s2133_s0 + $0x8] sm:$0xff] }
   0xc   :  { %1540 = vmatmul.mubr.msk.f32.vlgmr.msra.gmra.mrb[2].mxu0 %vm214_vm3, %v213_v16  ;;  %1699 = vmatprep.subr.bf16.mxu0 %v1781_v10  ;;  %v2020_v5 = vpack.c.bf16 %v50_v1, %v49_v60  ;;  %v2042_v17 = vpack.c.bf16 %v56_v14, %v55_v13 }
   0xd   :  { %1547 = vmatpush3.msra.mxu1 %v1903_v20  ;;  %1701 = vmatpush3.bf16.msra.mxu0 %v1897_v19 }
   0xe   :  { %1702 = vmatprep.subr.bf16.mxu1 %v1781_v10  ;;  %1549 = vmatmul.mubr.msk.f32.vlgmr.msra.gmra.mrb[2].mxu1 %vm214_vm3, %v213_v16 }
   0xf   :  { %1704 = vmatpush3.bf16.msra.mxu1 %v1908_v21  ;;  %1555 = vmatprep.subr.mxu0 %v1779_v0 }
  0x10   :  { %1557 = vmatprep.mubr.msk.f32.mxu0 %vm1780_vm2, %v1779_v0  ;;  %1564 = vmatprep.subr.mxu1 %v1779_v0 }
  0x11   :  { %1556 = vmatpush3.msra.mxu0 %v1919_v23  ;;  %1566 = vmatprep.mubr.msk.f32.mxu1 %vm1780_vm2, %v1779_v0 }
  0x12   :  { %1558 = vmatmul.mubr.msk.f32.vlgmr.msra.gmra.mrb[4].mxu0 %vm214_vm3, %v213_v16  ;;  %1705 = vmatprep.subr.bf16.mxu0 %v1781_v10 }
  0x13   :  { %1565 = vmatpush3.msra.mxu1 %v1929_v24  ;;  %1773 = vset.pattern.permute.xlu0 %v1784_v26 }
  0x14   :  { %1567 = vmatmul.mubr.msk.f32.vlgmr.msra.gmra.mrb[4].mxu1 %vm214_vm3, %v213_v16  ;;  %1711 = vmatprep.subr.bf16.mxu1 %v1781_v10  ;;  %v2040_v16 = vpack.c.bf16 %v52_v12, %v51_v8 }
  0x15   :  { %1577 = vmatprep.mubr.msk.f32.mxu0 %vm1780_vm2, %v1779_v0  ;;  %365 = vperm.xlu0 %1773, %v1835_v2  }
  0x16   :  { %1588 = vmatprep.mubr.msk.f32.mxu1 %vm1780_vm2, %v1779_v0  ;;  %1775 = vset.pattern.permute.xlu1 %v1785_v27 }
  0x17   :  { %517 = vperm.xlu1 %1775, %v1835_v2   ;;  %1707 = vmatpush3.bf16.msra.mxu0 %v1960_v31  ;;  %v53_v2 = vld [vmem:[%s2134_s5 + $0x60] sm:$0xff] }
  0x18   :  { %1713 = vmatpush3.bf16.msra.mxu1 %v1965_v33  ;;  %1708 = vmatprep.subr.bf16.mxu0 %v1781_v10 }
  0x19   :  { %674 = vperm.xlu0 %1773, %v1856_v7   ;;  %1714 = vmatprep.subr.bf16.mxu1 %v1781_v10 }
  0x1b   :  { %1776 = vset.pattern.permute.xlu1 %v1782_v22  ;;  %1710 = vmatpush3.bf16.msra.mxu0 %v1980_v37  ;;  %v835_v22 = vmax.f32 %v1437_v18, 0.0 }
  0x1c   :  { %598 = vperm.xlu1 %1776, %v1856_v7   ;;  %1716 = vmatpush3.bf16.msra.mxu1 %v1985_v39 }
  0x1d   :  { %1778 = vset.pattern.permute.xlu0 %v1785_v27  ;;  %1717 = vmatprep.subr.bf16.mxu0 %v1781_v10 }
  0x1e   :  { %826 = vperm.xlu0 %1778, %v1856_v7   ;;  %1723 = vmatprep.subr.bf16.mxu1 %v1781_v10 }
  0x20   :  { %1777 = vset.pattern.permute.xlu1 %v1783_v25 }
  0x21   :  { %750 = vperm.xlu1 %1777, %v1856_v7   ;;  %v2022_v7 = vpack.c.bf16 %v54_v3, %v53_v2 }
  0x87   :  { %v1995_v43 = vpop.permute.xlu0 %289 }
  0x89   :  { %v1997_v46 = vpop.permute.xlu1 %441 }
  0x94   :  { %v2000_v49 = vpop.permute.xlu0 %365 }
  0x96   :  { %v2004_v56 = vpop.permute.xlu1 %517 }
  0xd6   :  { %v1991_v40 = vpop.f32.mrb[0].mxu0 }
  0xd7   :  { %v1527_v41 = vpop.f32.mrb[1].mxu0 }
  0xd9   :  { %v1993_v42 = vpop.f32.mrb[0].mxu1 }
  0xda   :  { %v1532_v44 = vpop.f32.mrb[1].mxu1 }
  0xdf   :  { %v284_v45 = vpop.f32.mrb[2].mxu0 }
  0xe0   :  { %v292_v47 = vmul.f32 %v1995_v43, %v284_v45  ;;  %v1541_v48 = vpop.f32.mrb[3].mxu0 }
  0xe1   :  { %v360_v50 = vpop.f32.mrb[2].mxu1 }
  0xe2   :  { %v293_v51 = vadd.f32 %v292_v47, %v1991_v40  ;;  %v368_v52 = vmul.f32 %v2000_v49, %v360_v50  ;;  %v1550_v53 = vpop.f32.mrb[3].mxu1 }
  0xe4   :  { %v369_v54 = vadd.f32 %v368_v52, %v293_v51 }
  0xe5   :  { %v436_v55 = vpop.f32.mrb[4].mxu0 }
  0xe6   :  { %v444_v57 = vmul.f32 %v1997_v46, %v436_v55  ;;  %v1559_v58 = vpop.f32.mrb[5].mxu0 }
  0xe7   :  { %v512_v59 = vpop.f32.mrb[4].mxu1 }
  0xe8   :  { %v445_v61 = vadd.f32 %v444_v57, %v369_v54  ;;  %v520_v62 = vmul.f32 %v2004_v56, %v512_v59  ;;  %v1568_v63 = vpop.f32.mrb[5].mxu1 }
  0xea   :  { %v521_v4 = vadd.f32 %v520_v62, %v445_v61 }
  0xec   :  { %v522_v9 = vmax.f32 %v521_v4, 0.0 }
  0xee   :  { %1578 = vmatmul.mubr.msk.f32.vlgmr.msra.gmra.mrb[6].mxu0 %vm523_vm4, %v522_v9  ;;  %1589 = vmatmul.mubr.msk.f32.vlgmr.msra.gmra.mrb[6].mxu1 %vm523_vm4, %v522_v9 }
  0xef   :  { %1719 = vmatpush3.bf16.msra.mxu0 %v2020_v5  ;;  %1725 = vmatpush3.bf16.msra.mxu1 %v2022_v7 }
  0xf0   :  { %1720 = vmatprep.subr.bf16.mxu0 %v1781_v10  ;;  %1726 = vmatprep.subr.bf16.mxu1 %v1781_v10 }
  0xf1   :  { %1599 = vmatprep.mubr.msk.f32.mxu0 %vm1780_vm2, %v1779_v0  ;;  %1610 = vmatprep.mubr.msk.f32.mxu1 %vm1780_vm2, %v1779_v0 }
  0xf3   :  { %1722 = vmatpush3.bf16.msra.mxu0 %v2040_v16  ;;  %1728 = vmatpush3.bf16.msra.mxu1 %v2042_v17 }
  0xf4   :  { %1729 = vmatprep.subr.bf16.mxu0 %v1781_v10  ;;  %1732 = vmatprep.subr.bf16.mxu1 %v1781_v10 }
  0xf6   :  { %1600 = vmatmul.mubr.msk.f32.vlgmr.msra.gmra.mrb[8].mxu0 %vm523_vm4, %v522_v9  ;;  %1611 = vmatmul.mubr.msk.f32.vlgmr.msra.gmra.mrb[8].mxu1 %vm523_vm4, %v522_v9 }
  0xf7   :  { %1731 = vmatpush3.bf16.msra.mxu0 %v1851_v6  ;;  %1734 = vmatpush3.bf16.msra.mxu1 %v1867_v11  ;;  %v599_v6 = vpop.permute.xlu1 %598 }
  0xf8   :  { %1617 = vmatprep.subr.mxu0 %v1779_v0  ;;  %1626 = vmatprep.subr.mxu1 %v1779_v0 }
  0xf9   :  { %1619 = vmatprep.mubr.msk.f32.mxu0 %vm1780_vm2, %v1779_v0  ;;  %1628 = vmatprep.mubr.msk.f32.mxu1 %vm1780_vm2, %v1779_v0 }
  0xfb   :  { %1618 = vmatpush3.msra.mxu0 %v1886_v15  ;;  %1627 = vmatpush3.msra.mxu1 %v1903_v20  ;;  %v751_v27 = vpop.permute.xlu1 %750 }
  0xfc   :  { %1620 = vmatmul.mubr.msk.f32.vlgmr.msra.gmra.mrb[10].mxu0 %vm214_vm3, %v835_v22  ;;  %1629 = vmatmul.mubr.msk.f32.vlgmr.msra.gmra.mrb[10].mxu1 %vm214_vm3, %v835_v22 }
  0xfd   :  { %1735 = vmatprep.subr.bf16.mxu0 %v1781_v10  ;;  %1738 = vmatprep.subr.bf16.mxu1 %v1781_v10 }
  0xfe   :  { %1737 = vmatpush3.bf16.msra.mxu0 %v1897_v19  ;;  %1740 = vmatpush3.bf16.msra.mxu1 %v1908_v21 }
  0xff   :  { %1635 = vmatprep.subr.mxu0 %v1779_v0  ;;  %1644 = vmatprep.subr.mxu1 %v1779_v0 }
 0x100   :  { %1637 = vmatprep.mubr.msk.f32.mxu0 %vm1780_vm2, %v1779_v0  ;;  %1646 = vmatprep.mubr.msk.f32.mxu1 %vm1780_vm2, %v1779_v0 }
 0x102   :  { %1636 = vmatpush3.msra.mxu0 %v1919_v23  ;;  %1645 = vmatpush3.msra.mxu1 %v1929_v24  ;;  %v675_v23 = vpop.permute.xlu0 %674 }
 0x103   :  { %1638 = vmatmul.mubr.msk.f32.vlgmr.msra.gmra.mrb[12].mxu0 %vm214_vm3, %v835_v22  ;;  %1647 = vmatmul.mubr.msk.f32.vlgmr.msra.gmra.mrb[12].mxu1 %vm214_vm3, %v835_v22 }
 0x104   :  { %1741 = vmatprep.subr.bf16.mxu0 %v1781_v10  ;;  %1747 = vmatprep.subr.bf16.mxu1 %v1781_v10 }
 0x105   :  { %1743 = vmatpush3.bf16.msra.mxu0 %v1960_v31  ;;  %1749 = vmatpush3.bf16.msra.mxu1 %v1965_v33 }
 0x106   :  { %1744 = vmatprep.subr.bf16.mxu0 %v1781_v10  ;;  %1750 = vmatprep.subr.bf16.mxu1 %v1781_v10  ;;  %v827_v28 = vpop.permute.xlu0 %826 }
 0x107   :  { %1657 = vmatprep.mubr.msk.f32.mxu0 %vm1780_vm2, %v1779_v0  ;;  %1668 = vmatprep.mubr.msk.f32.mxu1 %vm1780_vm2, %v1779_v0 }
 0x109   :  { %1746 = vmatpush3.bf16.msra.mxu0 %v1980_v37  ;;  %1752 = vmatpush3.bf16.msra.mxu1 %v1985_v39 }
 0x10a   :  { %1753 = vmatprep.subr.bf16.mxu0 %v1781_v10  ;;  %1759 = vmatprep.subr.bf16.mxu1 %v1781_v10 }
 0x1c1   :  { %v593_v11 = vpop.f32.mrb[6].mxu0  ;;  %v669_v15 = vpop.f32.mrb[6].mxu1 }
 0x1c2   :  { %v601_v19 = vmul.f32 %v599_v6, %v593_v11  ;;  %v1579_v20 = vpop.f32.mrb[7].mxu0  ;;  %v1590_v21 = vpop.f32.mrb[7].mxu1  ;;  %v677_v25 = vmul.f32 %v675_v23, %v669_v15 }
 0x1c4   :  { %v602_v24 = vadd.f32 %v601_v19, %v1993_v42 }
 0x1c6   :  { %v678_v26 = vadd.f32 %v677_v25, %v602_v24 }
 0x1c9   :  { %v745_v29 = vpop.f32.mrb[8].mxu0  ;;  %v821_v30 = vpop.f32.mrb[8].mxu1 }
 0x1ca   :  { %v753_v31 = vmul.f32 %v751_v27, %v745_v29  ;;  %v1601_v32 = vpop.f32.mrb[9].mxu0  ;;  %v1612_v33 = vpop.f32.mrb[9].mxu1  ;;  %v829_v35 = vmul.f32 %v827_v28, %v821_v30 }
 0x1cc   :  { %v754_v34 = vadd.f32 %v753_v31, %v678_v26 }
 0x1ce   :  { %v830_v36 = vadd.f32 %v829_v35, %v754_v34 }
 0x1cf   :  { %v905_v37 = vpop.f32.mrb[10].mxu0  ;;  %v977_v38 = vpop.f32.mrb[10].mxu1 }
 0x1d0   :  { %832 = vst.msk [vmem:[%s2135_s7] sm:$0xff] %vm831_vm5, %v830_v36  ;;  %v909_v39 = vmul.f32 %v905_v37, %v1995_v43  ;;  %v1621_v41 = vpop.f32.mrb[11].mxu0  ;;  %v1630_v44 = vpop.f32.mrb[11].mxu1  ;;  %v981_v47 = vmul.f32 %v977_v38, %v2000_v49 }
 0x1d2   :  { %v910_v45 = vadd.f32 %v909_v39, %v1991_v40 }
 0x1d4   :  { %v982_v48 = vadd.f32 %v981_v47, %v910_v45 }
 0x1d6   :  { %v1049_v50 = vpop.f32.mrb[12].mxu0  ;;  %v1121_v51 = vpop.f32.mrb[12].mxu1 }
 0x1d7   :  { %v1053_v52 = vmul.f32 %v1049_v50, %v1997_v46  ;;  %v1639_v53 = vpop.f32.mrb[13].mxu0  ;;  %v1648_v54 = vpop.f32.mrb[13].mxu1  ;;  %v1125_v57 = vmul.f32 %v1121_v51, %v2004_v56 }
 0x1d9   :  { %v1054_v55 = vadd.f32 %v1053_v52, %v982_v48 }
 0x1db   :  { %v1126_v58 = vadd.f32 %v1125_v57, %v1054_v55 }
 0x1dd   :  { %v1127_v59 = vmax.f32 %v1126_v58, 0.0 }
 0x1df   :  { %1658 = vmatmul.mubr.msk.f32.vlgmr.msra.gmra.mrb[14].mxu0 %vm523_vm4, %v1127_v59  ;;  %1669 = vmatmul.mubr.msk.f32.vlgmr.msra.gmra.mrb[14].mxu1 %vm523_vm4, %v1127_v59 }
 0x1e0   :  { %1755 = vmatpush3.bf16.msra.mxu0 %v2020_v5  ;;  %1761 = vmatpush3.bf16.msra.mxu1 %v2022_v7 }
 0x1e1   :  { %1756 = vmatprep.subr.bf16.mxu0 %v1781_v10  ;;  %1762 = vmatprep.subr.bf16.mxu1 %v1781_v10 }
 0x1e2   :  { %1679 = vmatprep.mubr.msk.f32.mxu0 %vm1780_vm2, %v1779_v0  ;;  %1690 = vmatprep.mubr.msk.f32.mxu1 %vm1780_vm2, %v1779_v0 }
 0x1e4   :  { %1758 = vmatpush3.bf16.msra.mxu0 %v2040_v16  ;;  %1764 = vmatpush3.bf16.msra.mxu1 %v2042_v17 }
 0x1e7   :  { %1680 = vmatmul.mubr.msk.f32.vlgmr.msra.gmra.mrb[16].mxu0 %vm523_vm4, %v1127_v59  ;;  %1691 = vmatmul.mubr.msk.f32.vlgmr.msra.gmra.mrb[16].mxu1 %vm523_vm4, %v1127_v59 }
 0x2b2   :  { %v1197_v40 = vpop.f32.mrb[14].mxu0  ;;  %v1269_v43 = vpop.f32.mrb[14].mxu1 }
 0x2b3   :  { %v1201_v46 = vmul.f32 %v1197_v40, %v599_v6  ;;  %v1659_v49 = vpop.f32.mrb[15].mxu0  ;;  %v1670_v56 = vpop.f32.mrb[15].mxu1  ;;  %v1273_v60 = vmul.f32 %v1269_v43, %v675_v23 }
 0x2b5   :  { %v1202_v10 = vadd.f32 %v1201_v46, %v1993_v42 }
 0x2b7   :  { %v1274_v61 = vadd.f32 %v1273_v60, %v1202_v10 }
 0x2ba   :  { %v1341_v62 = vpop.f32.mrb[16].mxu0  ;;  %v1413_v63 = vpop.f32.mrb[16].mxu1 }
 0x2bb   :  { %v1345_v0 = vmul.f32 %v1341_v62, %v751_v27  ;;  %v1681_v1 = vpop.f32.mrb[17].mxu0  ;;  %v1692_v2 = vpop.f32.mrb[17].mxu1  ;;  %v1417_v4 = vmul.f32 %v1413_v63, %v827_v28 }
 0x2bd   :  { %v1346_v3 = vadd.f32 %v1345_v0, %v1274_v61 }
 0x2bf   :  { %v1418_v5 = vadd.f32 %v1417_v4, %v1346_v3 }
 0x2c1   :  { %1446 = vst.msk [vmem:[%s2135_s7 + $0x8] sm:$0xff] %vm831_vm5, %v1418_v5 }

// kernel: sta_mgcn_forward.9
= control target key start
LH: loop header
LB: loop body
LE: loop exit
PB: predicated region body
PF: predicated region fallthrough
CT: control target
= control target key end

     0   :  { %v2987_v0 = vmov 0   ;;  %vm122_vm0 = vcmask 1041408   ;;  %v2988_v2 = vmov 0.0   ;;  %vm2989_vm1 = vmmov 0   ;;  %s2990_s29 = smov 127   ;;  %s3496_s2 = inlined_call_operand.vmem [shape: f32[8,1], index: 2, kind: input, shape index: {}]   ;;  %s3497_s0 = inlined_call_operand.vmem [shape: f32[2,3,8,2], index: 0, kind: input, shape index: {}]   ;;  %s3498_s4 = inlined_call_operand.vmem [shape: f32[2,1], index: 4, kind: input, shape index: {}]   ;;  %s3499_s3 = inlined_call_operand.vmem [shape: f32[2,8], index: 3, kind: input, shape index: {}]   ;;  %s3500_s5 = inlined_call_operand.vmem [shape: f32[3,3], index: 5, kind: input, shape index: {}]   ;;  %s3501_s6 = inlined_call_operand.vmem [shape: f32[3,3], index: 6, kind: input, shape index: {}]   ;;  %s3502_s1 = inlined_call_operand.vmem [shape: f32[3,8,8], index: 1, kind: input, shape index: {}]   ;;  %s3503_s7 = inlined_call_operand.vmem [shape: f32[3,2,16], index: 7, kind: input, shape index: {}]   ;;  %s3504_s9 = inlined_call_operand.vmem [shape: f32[3,16,8], index: 9, kind: input, shape index: {}]   ;;  %s3505_s10 = inlined_call_operand.vmem [shape: f32[3,16,8], index: 10, kind: input, shape index: {}]   ;;  %s3506_s8 = inlined_call_operand.vmem [shape: f32[3,1,16], index: 8, kind: input, shape index: {}]   ;;  %s3507_s13 = inlined_call_operand.vmem [shape: f32[2,8], index: 13, kind: input, shape index: {}]   ;;  %s3508_s12 = inlined_call_operand.vmem [shape: f32[1,8], index: 12, kind: input, shape index: {}]   ;;  %s3509_s11 = inlined_call_operand.vmem [shape: f32[1,8], index: 11, kind: input, shape index: {}]   ;;  %s3510_s14 = inlined_call_operand.vmem [shape: f32[1,8], index: 14, kind: input, shape index: {}]   ;;  %s3511_s15 = inlined_call_operand.vmem [shape: f32[1,8], index: 15, kind: input, shape index: {}]   ;;  %s3512_s16 = inlined_call_operand.vmem [shape: f32[1,8], index: 16, kind: input, shape index: {}]   ;;  %s3513_s17 = inlined_call_operand.vmem [shape: f32[2,3,8,8], index: 17, kind: output, shape index: {}]  }
   0x1   :  { %3515 = sst [smem:[#allocation2_spill]] %s3496_s2  ;;  %2946 = vset.pattern.permute.xlu0 %v2987_v0  ;;  %2764 = vmatprep.subr.mxu1 %v2988_v2  ;;  %v3089_v3 = vld [vmem:[%s3498_s4] sm:$0x3]  ;;  %vm91_vm2 = vcmask 15360   ;;  %vm116_vm3 = vcmask 1041409   ;;  %vm118_vm4 = vcmask 1042434  }
   0x2   :  { %3516 = sst [smem:[#allocation3_spill]] %s3497_s0  ;;  %s3517_s26 = sld [smem:[#allocation2_spill]]  ;;  %2766 = vmatprep.mubr.msk.f32.mxu1 %vm2989_vm1, %v2988_v2  ;;  %2765 = vmatpush3.msk.msra.mxu1 %vm122_vm0, %v3089_v3  ;;  %v3111_v5 = vld [vmem:[%s3499_s3] sm:$0x3]  ;;  %vm276_vm5 = vcmask 64512   ;;  %vm360_vm6 = vcmask 1042432  }
   0x3   :  { %2759 = vmatprep.subr.mxu0 %v2988_v2  ;;  %s3518_s30 = sld [smem:[#allocation3_spill]]  ;;  %2761 = vmatprep.mubr.msk.f32.mxu0 %vm2989_vm1, %v2988_v2  ;;  %vm356_vm7 = vcmask 23552   ;;  %vm434_vm8 = vcmask 2048   ;;  %vm947_vm9 = vcmask 130048  }
   0x4   :  { %2774 = vmatprep.subr.mxu1 %v2988_v2  ;;  %2760 = vmatpush3.msk.msra.mxu0 %vm122_vm0, %v3111_v5 }
   0x5   :  { %2769 = vmatprep.subr.mxu0 %v2988_v2 }
   0x8   :  { %v59_v1 = vld [vmem:[%s3517_s26] sm:$0xff] }
   0x9   :  { %85 = vperm.xlu0 %2946, %v59_v1   ;;  %v3099_v4 = vld [vmem:[%s3518_s30 + $0x8] sm:$0xff]  ;;  %v3119_v6 = vld [vmem:[%s3518_s30] sm:$0xff]  ;;  %v3124_v7 = vld [vmem:[%s3518_s30 + $0x10] sm:$0xff] }
   0xa   :  { %2767 = vmatmul.mubr.msk.f32.vlgmr.msra.gmra.mrb[0].mxu1 %vm91_vm2, %v3099_v4  ;;  %v3129_v8 = vld [vmem:[%s3518_s30 + $0x18] sm:$0xff]  ;;  %v3134_v9 = vld [vmem:[%s3518_s30 + $0x20] sm:$0xff]  ;;  %v3139_v10 = vld [vmem:[%s3518_s30 + $0x28] sm:$0xff] }
   0xb   :  { %2776 = vmatprep.mubr.msk.f32.mxu1 %vm2989_vm1, %v2988_v2 }
  0x88   :  { %v86_v11 = vpop.permute.xlu0 %85 }
  0x89   :  { %v88_v12 = vmul.f32 %v86_v11, %v3119_v6  ;;  %v90_v13 = vmul.f32 %v86_v11, %v3124_v7  ;;  %v1403_v14 = vmul.f32 %v3129_v8, %v86_v11  ;;  %v1404_v15 = vmul.f32 %v3134_v9, %v86_v11 }
  0x8a   :  { %v1405_v16 = vmul.f32 %v3139_v10, %v86_v11  ;;  %v89_v17 = vmul.f32 %v86_v11, %v3099_v4  ;;  %v62_v11 = vld [vmem:[%s3500_s5] sm:$0x7] }
  0x8b   :  { %v92_v18 = vsel %vm91_vm2, %v88_v12, 0.0  ;;  %v1406_v19 = vsel %vm91_vm2, %v1403_v14, 0.0  ;;  %v1413_v20 = vsel %vm91_vm2, %v1404_v15, 0.0  ;;  %v106_v21 = vsel %vm91_vm2, %v90_v13, 0.0  ;;  %273 = vrot.lane.b32.xlu0 %v62_v11, %s2990_s29 }
  0x8c   :  { %v93_v22 = vrot.slane %v92_v18, 4  ;;  %v1407_v23 = vrot.slane %v1406_v19, 4  ;;  %v1414_v24 = vrot.slane %v1413_v20, 4  ;;  %v1420_v25 = vsel %vm91_vm2, %v1405_v16, 0.0 }
  0x8d   :  { %v1421_v26 = vrot.slane %v1420_v25, 4  ;;  %v99_v27 = vsel %vm91_vm2, %v89_v17, 0.0  ;;  %v107_v28 = vrot.slane %v106_v21, 4 }
  0x8e   :  { %v1408_v29 = vadd.f32 %v1407_v23, %v1406_v19  ;;  %v1415_v30 = vadd.f32 %v1414_v24, %v1413_v20  ;;  %v100_v31 = vrot.slane %v99_v27, 4  ;;  %v94_v32 = vadd.f32 %v93_v22, %v92_v18 }
  0x8f   :  { %v108_v33 = vadd.f32 %v107_v28, %v106_v21  ;;  %v1422_v34 = vadd.f32 %v1421_v26, %v1420_v25  ;;  %v3171_v21 = vld [vmem:[%s3501_s6] sm:$0x7] }
  0x90   :  { %v101_v35 = vadd.f32 %v100_v31, %v99_v27  ;;  %v95_v36 = vrot.slane %v94_v32, 2  ;;  %v1409_v37 = vrot.slane %v1408_v29, 2  ;;  %v1416_v38 = vrot.slane %v1415_v30, 2 }
  0x91   :  { %v109_v39 = vrot.slane %v108_v33, 2  ;;  %v1423_v40 = vrot.slane %v1422_v34, 2 }
  0x92   :  { %v102_v41 = vrot.slane %v101_v35, 2  ;;  %v96_v42 = vadd.f32 %v95_v36, %v94_v32  ;;  %v1410_v43 = vadd.f32 %v1409_v37, %v1408_v29  ;;  %v1417_v44 = vadd.f32 %v1416_v38, %v1415_v30 }
  0x93   :  { %v110_v45 = vadd.f32 %v109_v39, %v108_v33  ;;  %v1424_v46 = vadd.f32 %v1423_v40, %v1422_v34 }
  0x94   :  { %v97_v47 = vrot.slane %v96_v42, 1  ;;  %v103_v48 = vadd.f32 %v102_v41, %v101_v35  ;;  %v1411_v49 = vrot.slane %v1410_v43, 1  ;;  %v1418_v50 = vrot.slane %v1417_v44, 1 }
  0x95   :  { %v111_v51 = vrot.slane %v110_v45, 1  ;;  %v1425_v52 = vrot.slane %v1424_v46, 1 }
  0x96   :  { %v98_v53 = vadd.f32 %v97_v47, %v96_v42  ;;  %v104_v54 = vrot.slane %v103_v48, 1  ;;  %v1412_v55 = vadd.f32 %v1411_v49, %v1410_v43  ;;  %v1419_v56 = vadd.f32 %v1418_v50, %v1417_v44 }
  0x97   :  { %v112_v57 = vadd.f32 %v111_v51, %v110_v45  ;;  %v1426_v58 = vadd.f32 %v1425_v52, %v1424_v46 }
  0x98   :  { %v105_v59 = vadd.f32 %v104_v54, %v103_v48  ;;  %v1430_v60 = vsel %vm116_vm3, %v1419_v56, %v1412_v55  ;;  %v3187_v54 = vld [vmem:[%s3502_s1] sm:$0xff]  ;;  %v3197_v55 = vld [vmem:[%s3502_s1 + $0x8] sm:$0xff]  ;;  %v3207_v56 = vld [vmem:[%s3502_s1 + $0x10] sm:$0xff] }
  0x99   :  { %v3153_v61 = vsel %vm118_vm4, %v1426_v58, %v1430_v60  ;;  %v3224_v58 = vld [vmem:[%s3503_s7 + $0x2] sm:$0x3] }
  0x9a   :  { %v117_v62 = vsel %vm116_vm3, %v105_v59, %v98_v53 }
  0x9b   :  { %v119_v63 = vsel %vm118_vm4, %v112_v57, %v117_v62  ;;  %v3216_v57 = vld [vmem:[%s3503_s7] sm:$0x3]  ;;  %v3235_v62 = vld [vmem:[%s3503_s7 + $0x4] sm:$0x3] }
  0x9c   :  { %2762 = vmatmul.mubr.msk.f32.vlgmr.msra.gmra.mrb[0].mxu0 %vm91_vm2, %v119_v63 }
  0x9d   :  { %2771 = vmatprep.mubr.msk.f32.mxu0 %vm2989_vm1, %v2988_v2 }
  0xdd   :  { %v268_v0 = vpop.f32.mrb[0].mxu1 }
  0xde   :  { %v2768_v1 = vpop.f32.mrb[1].mxu1  ;;  %2770 = vmatpush3.msra.mxu0 %v268_v0 }
  0xdf   :  { %2779 = vmatprep.subr.mxu0 %v2988_v2 }
  0xfd   :  { %v3165_v14 = vpop.permute.xlu0 %273 }
 0x16f   :  { %v192_v12 = vpop.f32.mrb[0].mxu0 }
 0x170   :  { %v2763_v13 = vpop.f32.mrb[1].mxu0  ;;  %2772 = vmatmul.mubr.msk.f32.vlgmr.msra.gmra.mrb[2].mxu0 %vm276_vm5, %v192_v12  ;;  %v70_v12 = vld [vmem:[%s3504_s9 + $0x10] sm:$0xff] }
 0x171   :  { %2781 = vmatprep.mubr.msk.f32.mxu0 %vm2989_vm1, %v2988_v2  ;;  %v71_v13 = vld [vmem:[%s3504_s9 + $0x18] sm:$0xff] }
 0x243   :  { %v346_v15 = vpop.f32.mrb[2].mxu0 }
 0x244   :  { %v347_v16 = vadd.f32 %v346_v15, %v3165_v14  ;;  %v2773_v17 = vpop.f32.mrb[3].mxu0  ;;  %v72_v15 = vld [vmem:[%s3505_s10 + $0x10] sm:$0xff] }
 0x245   :  { %v73_v17 = vld [vmem:[%s3505_s10 + $0x18] sm:$0xff] }
 0x246   :  { %v2632_v18 = vmul.f32 -1.442695, %v347_v16  ;;  %v3254_v16 = vpack.c.bf16 %v71_v13, %v70_v12 }
 0x248   :  { %2947 = vpow2.f32 %v2632_v18  ;;  %v2991_v18 = vmov 0.0|0.0  }
 0x252   :  { %v2948_v19 = vpop.eup %2947 }
 0x253   :  { %v353_v20 = vadd.f32 1.0, %v2948_v19  ;;  %v3261_v19 = vpack.c.bf16 %v73_v17, %v72_v15 }
 0x255   :  { %2949 = vrcp.f32 %v353_v20  ;;  %v3270_v20 = vld [vmem:[%s3506_s8] ss:$0 sm:$0xff] }
 0x25f   :  { %v2950_v22 = vpop.eup %2949 }
 0x260   :  { %2775 = vmatpush3.msk.msra.mxu1 %vm360_vm6, %v2950_v22 }
 0x261   :  { %2777 = vmatmul.mubr.msk.f32.vlgmr.msra.gmra.mrb[2].mxu1 %vm356_vm7, %v3171_v21  ;;  %2784 = vmatprep.subr.mxu1 %v2988_v2 }
 0x262   :  { %2786 = vmatprep.mubr.msk.f32.mxu1 %vm2989_vm1, %v2988_v2  ;;  %2785 = vmatpush3.msk.msra.mxu1 %vm122_vm0, %v3216_v57 }
 0x263   :  { %2794 = vmatprep.subr.mxu1 %v2988_v2 }
 0x334   :  { %v430_v23 = vpop.f32.mrb[2].mxu1 }
 0x335   :  { %v435_v24 = vsel %vm434_vm8, %v430_v23, -inf  ;;  %v2778_v25 = vpop.f32.mrb[3].mxu1 }
 0x336   :  { %v436_v26 = vrot.slane %v435_v24, 4 }
 0x338   :  { %v437_v27 = vmax.f32 %v435_v24, %v436_v26  ;;  %v3275_v24 = vld [vmem:[%s3506_s8 + $0x1] ss:$0 sm:$0xff] }
 0x33a   :  { %v438_v28 = vrot.slane %v437_v27, 2 }
 0x33c   :  { %v439_v29 = vmax.f32 %v437_v27, %v438_v28 }
 0x33e   :  { %v440_v30 = vrot.slane %v439_v29, 1 }
 0x340   :  { %v441_v31 = vmax.f32 %v439_v29, %v440_v30  ;;  %v3282_v29 = vld [vmem:[%s3506_s8 + $0x2] ss:$0 sm:$0xff] }
 0x342   :  { %v442_v32 = vsub.f32 %v430_v23, %v441_v31 }
 0x344   :  { %v443_v33 = vmul.f32 1.442695, %v442_v32 }
 0x346   :  { %2951 = vpow2.f32 %v443_v33 }
 0x350   :  { %v2952_v34 = vpop.eup %2951 }
 0x351   :  { %v445_v35 = vsel %vm434_vm8, %v2952_v34, 0.0 }
 0x352   :  { %v446_v36 = vrot.slane %v445_v35, 4 }
 0x354   :  { %v447_v37 = vadd.f32 %v446_v36, %v445_v35 }
 0x356   :  { %v448_v38 = vrot.slane %v447_v37, 2 }
 0x358   :  { %v449_v39 = vadd.f32 %v448_v38, %v447_v37  ;;  %v3288_v38 = vld [vmem:[%s3507_s13] sm:$0x3] }
 0x35a   :  { %v450_v40 = vrot.slane %v449_v39, 1 }
 0x35c   :  { %v451_v41 = vadd.f32 %v450_v40, %v449_v39 }
 0x35e   :  { %2953 = vrcp.f32 %v451_v41 }
 0x368   :  { %v2954_v42 = vpop.eup %2953 }
 0x369   :  { %v453_v43 = vmul.f32 %v2954_v42, %v2952_v34 }
 0x36b   :  { %2929 = vpush %v453_v43  ;;  %v459_v44 = vrot.slane %v453_v43, 1  ;;  %v465_v45 = vrot.slane %v453_v43, 2 }
 0x36d   :  { %2931 = vpush %v459_v44 }
 0x36e   :  { %2933 = vpush %v465_v45 }
 0x39c   :  { %s2930_s6 = spop %2929 }
 0x39d   :  { %v456_v46 = vstv %s2930_s6 }
 0x39e   :  { %s2932_s30 = spop %2931  ;;  %v458_v48 = vmul.f32 %v456_v46, %v3119_v6 }
 0x39f   :  { %v461_v47 = vstv %s2932_s30  ;;  %s2934_s4 = spop %2933 }
 0x3a0   :  { %v463_v49 = vmul.f32 %v461_v47, %v3099_v4  ;;  %v467_v50 = vstv %s2934_s4 }
 0x3a1   :  { %v469_v52 = vmul.f32 %v467_v50, %v3124_v7 }
 0x3a2   :  { %v464_v51 = vadd.f32 %v463_v49, %v458_v48  ;;  %v3340_v48 = vld [vmem:[%s3509_s11] ss:$0 sm:$0xff] }
 0x3a4   :  { %v470_v53 = vadd.f32 %v469_v52, %v464_v51 }
 0x3a6   :  { %2780 = vmatpush3.msra.mxu0 %v470_v53 }
 0x3a7   :  { %2782 = vmatmul.mubr.msk.f32.vlgmr.msra.gmra.mrb[4].mxu0 %vm276_vm5, %v3187_v54  ;;  %2789 = vmatprep.subr.mxu0 %v2988_v2 }
 0x3a8   :  { %2790 = vmatpush3.msra.mxu0 %v470_v53  ;;  %2791 = vmatprep.mubr.msk.f32.mxu0 %vm2989_vm1, %v2988_v2 }
 0x3a9   :  { %2799 = vmatprep.subr.mxu0 %v2988_v2 }
 0x3ab   :  { %2792 = vmatmul.mubr.msk.f32.vlgmr.msra.gmra.mrb[6].mxu0 %vm276_vm5, %v3197_v55 }
 0x3ac   :  { %2800 = vmatpush3.msra.mxu0 %v470_v53  ;;  %2801 = vmatprep.mubr.msk.f32.mxu0 %vm2989_vm1, %v2988_v2 }
 0x3ad   :  { %2917 = vmatprep.subr.bf16.mxu0 %v2991_v18 }
 0x3af   :  { %2802 = vmatmul.mubr.msk.f32.vlgmr.msra.gmra.mrb[8].mxu0 %vm276_vm5, %v3207_v56 }
 0x3b0   :  { %2813 = vmatprep.mubr.msk.f32.mxu0 %vm2989_vm1, %v2988_v2  ;;  %2919 = vmatpush3.bf16.msra.mxu0 %v3254_v16 }
 0x3b1   :  { %2823 = vmatprep.subr.mxu0 %v2988_v2 }
 0x47a   :  { %v540_v59 = vpop.f32.mrb[4].mxu0 }
 0x47b   :  { %v2783_v60 = vpop.f32.mrb[5].mxu0  ;;  %2787 = vmatmul.mubr.msk.f32.vlgmr.msra.gmra.mrb[4].mxu1 %vm91_vm2, %v540_v59  ;;  %v3350_v59 = vld [vmem:[%s3510_s14] ss:$0 sm:$0xff] }
 0x47c   :  { %2795 = vmatpush3.msk.msra.mxu1 %vm122_vm0, %v3224_v58  ;;  %2796 = vmatprep.mubr.msk.f32.mxu1 %vm2989_vm1, %v2988_v2 }
 0x47d   :  { %2804 = vmatprep.subr.mxu1 %v2988_v2 }
 0x47e   :  { %v696_v63 = vpop.f32.mrb[6].mxu0 }
 0x47f   :  { %v2793_v0 = vpop.f32.mrb[7].mxu0  ;;  %2797 = vmatmul.mubr.msk.f32.vlgmr.msra.gmra.mrb[6].mxu1 %vm91_vm2, %v696_v63 }
 0x480   :  { %2805 = vmatpush3.msk.msra.mxu1 %vm122_vm0, %v3235_v62  ;;  %2806 = vmatprep.mubr.msk.f32.mxu1 %vm2989_vm1, %v2988_v2 }
 0x481   :  { %2920 = vmatprep.subr.bf16.mxu1 %v2991_v18 }
 0x482   :  { %v853_v1 = vpop.f32.mrb[8].mxu0 }
 0x483   :  { %v2803_v11 = vpop.f32.mrb[9].mxu0  ;;  %2807 = vmatmul.mubr.msk.f32.vlgmr.msra.gmra.mrb[8].mxu1 %vm91_vm2, %v853_v1 }
 0x484   :  { %2820 = vmatprep.mubr.msk.f32.mxu1 %vm2989_vm1, %v2988_v2  ;;  %2922 = vmatpush3.bf16.msra.mxu1 %v3261_v19 }
 0x485   :  { %2828 = vmatprep.subr.mxu1 %v2988_v2 }
 0x54e   :  { %v622_v22 = vpop.f32.mrb[4].mxu1 }
 0x54f   :  { %v2788_v23 = vpop.f32.mrb[5].mxu1  ;;  %v623_v25 = vadd.f32 %v3270_v20, %v622_v22 }
 0x551   :  { %v626_v30 = vmax.f32 %v623_v25, 0.0 }
 0x552   :  { %v778_v26 = vpop.f32.mrb[6].mxu1 }
 0x553   :  { %v779_v27 = vadd.f32 %v3275_v24, %v778_v26  ;;  %v2798_v28 = vpop.f32.mrb[7].mxu1 }
 0x555   :  { %v782_v31 = vmax.f32 %v779_v27, 0.0 }
 0x556   :  { %v935_v32 = vpop.f32.mrb[8].mxu1 }
 0x557   :  { %v783_v33 = vadd.f32 %v782_v31, %v626_v30  ;;  %v936_v34 = vadd.f32 %v3282_v29, %v935_v32  ;;  %v2808_v35 = vpop.f32.mrb[9].mxu1 }
 0x559   :  { %v939_v36 = vmax.f32 %v936_v34, 0.0 }
 0x55b   :  { %v940_v37 = vadd.f32 %v939_v36, %v783_v33 }
 0x55d   :  { %2814 = vmatmul.mubr.msk.f32.vlgmr.msra.gmra.mrb[10].mxu0 %vm947_vm9, %v940_v37  ;;  %2821 = vmatmul.mubr.msk.f32.vlgmr.msra.gmra.mrb[10].mxu1 %vm947_vm9, %v940_v37 }
 0x55e   :  { %2824 = vmatpush3.msk.msra.mxu0 %vm122_vm0, %v3288_v38  ;;  %2825 = vmatprep.mubr.msk.f32.mxu0 %vm2989_vm1, %v2988_v2 }
 0x55f   :  { %2829 = vmatpush3.msk.msra.mxu1 %vm122_vm0, %v3288_v38  ;;  %2830 = vmatprep.mubr.msk.f32.mxu1 %vm2989_vm1, %v2988_v2 }
 0x560   :  { %2833 = vmatprep.subr.mxu0 %v2988_v2  ;;  %2838 = vmatprep.subr.mxu1 %v2988_v2 }
 0x561   :  { %2826 = vmatmul.mubr.msk.f32.vlgmr.msra.gmra.mrb[12].mxu0 %vm91_vm2, %v3119_v6  ;;  %2831 = vmatmul.mubr.msk.f32.vlgmr.msra.gmra.mrb[12].mxu1 %vm91_vm2, %v3099_v4  ;;  %v3334_v4 = vld [vmem:[%s3508_s12] ss:$0 sm:$0xff] }
 0x562   :  { %2834 = vmatpush3.msk.msra.mxu0 %vm122_vm0, %v3288_v38  ;;  %2835 = vmatprep.mubr.msk.f32.mxu0 %vm2989_vm1, %v2988_v2 }
 0x563   :  { %2839 = vmatpush3.msk.msra.mxu1 %vm122_vm0, %v3111_v5  ;;  %2840 = vmatprep.mubr.msk.f32.mxu1 %vm2989_vm1, %v2988_v2 }
 0x564   :  { %2843 = vmatprep.subr.mxu0 %v2988_v2  ;;  %2848 = vmatprep.subr.mxu1 %v2988_v2 }
 0x565   :  { %2836 = vmatmul.mubr.msk.f32.vlgmr.msra.gmra.mrb[14].mxu0 %vm91_vm2, %v3124_v7  ;;  %2841 = vmatmul.mubr.msk.f32.vlgmr.msra.gmra.mrb[14].mxu1 %vm91_vm2, %v3153_v61 }
 0x566   :  { %2844 = vmatpush3.msk.msra.mxu0 %vm122_vm0, %v3089_v3  ;;  %2845 = vmatprep.mubr.msk.f32.mxu0 %vm2989_vm1, %v2988_v2 }
 0x567   :  { %2850 = vmatprep.mubr.msk.f32.mxu1 %vm2989_vm1, %v2988_v2  ;;  %2853 = vmatprep.subr.mxu0 %v2988_v2 }
 0x569   :  { %2846 = vmatmul.mubr.msk.f32.vlgmr.msra.gmra.mrb[16].mxu0 %vm91_vm2, %v3134_v9 }
 0x56a   :  { %2855 = vmatprep.mubr.msk.f32.mxu0 %vm2989_vm1, %v2988_v2 }
 0x630   :  { %v1017_v3 = vpop.f32.mrb[10].mxu0  ;;  %v1094_v5 = vpop.f32.mrb[10].mxu1 }
 0x631   :  { %v1095_v6 = vadd.f32 %v3334_v4, %v1094_v5  ;;  %v2815_v7 = vpop.f32.mrb[11].mxu0  ;;  %v2822_v61 = vpop.f32.mrb[11].mxu1  ;;  %v1018_v50 = vadd.f32 %v3340_v48, %v1017_v3 }
 0x633   :  { %v2651_v39 = vmul.f32 -1.442695, %v1095_v6 }
 0x634   :  { %v1183_v40 = vpop.f32.mrb[12].mxu0  ;;  %v1284_v41 = vpop.f32.mrb[12].mxu1 }
 0x635   :  { %2955 = vpow2.f32 %v2651_v39  ;;  %v2827_v42 = vpop.f32.mrb[13].mxu0  ;;  %v2832_v43 = vpop.f32.mrb[13].mxu1  ;;  %v1184_v0 = vadd.f32 %v3350_v59, %v1183_v40  ;;  %v1285_v11 = vadd.f32 %v3350_v59, %v1284_v41 }
 0x636   :  { %2957 = vtanh.f32 %v1018_v50 }
 0x638   :  { %v1376_v44 = vpop.f32.mrb[14].mxu0  ;;  %v1500_v45 = vpop.f32.mrb[14].mxu1 }
 0x639   :  { %v2837_v46 = vpop.f32.mrb[15].mxu0  ;;  %v2842_v47 = vpop.f32.mrb[15].mxu1  ;;  %v1377_v12 = vadd.f32 %v3350_v59, %v1376_v44 }
 0x63c   :  { %v1573_v49 = vpop.f32.mrb[16].mxu0 }
 0x63d   :  { %v2847_v51 = vpop.f32.mrb[17].mxu0  ;;  %2849 = vmatpush3.msra.mxu1 %v1573_v49 }
 0x63e   :  { %2851 = vmatmul.mubr.msk.f32.vlgmr.msra.gmra.mrb[16].mxu1 %vm276_vm5, %v1500_v45  ;;  %2858 = vmatprep.subr.mxu1 %v2988_v2 }
 0x63f   :  { %v2956_v52 = vpop.eup %2955  ;;  %2860 = vmatprep.mubr.msk.f32.mxu1 %vm2989_vm1, %v2988_v2 }
 0x640   :  { %v1101_v53 = vadd.f32 1.0, %v2956_v52  ;;  %v2958_v60 = vpop.eup %2957 }
 0x642   :  { %2959 = vrcp.f32 %v1101_v53 }
 0x64c   :  { %v2960_v63 = vpop.eup %2959 }
 0x64d   :  { %v1104_v1 = vmul.f32 %v2960_v63, %v2958_v60 }
 0x64f   :  { %v3355_v13 = vadd.f32 %v1285_v11, %v1104_v1  ;;  %v3357_v15 = vadd.f32 %v1377_v12, %v1104_v1  ;;  %v3359_v17 = vadd.f32 %v1184_v0, %v1104_v1 }
 0x651   :  { %v1188_v22 = vmax.f32 %v3359_v17, 0.0  ;;  %v1381_v23 = vmax.f32 %v3357_v15, 0.0  ;;  %v1289_v27 = vmax.f32 %v3355_v13, 0.0 }
 0x653   :  { %v1189_v25 = vsel %vm276_vm5, %v1188_v22, 0.0  ;;  %v1382_v26 = vsel %vm276_vm5, %v1381_v23, 0.0  ;;  %v1290_v28 = vsel %vm276_vm5, %v1289_v27, 0.0 }
 0x654   :  { %1190 = vadd.xlane.f32.xlu1 %v1189_v25  ;;  %1383 = vadd.xlane.f32.xlu0 %v1382_v26 }
 0x658   :  { %1291 = vadd.xlane.f32.xlu1 %v1290_v28 }
 0x711   :  { %v1646_v30 = vpop.f32.mrb[16].mxu1 }
 0x712   :  { %v1647_v31 = vadd.f32 %v1646_v30, %v3165_v14  ;;  %v2852_v32 = vpop.f32.mrb[17].mxu1 }
 0x714   :  { %v2671_v33 = vmul.f32 -1.442695, %v1647_v31 }
 0x716   :  { %2961 = vpow2.f32 %v2671_v33 }
 0x720   :  { %v2962_v34 = vpop.eup %2961 }
 0x721   :  { %v1653_v35 = vadd.f32 1.0, %v2962_v34 }
 0x723   :  { %2963 = vrcp.f32 %v1653_v35 }
 0x72d   :  { %v2964_v36 = vpop.eup %2963 }
 0x72e   :  { %2854 = vmatpush3.msk.msra.mxu0 %vm360_vm6, %v2964_v36 }
 0x72f   :  { %2856 = vmatmul.mubr.msk.f32.vlgmr.msra.gmra.mrb[18].mxu0 %vm356_vm7, %v3171_v21  ;;  %2863 = vmatprep.subr.mxu0 %v2988_v2 }
 0x730   :  { %2864 = vmatpush3.msk.msra.mxu0 %vm122_vm0, %v3216_v57  ;;  %2865 = vmatprep.mubr.msk.f32.mxu0 %vm2989_vm1, %v2988_v2 }
 0x731   :  { %2873 = vmatprep.subr.mxu0 %v2988_v2 }
 0x802   :  { %v1725_v14 = vpop.f32.mrb[18].mxu0 }
 0x803   :  { %v1729_v37 = vsel %vm434_vm8, %v1725_v14, -inf  ;;  %v2857_v3 = vpop.f32.mrb[19].mxu0 }
 0x804   :  { %v1730_v5 = vrot.slane %v1729_v37, 4 }
 0x806   :  { %v1731_v6 = vmax.f32 %v1729_v37, %v1730_v5 }
 0x808   :  { %v1732_v7 = vrot.slane %v1731_v6, 2 }
 0x80a   :  { %v1733_v61 = vmax.f32 %v1731_v6, %v1732_v7 }
 0x80c   :  { %v1734_v39 = vrot.slane %v1733_v61, 1 }
 0x80e   :  { %v1735_v21 = vmax.f32 %v1733_v61, %v1734_v39 }
 0x810   :  { %v1736_v40 = vsub.f32 %v1725_v14, %v1735_v21 }
 0x812   :  { %v1737_v41 = vmul.f32 1.442695, %v1736_v40 }
 0x814   :  { %2965 = vpow2.f32 %v1737_v41 }
 0x81e   :  { %v2966_v42 = vpop.eup %2965 }
 0x81f   :  { %v1739_v57 = vsel %vm434_vm8, %v2966_v42, 0.0 }
 0x820   :  { %v1740_v43 = vrot.slane %v1739_v57, 4 }
 0x822   :  { %v1741_v44 = vadd.f32 %v1740_v43, %v1739_v57 }
 0x824   :  { %v1742_v45 = vrot.slane %v1741_v44, 2 }
 0x826   :  { %v1743_v46 = vadd.f32 %v1742_v45, %v1741_v44 }
 0x828   :  { %v1744_v47 = vrot.slane %v1743_v46, 1 }
 0x82a   :  { %v1745_v49 = vadd.f32 %v1744_v47, %v1743_v46  ;;  %v1191_v46 = vpop.xlane.xlu1 %1190 }
 0x82c   :  { %2967 = vrcp.f32 %v1745_v49 }
 0x836   :  { %v2968_v50 = vpop.eup %2967 }
 0x837   :  { %v1747_v51 = vmul.f32 %v2968_v50, %v2966_v42 }
 0x839   :  { %2935 = vpush %v1747_v51  ;;  %v1753_v52 = vrot.slane %v1747_v51, 1  ;;  %v1759_v53 = vrot.slane %v1747_v51, 2 }
 0x83b   :  { %2937 = vpush %v1753_v52  ;;  %v1193_v52 = vmul.f32 0.125, %v1191_v46 }
 0x83c   :  { %2939 = vpush %v1759_v53 }
 0x86a   :  { %s2936_s11 = spop %2935 }
 0x86b   :  { %v1750_v60 = vstv %s2936_s11 }
 0x86c   :  { %s2938_s14 = spop %2937  ;;  %v1752_v0 = vmul.f32 %v3129_v8, %v1750_v60  ;;  %v1292_v60 = vpop.xlane.xlu1 %1291 }
 0x86d   :  { %v1755_v63 = vstv %s2938_s14  ;;  %s2940_s24 = spop %2939 }
 0x86e   :  { %v1757_v1 = vmul.f32 %v3134_v9, %v1755_v63  ;;  %v1761_v11 = vstv %s2940_s24  ;;  %v1194_v63 = vsub.f32 %v1188_v22, %v1193_v52 }
 0x86f   :  { %v1763_v25 = vmul.f32 %v3139_v10, %v1761_v11  ;;  %v1384_v11 = vpop.xlane.xlu0 %1383 }
 0x870   :  { %v1758_v12 = vadd.f32 %v1757_v1, %v1752_v0  ;;  %v1293_v0 = vmul.f32 0.125, %v1292_v60 }
 0x872   :  { %v1764_v26 = vadd.f32 %v1763_v25, %v1758_v12  ;;  %v1385_v12 = vmul.f32 0.125, %v1384_v11  ;;  %v1294_v25 = vsub.f32 %v1289_v27, %v1293_v0 }
 0x874   :  { %2859 = vmatpush3.msra.mxu1 %v1764_v26  ;;  %v1295_v22 = vmul.f32 %v1294_v25, %v1294_v25 }
 0x875   :  { %2861 = vmatmul.mubr.msk.f32.vlgmr.msra.gmra.mrb[18].mxu1 %vm276_vm5, %v3187_v54  ;;  %2868 = vmatprep.subr.mxu1 %v2988_v2 }
 0x876   :  { %2869 = vmatpush3.msra.mxu1 %v1764_v26  ;;  %2870 = vmatprep.mubr.msk.f32.mxu1 %vm2989_vm1, %v2988_v2 }
 0x877   :  { %2878 = vmatprep.subr.mxu1 %v2988_v2 }
 0x879   :  { %2871 = vmatmul.mubr.msk.f32.vlgmr.msra.gmra.mrb[20].mxu1 %vm276_vm5, %v3197_v55 }
 0x87a   :  { %2879 = vmatpush3.msra.mxu1 %v1764_v26  ;;  %2880 = vmatprep.mubr.msk.f32.mxu1 %vm2989_vm1, %v2988_v2 }
 0x87b   :  { %2923 = vmatprep.subr.bf16.mxu1 %v2991_v18 }
 0x87d   :  { %2881 = vmatmul.mubr.msk.f32.vlgmr.msra.gmra.mrb[22].mxu1 %vm276_vm5, %v3207_v56 }
 0x87e   :  { %2925 = vmatpush3.bf16.msra.mxu1 %v3254_v16  ;;  %2892 = vmatprep.mubr.msk.f32.mxu1 %vm2989_vm1, %v2988_v2 }
 0x87f   :  { %2902 = vmatprep.subr.mxu1 %v2988_v2 }
 0x948   :  { %v1831_v54 = vpop.f32.mrb[18].mxu1 }
 0x949   :  { %2866 = vmatmul.mubr.msk.f32.vlgmr.msra.gmra.mrb[20].mxu0 %vm91_vm2, %v1831_v54  ;;  %v2862_v55 = vpop.f32.mrb[19].mxu1  ;;  %v1195_v54 = vmul.f32 %v1194_v63, %v1194_v63 }
 0x94a   :  { %2874 = vmatpush3.msk.msra.mxu0 %vm122_vm0, %v3224_v58  ;;  %2875 = vmatprep.mubr.msk.f32.mxu0 %vm2989_vm1, %v2988_v2  ;;  %v1386_v55 = vsub.f32 %v1381_v23, %v1385_v12 }
 0x94b   :  { %2883 = vmatprep.subr.mxu0 %v2988_v2  ;;  %v1196_v17 = vsel %vm276_vm5, %v1195_v54, 0.0 }
 0x94c   :  { %v1975_v56 = vpop.f32.mrb[20].mxu1 }
 0x94d   :  { %2876 = vmatmul.mubr.msk.f32.vlgmr.msra.gmra.mrb[22].mxu0 %vm91_vm2, %v1975_v56  ;;  %v2872_v16 = vpop.f32.mrb[21].mxu1  ;;  %v1296_v56 = vsel %vm276_vm5, %v1295_v22, 0.0 }
 0x94e   :  { %2884 = vmatpush3.msk.msra.mxu0 %vm122_vm0, %v3235_v62  ;;  %2885 = vmatprep.mubr.msk.f32.mxu0 %vm2989_vm1, %v2988_v2  ;;  %v1387_v16 = vmul.f32 %v1386_v55, %v1386_v55 }
 0x94f   :  { %2926 = vmatprep.subr.bf16.mxu0 %v2991_v18 }
 0x950   :  { %v2120_v28 = vpop.f32.mrb[22].mxu1 }
 0x951   :  { %2886 = vmatmul.mubr.msk.f32.vlgmr.msra.gmra.mrb[24].mxu0 %vm91_vm2, %v2120_v28  ;;  %v2882_v58 = vpop.f32.mrb[23].mxu1  ;;  %v1388_v28 = vsel %vm276_vm5, %v1387_v16, 0.0 }
 0x952   :  { %2928 = vmatpush3.bf16.msra.mxu0 %v3261_v19  ;;  %2899 = vmatprep.mubr.msk.f32.mxu0 %vm2989_vm1, %v2988_v2 }
 0x953   :  { %2907 = vmatprep.subr.mxu0 %v2988_v2 }
 0xa1c   :  { %v1904_v30 = vpop.f32.mrb[20].mxu0 }
 0xa1d   :  { %v2867_v31 = vpop.f32.mrb[21].mxu0  ;;  %v1905_v62 = vadd.f32 %v3270_v20, %v1904_v30 }
 0xa1f   :  { %v1908_v18 = vmax.f32 %v1905_v62, 0.0 }
 0xa20   :  { %v2048_v32 = vpop.f32.mrb[22].mxu0 }
 0xa21   :  { %v2049_v33 = vadd.f32 %v3275_v24, %v2048_v32  ;;  %v2877_v34 = vpop.f32.mrb[23].mxu0 }
 0xa23   :  { %v2052_v35 = vmax.f32 %v2049_v33, 0.0 }
 0xa24   :  { %v2193_v36 = vpop.f32.mrb[24].mxu0 }
 0xa25   :  { %v2053_v14 = vadd.f32 %v2052_v35, %v1908_v18  ;;  %v2194_v37 = vadd.f32 %v3282_v29, %v2193_v36  ;;  %v2887_v19 = vpop.f32.mrb[25].mxu0 }
 0xa27   :  { %v2197_v3 = vmax.f32 %v2194_v37, 0.0 }
 0xa29   :  { %v2198_v5 = vadd.f32 %v2197_v3, %v2053_v14 }
 0xa2b   :  { %2893 = vmatmul.mubr.msk.f32.vlgmr.msra.gmra.mrb[24].mxu1 %vm947_vm9, %v2198_v5  ;;  %2900 = vmatmul.mubr.msk.f32.vlgmr.msra.gmra.mrb[26].mxu0 %vm947_vm9, %v2198_v5 }
 0xa2c   :  { %2903 = vmatpush3.msk.msra.mxu1 %vm122_vm0, %v3288_v38  ;;  %2904 = vmatprep.mubr.msk.f32.mxu1 %vm2989_vm1, %v2988_v2 }
 0xa2d   :  { %2912 = vmatprep.subr.mxu1 %v2988_v2  ;;  %2908 = vmatpush3.msk.msra.mxu0 %vm122_vm0, %v3288_v38 }
 0xa2e   :  { %2909 = vmatprep.mubr.msk.f32.mxu0 %vm2989_vm1, %v2988_v2 }
 0xa2f   :  { %2905 = vmatmul.mubr.msk.f32.vlgmr.msra.gmra.mrb[26].mxu1 %vm91_vm2, %v3129_v8  ;;  %2910 = vmatmul.mubr.msk.f32.vlgmr.msra.gmra.mrb[28].mxu0 %vm91_vm2, %v3134_v9 }
 0xa30   :  { %2913 = vmatpush3.msk.msra.mxu1 %vm122_vm0, %v3288_v38  ;;  %2914 = vmatprep.mubr.msk.f32.mxu1 %vm2989_vm1, %v2988_v2 }
 0xa33   :  { %2915 = vmatmul.mubr.msk.f32.vlgmr.msra.gmra.mrb[28].mxu1 %vm91_vm2, %v3139_v10 }
 0xafe   :  { %v2268_v20 = vpop.f32.mrb[24].mxu1  ;;  %v2339_v24 = vpop.f32.mrb[26].mxu0 }
 0xaff   :  { %v2340_v29 = vadd.f32 %v3334_v4, %v2339_v24  ;;  %v2894_v6 = vpop.f32.mrb[25].mxu1  ;;  %v2901_v7 = vpop.f32.mrb[27].mxu0  ;;  %v2269_v41 = vadd.f32 %v3340_v48, %v2268_v20 }
 0xb01   :  { %v2685_v61 = vmul.f32 -1.442695, %v2340_v29 }
 0xb02   :  { %v2419_v8 = vpop.f32.mrb[26].mxu1  ;;  %v2508_v39 = vpop.f32.mrb[28].mxu0 }
 0xb03   :  { %2969 = vpow2.f32 %v2685_v61  ;;  %v2906_v9 = vpop.f32.mrb[27].mxu1  ;;  %v2911_v21 = vpop.f32.mrb[29].mxu0  ;;  %v2420_v57 = vadd.f32 %v3350_v59, %v2419_v8  ;;  %v2509_v4 = vadd.f32 %v3350_v59, %v2508_v39  ;;  %v2655_v8 = vld [vmem:[%s3511_s15] ss:$0 sm:$0xff] }
 0xb04   :  { %2971 = vtanh.f32 %v2269_v41  ;;  %v2656_v9 = vld [vmem:[%s3512_s16] ss:$0 sm:$0xff] }
 0xb06   :  { %v2600_v40 = vpop.f32.mrb[28].mxu1 }
 0xb07   :  { %v2916_v38 = vpop.f32.mrb[29].mxu1  ;;  %v2601_v43 = vadd.f32 %v3350_v59, %v2600_v40 }
 0xb0d   :  { %v2970_v2 = vpop.eup %2969 }
 0xb0e   :  { %v2346_v42 = vadd.f32 1.0, %v2970_v2  ;;  %v2972_v10 = vpop.eup %2971 }
 0xb10   :  { %2973 = vrcp.f32 %v2346_v42 }
 0xb1a   :  { %v2974_v44 = vpop.eup %2973 }
 0xb1b   :  { %v2349_v45 = vmul.f32 %v2974_v44, %v2972_v10 }
 0xb1d   :  { %v2423_v47 = vadd.f32 %v2420_v57, %v2349_v45  ;;  %v2512_v49 = vadd.f32 %v2509_v4, %v2349_v45  ;;  %v2604_v50 = vadd.f32 %v2601_v43, %v2349_v45 }
 0xb1f   :  { %v2424_v51 = vmax.f32 %v2423_v47, 0.0  ;;  %v2513_v53 = vmax.f32 %v2512_v49, 0.0  ;;  %v2605_v59 = vmax.f32 %v2604_v50, 0.0 }
 0xb21   :  { %v2425_v48 = vsel %vm276_vm5, %v2424_v51, 0.0  ;;  %v2514_v1 = vsel %vm276_vm5, %v2513_v53, 0.0  ;;  %v2606_v26 = vsel %vm276_vm5, %v2605_v59, 0.0 }
 0xb22   :  { %2426 = vadd.xlane.f32.xlu1 %v2425_v48 }
 0xb26   :  { %2515 = vadd.xlane.f32.xlu1 %v2514_v1 }
 0xb2a   :  { %2607 = vadd.xlane.f32.xlu1 %v2606_v26 }
 0xb2e   :  { %1197 = vadd.xlane.f32.xlu1 %v1196_v17 }
 0xb32   :  { %1297 = vadd.xlane.f32.xlu1 %v1296_v56 }
 0xb36   :  { %1389 = vadd.xlane.f32.xlu1 %v1388_v28 }
 0xbaf   :  { %v2427_v13 = vpop.xlane.xlu1 %2426 }
 0xbb0   :  { %v2428_v27 = vmul.f32 0.125, %v2427_v13 }
 0xbb2   :  { %v2429_v58 = vsub.f32 %v2424_v51, %v2428_v27 }
 0xbb3   :  { %v2516_v30 = vpop.xlane.xlu1 %2515 }
 0xbb4   :  { %v2517_v31 = vmul.f32 0.125, %v2516_v30  ;;  %v2430_v62 = vmul.f32 %v2429_v58, %v2429_v58 }
 0xbb6   :  { %v2518_v32 = vsub.f32 %v2513_v53, %v2517_v31  ;;  %v2431_v15 = vsel %vm276_vm5, %v2430_v62, 0.0 }
 0xbb7   :  { %2432 = vadd.xlane.f32.xlu1 %v2431_v15  ;;  %v2608_v23 = vpop.xlane.xlu1 %2607 }
 0xbb8   :  { %v2609_v33 = vmul.f32 0.125, %v2608_v23  ;;  %v2519_v34 = vmul.f32 %v2518_v32, %v2518_v32 }
 0xbba   :  { %v2610_v18 = vsub.f32 %v2605_v59, %v2609_v33  ;;  %v2520_v35 = vsel %vm276_vm5, %v2519_v34, 0.0 }
 0xbbb   :  { %2521 = vadd.xlane.f32.xlu1 %v2520_v35  ;;  %v1198_v36 = vpop.xlane.xlu1 %1197 }
 0xbbc   :  { %v1199_v14 = vmul.f32 0.125, %v1198_v36  ;;  %v2611_v37 = vmul.f32 %v2610_v18, %v2610_v18 }
 0xbbe   :  { %v1200_v19 = vadd.f32 1e-05, %v1199_v14  ;;  %v2612_v3 = vsel %vm276_vm5, %v2611_v37, 0.0 }
 0xbbf   :  { %2613 = vadd.xlane.f32.xlu0 %v2612_v3  ;;  %v1298_v5 = vpop.xlane.xlu1 %1297 }
 0xbc0   :  { %2975 = vrsqrt.f32 %v1200_v19  ;;  %v1299_v20 = vmul.f32 0.125, %v1298_v5 }
 0xbc2   :  { %v1300_v24 = vadd.f32 1e-05, %v1299_v20 }
 0xbc3   :  { %v1390_v29 = vpop.xlane.xlu1 %1389 }
 0xbc4   :  { %2977 = vrsqrt.f32 %v1300_v24  ;;  %v1391_v6 = vmul.f32 0.125, %v1390_v29 }
 0xbc6   :  { %v1392_v7 = vadd.f32 1e-05, %v1391_v6 }
 0xbc8   :  { %2979 = vrsqrt.f32 %v1392_v7 }
 0xbca   :  { %v2976_v61 = vpop.eup %2975 }
 0xbcb   :  { %v1202_v39 = vmul.f32 %v2976_v61, %v1194_v63 }
 0xbcd   :  { %v1209_v21 = vmul.f32 %v2655_v8, %v1202_v39 }
 0xbce   :  { %v2978_v40 = vpop.eup %2977 }
 0xbcf   :  { %v1216_v38 = vadd.f32 %v2656_v9, %v1209_v21  ;;  %v1302_v41 = vmul.f32 %v2978_v40, %v1294_v25 }
 0xbd1   :  { %1217 = vst.msk [vmem:[%s3513_s17] sm:$0xff] %vm276_vm5, %v1216_v38  ;;  %v1303_v2 = vmul.f32 %v2655_v8, %v1302_v41 }
 0xbd2   :  { %v2980_v42 = vpop.eup %2979 }
 0xbd3   :  { %v1304_v10 = vadd.f32 %v2656_v9, %v1303_v2  ;;  %v1394_v57 = vmul.f32 %v2980_v42, %v1386_v55 }
 0xbd5   :  { %2659 = vst.msk [vmem:[%s3513_s17 + $0x8] sm:$0xff] %vm276_vm5, %v1304_v10  ;;  %v1395_v4 = vmul.f32 %v2655_v8, %v1394_v57 }
 0xbd7   :  { %v1396_v43 = vadd.f32 %v2656_v9, %v1395_v4 }
 0xbd9   :  { %2662 = vst.msk [vmem:[%s3513_s17 + $0x10] sm:$0xff] %vm276_vm5, %v1396_v43 }
 0xc44   :  { %v2433_v44 = vpop.xlane.xlu1 %2432 }
 0xc45   :  { %v2434_v45 = vmul.f32 0.125, %v2433_v44 }
 0xc47   :  { %v2435_v46 = vadd.f32 1e-05, %v2434_v45 }
 0xc48   :  { %v2522_v47 = vpop.xlane.xlu1 %2521 }
 0xc49   :  { %2981 = vrsqrt.f32 %v2435_v46  ;;  %v2523_v49 = vmul.f32 0.125, %v2522_v47 }
 0xc4b   :  { %v2524_v50 = vadd.f32 1e-05, %v2523_v49 }
 0xc4c   :  { %v2614_v51 = vpop.xlane.xlu0 %2613 }
 0xc4d   :  { %2983 = vrsqrt.f32 %v2524_v50  ;;  %v2615_v52 = vmul.f32 0.125, %v2614_v51 }
 0xc4f   :  { %v2616_v48 = vadd.f32 1e-05, %v2615_v52 }
 0xc51   :  { %2985 = vrsqrt.f32 %v2616_v48 }
 0xc53   :  { %v2982_v53 = vpop.eup %2981 }
 0xc54   :  { %v2437_v60 = vmul.f32 %v2982_v53, %v2429_v58 }
 0xc56   :  { %v2438_v63 = vmul.f32 %v2655_v8, %v2437_v60 }
 0xc57   :  { %v2984_v0 = vpop.eup %2983 }
 0xc58   :  { %v2439_v1 = vadd.f32 %v2656_v9, %v2438_v63  ;;  %v2526_v59 = vmul.f32 %v2984_v0, %v2518_v32 }
 0xc5a   :  { %2688 = vst.msk [vmem:[%s3513_s17 + $0x18] sm:$0xff] %vm276_vm5, %v2439_v1  ;;  %v2527_v11 = vmul.f32 %v2655_v8, %v2526_v59 }
 0xc5b   :  { %v2986_v12 = vpop.eup %2985 }
 0xc5c   :  { %v2528_v25 = vadd.f32 %v2656_v9, %v2527_v11  ;;  %v2618_v26 = vmul.f32 %v2986_v12, %v2610_v18 }
 0xc5e   :  { %2691 = vst.msk [vmem:[%s3513_s17 + $0x20] sm:$0xff] %vm276_vm5, %v2528_v25  ;;  %v2619_v54 = vmul.f32 %v2655_v8, %v2618_v26 }
 0xc60   :  { %v2620_v55 = vadd.f32 %v2656_v9, %v2619_v54 }
 0xc62   :  { %2694 = vst.msk [vmem:[%s3513_s17 + $0x28] sm:$0xff] %vm276_vm5, %v2620_v55 }

// kernel: sta_mgcn_forward.10
= control target key start
LH: loop header
LB: loop body
LE: loop exit
PB: predicated region body
PF: predicated region fallthrough
CT: control target
= control target key end

     0   :  { %v2951_v0 = vmov 0   ;;  %v2952_v2 = vmov 0.0   ;;  %vm2953_vm0 = vmmov 0   ;;  %vm91_vm1 = vcmask 64512   ;;  %s2954_s29 = smov 127   ;;  %s3444_s2 = inlined_call_operand.vmem [shape: f32[8,1], index: 2, kind: input, shape index: {}]   ;;  %s3445_s0 = inlined_call_operand.vmem [shape: f32[2,3,8,8], index: 0, kind: input, shape index: {}]   ;;  %s3446_s4 = inlined_call_operand.vmem [shape: f32[8,1], index: 4, kind: input, shape index: {}]   ;;  %s3447_s3 = inlined_call_operand.vmem [shape: f32[8,8], index: 3, kind: input, shape index: {}]   ;;  %s3448_s5 = inlined_call_operand.vmem [shape: f32[3,3], index: 5, kind: input, shape index: {}]   ;;  %s3449_s6 = inlined_call_operand.vmem [shape: f32[3,3], index: 6, kind: input, shape index: {}]   ;;  %s3450_s1 = inlined_call_operand.vmem [shape: f32[3,8,8], index: 1, kind: input, shape index: {}]   ;;  %s3451_s7 = inlined_call_operand.vmem [shape: f32[3,8,16], index: 7, kind: input, shape index: {}]   ;;  %s3452_s9 = inlined_call_operand.vmem [shape: f32[3,16,8], index: 9, kind: input, shape index: {}]   ;;  %s3453_s10 = inlined_call_operand.vmem [shape: f32[3,16,8], index: 10, kind: input, shape index: {}]   ;;  %s3454_s8 = inlined_call_operand.vmem [shape: f32[3,1,16], index: 8, kind: input, shape index: {}]   ;;  %s3455_s13 = inlined_call_operand.vmem [shape: f32[8,8], index: 13, kind: input, shape index: {}]   ;;  %s3456_s12 = inlined_call_operand.vmem [shape: f32[1,8], index: 12, kind: input, shape index: {}]   ;;  %s3457_s11 = inlined_call_operand.vmem [shape: f32[1,8], index: 11, kind: input, shape index: {}]   ;;  %s3458_s14 = inlined_call_operand.vmem [shape: f32[1,8], index: 14, kind: input, shape index: {}]   ;;  %s3459_s15 = inlined_call_operand.vmem [shape: f32[1,8], index: 15, kind: input, shape index: {}]   ;;  %s3460_s16 = inlined_call_operand.vmem [shape: f32[1,8], index: 16, kind: input, shape index: {}]   ;;  %s3461_s17 = inlined_call_operand.vmem [shape: f32[2,3,8,8], index: 17, kind: output, shape index: {}]  }
   0x1   :  { %3463 = sst [smem:[#allocation2_spill]] %s3444_s2  ;;  %2910 = vset.pattern.permute.xlu0 %v2951_v0  ;;  %2728 = vmatprep.subr.mxu1 %v2952_v2  ;;  %v3053_v3 = vld [vmem:[%s3446_s4] sm:$0xff]  ;;  %vm116_vm2 = vcmask 1041409   ;;  %vm118_vm3 = vcmask 1042434   ;;  %vm352_vm4 = vcmask 1042432   ;;  %vm348_vm5 = vcmask 23552  }
   0x2   :  { %3464 = sst [smem:[#allocation3_spill]] %s3445_s0  ;;  %s3465_s26 = sld [smem:[#allocation2_spill]]  ;;  %2730 = vmatprep.mubr.msk.f32.mxu1 %vm2953_vm0, %v2952_v2  ;;  %2729 = vmatpush3.msra.mxu1 %v3053_v3  ;;  %v3074_v5 = vld [vmem:[%s3447_s3] sm:$0xff]  ;;  %vm426_vm6 = vcmask 2048   ;;  %vm930_vm7 = vcmask 130048  }
   0x3   :  { %2723 = vmatprep.subr.mxu0 %v2952_v2  ;;  %s3466_s30 = sld [smem:[#allocation3_spill]]  ;;  %2725 = vmatprep.mubr.msk.f32.mxu0 %vm2953_vm0, %v2952_v2 }
   0x4   :  { %2738 = vmatprep.subr.mxu1 %v2952_v2  ;;  %2724 = vmatpush3.msra.mxu0 %v3074_v5 }
   0x5   :  { %2733 = vmatprep.subr.mxu0 %v2952_v2 }
   0x8   :  { %v59_v1 = vld [vmem:[%s3465_s26] sm:$0xff] }
   0x9   :  { %85 = vperm.xlu0 %2910, %v59_v1   ;;  %v3062_v4 = vld [vmem:[%s3466_s30 + $0x8] sm:$0xff]  ;;  %v3081_v6 = vld [vmem:[%s3466_s30] sm:$0xff]  ;;  %v3086_v7 = vld [vmem:[%s3466_s30 + $0x10] sm:$0xff] }
   0xa   :  { %2731 = vmatmul.mubr.msk.f32.vlgmr.msra.gmra.mrb[0].mxu1 %vm91_vm1, %v3062_v4  ;;  %v3091_v8 = vld [vmem:[%s3466_s30 + $0x18] sm:$0xff]  ;;  %v3096_v9 = vld [vmem:[%s3466_s30 + $0x20] sm:$0xff]  ;;  %v3101_v10 = vld [vmem:[%s3466_s30 + $0x28] sm:$0xff] }
   0xb   :  { %2740 = vmatprep.mubr.msk.f32.mxu1 %vm2953_vm0, %v2952_v2 }
  0x88   :  { %v86_v11 = vpop.permute.xlu0 %85 }
  0x89   :  { %v88_v12 = vmul.f32 %v86_v11, %v3081_v6  ;;  %v90_v13 = vmul.f32 %v86_v11, %v3086_v7  ;;  %v1383_v14 = vmul.f32 %v3091_v8, %v86_v11  ;;  %v1384_v15 = vmul.f32 %v3096_v9, %v86_v11 }
  0x8a   :  { %v1385_v16 = vmul.f32 %v3101_v10, %v86_v11  ;;  %v89_v17 = vmul.f32 %v86_v11, %v3062_v4  ;;  %v62_v11 = vld [vmem:[%s3448_s5] sm:$0x7] }
  0x8b   :  { %v92_v18 = vsel %vm91_vm1, %v88_v12, 0.0  ;;  %v1386_v19 = vsel %vm91_vm1, %v1383_v14, 0.0  ;;  %v1393_v20 = vsel %vm91_vm1, %v1384_v15, 0.0  ;;  %v106_v21 = vsel %vm91_vm1, %v90_v13, 0.0  ;;  %266 = vrot.lane.b32.xlu0 %v62_v11, %s2954_s29 }
  0x8c   :  { %v93_v22 = vrot.slane %v92_v18, 4  ;;  %v1387_v23 = vrot.slane %v1386_v19, 4  ;;  %v1394_v24 = vrot.slane %v1393_v20, 4  ;;  %v1400_v25 = vsel %vm91_vm1, %v1385_v16, 0.0 }
  0x8d   :  { %v1401_v26 = vrot.slane %v1400_v25, 4  ;;  %v99_v27 = vsel %vm91_vm1, %v89_v17, 0.0  ;;  %v107_v28 = vrot.slane %v106_v21, 4 }
  0x8e   :  { %v1388_v29 = vadd.f32 %v1387_v23, %v1386_v19  ;;  %v1395_v30 = vadd.f32 %v1394_v24, %v1393_v20  ;;  %v100_v31 = vrot.slane %v99_v27, 4  ;;  %v94_v32 = vadd.f32 %v93_v22, %v92_v18 }
  0x8f   :  { %v108_v33 = vadd.f32 %v107_v28, %v106_v21  ;;  %v1402_v34 = vadd.f32 %v1401_v26, %v1400_v25  ;;  %v3133_v21 = vld [vmem:[%s3449_s6] sm:$0x7] }
  0x90   :  { %v101_v35 = vadd.f32 %v100_v31, %v99_v27  ;;  %v95_v36 = vrot.slane %v94_v32, 2  ;;  %v1389_v37 = vrot.slane %v1388_v29, 2  ;;  %v1396_v38 = vrot.slane %v1395_v30, 2 }
  0x91   :  { %v109_v39 = vrot.slane %v108_v33, 2  ;;  %v1403_v40 = vrot.slane %v1402_v34, 2 }
  0x92   :  { %v102_v41 = vrot.slane %v101_v35, 2  ;;  %v96_v42 = vadd.f32 %v95_v36, %v94_v32  ;;  %v1390_v43 = vadd.f32 %v1389_v37, %v1388_v29  ;;  %v1397_v44 = vadd.f32 %v1396_v38, %v1395_v30 }
  0x93   :  { %v110_v45 = vadd.f32 %v109_v39, %v108_v33  ;;  %v1404_v46 = vadd.f32 %v1403_v40, %v1402_v34 }
  0x94   :  { %v97_v47 = vrot.slane %v96_v42, 1  ;;  %v103_v48 = vadd.f32 %v102_v41, %v101_v35  ;;  %v1391_v49 = vrot.slane %v1390_v43, 1  ;;  %v1398_v50 = vrot.slane %v1397_v44, 1 }
  0x95   :  { %v111_v51 = vrot.slane %v110_v45, 1  ;;  %v1405_v52 = vrot.slane %v1404_v46, 1 }
  0x96   :  { %v98_v53 = vadd.f32 %v97_v47, %v96_v42  ;;  %v104_v54 = vrot.slane %v103_v48, 1  ;;  %v1392_v55 = vadd.f32 %v1391_v49, %v1390_v43  ;;  %v1399_v56 = vadd.f32 %v1398_v50, %v1397_v44 }
  0x97   :  { %v112_v57 = vadd.f32 %v111_v51, %v110_v45  ;;  %v1406_v58 = vadd.f32 %v1405_v52, %v1404_v46 }
  0x98   :  { %v105_v59 = vadd.f32 %v104_v54, %v103_v48  ;;  %v1410_v60 = vsel %vm116_vm2, %v1399_v56, %v1392_v55  ;;  %v3149_v54 = vld [vmem:[%s3450_s1] sm:$0xff]  ;;  %v3159_v55 = vld [vmem:[%s3450_s1 + $0x8] sm:$0xff]  ;;  %v3169_v56 = vld [vmem:[%s3450_s1 + $0x10] sm:$0xff] }
  0x99   :  { %v3115_v61 = vsel %vm118_vm3, %v1406_v58, %v1410_v60  ;;  %v3185_v58 = vld [vmem:[%s3451_s7 + $0x8] sm:$0xff] }
  0x9a   :  { %v117_v62 = vsel %vm116_vm2, %v105_v59, %v98_v53 }
  0x9b   :  { %v119_v63 = vsel %vm118_vm3, %v112_v57, %v117_v62  ;;  %v3178_v57 = vld [vmem:[%s3451_s7] sm:$0xff]  ;;  %v3195_v62 = vld [vmem:[%s3451_s7 + $0x10] sm:$0xff] }
  0x9c   :  { %2726 = vmatmul.mubr.msk.f32.vlgmr.msra.gmra.mrb[0].mxu0 %vm91_vm1, %v119_v63 }
  0x9d   :  { %2735 = vmatprep.mubr.msk.f32.mxu0 %vm2953_vm0, %v2952_v2 }
  0xdd   :  { %v261_v0 = vpop.f32.mrb[0].mxu1 }
  0xde   :  { %v2732_v1 = vpop.f32.mrb[1].mxu1  ;;  %2734 = vmatpush3.msra.mxu0 %v261_v0 }
  0xdf   :  { %2743 = vmatprep.subr.mxu0 %v2952_v2 }
  0xfd   :  { %v3127_v14 = vpop.permute.xlu0 %266 }
 0x16f   :  { %v188_v12 = vpop.f32.mrb[0].mxu0 }
 0x170   :  { %v2727_v13 = vpop.f32.mrb[1].mxu0  ;;  %2736 = vmatmul.mubr.msk.f32.vlgmr.msra.gmra.mrb[2].mxu0 %vm91_vm1, %v188_v12  ;;  %v70_v12 = vld [vmem:[%s3452_s9 + $0x10] sm:$0xff] }
 0x171   :  { %2745 = vmatprep.mubr.msk.f32.mxu0 %vm2953_vm0, %v2952_v2  ;;  %v71_v13 = vld [vmem:[%s3452_s9 + $0x18] sm:$0xff] }
 0x243   :  { %v338_v15 = vpop.f32.mrb[2].mxu0 }
 0x244   :  { %v339_v16 = vadd.f32 %v338_v15, %v3127_v14  ;;  %v2737_v17 = vpop.f32.mrb[3].mxu0  ;;  %v72_v15 = vld [vmem:[%s3453_s10 + $0x10] sm:$0xff] }
 0x245   :  { %v73_v17 = vld [vmem:[%s3453_s10 + $0x18] sm:$0xff] }
 0x246   :  { %v2610_v18 = vmul.f32 -1.442695, %v339_v16  ;;  %v3213_v16 = vpack.c.bf16 %v71_v13, %v70_v12 }
 0x248   :  { %2911 = vpow2.f32 %v2610_v18  ;;  %v2955_v18 = vmov 0.0|0.0  }
 0x252   :  { %v2912_v19 = vpop.eup %2911 }
 0x253   :  { %v345_v20 = vadd.f32 1.0, %v2912_v19  ;;  %v3220_v19 = vpack.c.bf16 %v73_v17, %v72_v15 }
 0x255   :  { %2913 = vrcp.f32 %v345_v20  ;;  %v3229_v20 = vld [vmem:[%s3454_s8] ss:$0 sm:$0xff] }
 0x25f   :  { %v2914_v22 = vpop.eup %2913 }
 0x260   :  { %2739 = vmatpush3.msk.msra.mxu1 %vm352_vm4, %v2914_v22 }
 0x261   :  { %2741 = vmatmul.mubr.msk.f32.vlgmr.msra.gmra.mrb[2].mxu1 %vm348_vm5, %v3133_v21  ;;  %2748 = vmatprep.subr.mxu1 %v2952_v2 }
 0x262   :  { %2750 = vmatprep.mubr.msk.f32.mxu1 %vm2953_vm0, %v2952_v2  ;;  %2749 = vmatpush3.msra.mxu1 %v3178_v57 }
 0x263   :  { %2758 = vmatprep.subr.mxu1 %v2952_v2 }
 0x334   :  { %v422_v23 = vpop.f32.mrb[2].mxu1 }
 0x335   :  { %v427_v24 = vsel %vm426_vm6, %v422_v23, -inf  ;;  %v2742_v25 = vpop.f32.mrb[3].mxu1 }
 0x336   :  { %v428_v26 = vrot.slane %v427_v24, 4 }
 0x338   :  { %v429_v27 = vmax.f32 %v427_v24, %v428_v26  ;;  %v3234_v24 = vld [vmem:[%s3454_s8 + $0x1] ss:$0 sm:$0xff] }
 0x33a   :  { %v430_v28 = vrot.slane %v429_v27, 2 }
 0x33c   :  { %v431_v29 = vmax.f32 %v429_v27, %v430_v28 }
 0x33e   :  { %v432_v30 = vrot.slane %v431_v29, 1 }
 0x340   :  { %v433_v31 = vmax.f32 %v431_v29, %v432_v30  ;;  %v3241_v29 = vld [vmem:[%s3454_s8 + $0x2] ss:$0 sm:$0xff] }
 0x342   :  { %v434_v32 = vsub.f32 %v422_v23, %v433_v31 }
 0x344   :  { %v435_v33 = vmul.f32 1.442695, %v434_v32 }
 0x346   :  { %2915 = vpow2.f32 %v435_v33 }
 0x350   :  { %v2916_v34 = vpop.eup %2915 }
 0x351   :  { %v437_v35 = vsel %vm426_vm6, %v2916_v34, 0.0 }
 0x352   :  { %v438_v36 = vrot.slane %v437_v35, 4 }
 0x354   :  { %v439_v37 = vadd.f32 %v438_v36, %v437_v35 }
 0x356   :  { %v440_v38 = vrot.slane %v439_v37, 2 }
 0x358   :  { %v441_v39 = vadd.f32 %v440_v38, %v439_v37  ;;  %v3247_v38 = vld [vmem:[%s3455_s13] sm:$0xff] }
 0x35a   :  { %v442_v40 = vrot.slane %v441_v39, 1 }
 0x35c   :  { %v443_v41 = vadd.f32 %v442_v40, %v441_v39 }
 0x35e   :  { %2917 = vrcp.f32 %v443_v41 }
 0x368   :  { %v2918_v42 = vpop.eup %2917 }
 0x369   :  { %v445_v43 = vmul.f32 %v2918_v42, %v2916_v34 }
 0x36b   :  { %2893 = vpush %v445_v43  ;;  %v451_v44 = vrot.slane %v445_v43, 1  ;;  %v457_v45 = vrot.slane %v445_v43, 2 }
 0x36d   :  { %2895 = vpush %v451_v44 }
 0x36e   :  { %2897 = vpush %v457_v45 }
 0x39c   :  { %s2894_s6 = spop %2893 }
 0x39d   :  { %v448_v46 = vstv %s2894_s6 }
 0x39e   :  { %s2896_s30 = spop %2895  ;;  %v450_v48 = vmul.f32 %v448_v46, %v3081_v6 }
 0x39f   :  { %v453_v47 = vstv %s2896_s30  ;;  %s2898_s4 = spop %2897 }
 0x3a0   :  { %v455_v49 = vmul.f32 %v453_v47, %v3062_v4  ;;  %v459_v50 = vstv %s2898_s4 }
 0x3a1   :  { %v461_v52 = vmul.f32 %v459_v50, %v3086_v7 }
 0x3a2   :  { %v456_v51 = vadd.f32 %v455_v49, %v450_v48  ;;  %v3294_v48 = vld [vmem:[%s3457_s11] ss:$0 sm:$0xff] }
 0x3a4   :  { %v462_v53 = vadd.f32 %v461_v52, %v456_v51 }
 0x3a6   :  { %2744 = vmatpush3.msra.mxu0 %v462_v53 }
 0x3a7   :  { %2746 = vmatmul.mubr.msk.f32.vlgmr.msra.gmra.mrb[4].mxu0 %vm91_vm1, %v3149_v54  ;;  %2753 = vmatprep.subr.mxu0 %v2952_v2 }
 0x3a8   :  { %2754 = vmatpush3.msra.mxu0 %v462_v53  ;;  %2755 = vmatprep.mubr.msk.f32.mxu0 %vm2953_vm0, %v2952_v2 }
 0x3a9   :  { %2763 = vmatprep.subr.mxu0 %v2952_v2 }
 0x3ab   :  { %2756 = vmatmul.mubr.msk.f32.vlgmr.msra.gmra.mrb[6].mxu0 %vm91_vm1, %v3159_v55 }
 0x3ac   :  { %2764 = vmatpush3.msra.mxu0 %v462_v53  ;;  %2765 = vmatprep.mubr.msk.f32.mxu0 %vm2953_vm0, %v2952_v2 }
 0x3ad   :  { %2881 = vmatprep.subr.bf16.mxu0 %v2955_v18 }
 0x3af   :  { %2766 = vmatmul.mubr.msk.f32.vlgmr.msra.gmra.mrb[8].mxu0 %vm91_vm1, %v3169_v56 }
 0x3b0   :  { %2777 = vmatprep.mubr.msk.f32.mxu0 %vm2953_vm0, %v2952_v2  ;;  %2883 = vmatpush3.bf16.msra.mxu0 %v3213_v16 }
 0x3b1   :  { %2787 = vmatprep.subr.mxu0 %v2952_v2 }
 0x47a   :  { %v532_v59 = vpop.f32.mrb[4].mxu0 }
 0x47b   :  { %v2747_v60 = vpop.f32.mrb[5].mxu0  ;;  %2751 = vmatmul.mubr.msk.f32.vlgmr.msra.gmra.mrb[4].mxu1 %vm91_vm1, %v532_v59  ;;  %v3304_v59 = vld [vmem:[%s3458_s14] ss:$0 sm:$0xff] }
 0x47c   :  { %2759 = vmatpush3.msra.mxu1 %v3185_v58  ;;  %2760 = vmatprep.mubr.msk.f32.mxu1 %vm2953_vm0, %v2952_v2 }
 0x47d   :  { %2768 = vmatprep.subr.mxu1 %v2952_v2 }
 0x47e   :  { %v685_v63 = vpop.f32.mrb[6].mxu0 }
 0x47f   :  { %v2757_v0 = vpop.f32.mrb[7].mxu0  ;;  %2761 = vmatmul.mubr.msk.f32.vlgmr.msra.gmra.mrb[6].mxu1 %vm91_vm1, %v685_v63 }
 0x480   :  { %2769 = vmatpush3.msra.mxu1 %v3195_v62  ;;  %2770 = vmatprep.mubr.msk.f32.mxu1 %vm2953_vm0, %v2952_v2 }
 0x481   :  { %2884 = vmatprep.subr.bf16.mxu1 %v2955_v18 }
 0x482   :  { %v839_v1 = vpop.f32.mrb[8].mxu0 }
 0x483   :  { %v2767_v11 = vpop.f32.mrb[9].mxu0  ;;  %2771 = vmatmul.mubr.msk.f32.vlgmr.msra.gmra.mrb[8].mxu1 %vm91_vm1, %v839_v1 }
 0x484   :  { %2784 = vmatprep.mubr.msk.f32.mxu1 %vm2953_vm0, %v2952_v2  ;;  %2886 = vmatpush3.bf16.msra.mxu1 %v3220_v19 }
 0x485   :  { %2792 = vmatprep.subr.mxu1 %v2952_v2 }
 0x54e   :  { %v611_v22 = vpop.f32.mrb[4].mxu1 }
 0x54f   :  { %v2752_v23 = vpop.f32.mrb[5].mxu1  ;;  %v612_v25 = vadd.f32 %v3229_v20, %v611_v22 }
 0x551   :  { %v615_v30 = vmax.f32 %v612_v25, 0.0 }
 0x552   :  { %v764_v26 = vpop.f32.mrb[6].mxu1 }
 0x553   :  { %v765_v27 = vadd.f32 %v3234_v24, %v764_v26  ;;  %v2762_v28 = vpop.f32.mrb[7].mxu1 }
 0x555   :  { %v768_v31 = vmax.f32 %v765_v27, 0.0 }
 0x556   :  { %v918_v32 = vpop.f32.mrb[8].mxu1 }
 0x557   :  { %v769_v33 = vadd.f32 %v768_v31, %v615_v30  ;;  %v919_v34 = vadd.f32 %v3241_v29, %v918_v32  ;;  %v2772_v35 = vpop.f32.mrb[9].mxu1 }
 0x559   :  { %v922_v36 = vmax.f32 %v919_v34, 0.0 }
 0x55b   :  { %v923_v37 = vadd.f32 %v922_v36, %v769_v33 }
 0x55d   :  { %2778 = vmatmul.mubr.msk.f32.vlgmr.msra.gmra.mrb[10].mxu0 %vm930_vm7, %v923_v37  ;;  %2785 = vmatmul.mubr.msk.f32.vlgmr.msra.gmra.mrb[10].mxu1 %vm930_vm7, %v923_v37 }
 0x55e   :  { %2788 = vmatpush3.msra.mxu0 %v3247_v38  ;;  %2789 = vmatprep.mubr.msk.f32.mxu0 %vm2953_vm0, %v2952_v2 }
 0x55f   :  { %2793 = vmatpush3.msra.mxu1 %v3247_v38  ;;  %2794 = vmatprep.mubr.msk.f32.mxu1 %vm2953_vm0, %v2952_v2 }
 0x560   :  { %2797 = vmatprep.subr.mxu0 %v2952_v2  ;;  %2802 = vmatprep.subr.mxu1 %v2952_v2 }
 0x561   :  { %2790 = vmatmul.mubr.msk.f32.vlgmr.msra.gmra.mrb[12].mxu0 %vm91_vm1, %v3081_v6  ;;  %2795 = vmatmul.mubr.msk.f32.vlgmr.msra.gmra.mrb[12].mxu1 %vm91_vm1, %v3062_v4  ;;  %v3288_v4 = vld [vmem:[%s3456_s12] ss:$0 sm:$0xff] }
 0x562   :  { %2798 = vmatpush3.msra.mxu0 %v3247_v38  ;;  %2799 = vmatprep.mubr.msk.f32.mxu0 %vm2953_vm0, %v2952_v2 }
 0x563   :  { %2803 = vmatpush3.msra.mxu1 %v3074_v5  ;;  %2804 = vmatprep.mubr.msk.f32.mxu1 %vm2953_vm0, %v2952_v2 }
 0x564   :  { %2807 = vmatprep.subr.mxu0 %v2952_v2  ;;  %2812 = vmatprep.subr.mxu1 %v2952_v2 }
 0x565   :  { %2800 = vmatmul.mubr.msk.f32.vlgmr.msra.gmra.mrb[14].mxu0 %vm91_vm1, %v3086_v7  ;;  %2805 = vmatmul.mubr.msk.f32.vlgmr.msra.gmra.mrb[14].mxu1 %vm91_vm1, %v3115_v61 }
 0x566   :  { %2808 = vmatpush3.msra.mxu0 %v3053_v3  ;;  %2809 = vmatprep.mubr.msk.f32.mxu0 %vm2953_vm0, %v2952_v2 }
 0x567   :  { %2814 = vmatprep.mubr.msk.f32.mxu1 %vm2953_vm0, %v2952_v2  ;;  %2817 = vmatprep.subr.mxu0 %v2952_v2 }
 0x569   :  { %2810 = vmatmul.mubr.msk.f32.vlgmr.msra.gmra.mrb[16].mxu0 %vm91_vm1, %v3096_v9 }
 0x56a   :  { %2819 = vmatprep.mubr.msk.f32.mxu0 %vm2953_vm0, %v2952_v2 }
 0x630   :  { %v1000_v3 = vpop.f32.mrb[10].mxu0  ;;  %v1077_v5 = vpop.f32.mrb[10].mxu1 }
 0x631   :  { %v1078_v6 = vadd.f32 %v3288_v4, %v1077_v5  ;;  %v2779_v7 = vpop.f32.mrb[11].mxu0  ;;  %v2786_v61 = vpop.f32.mrb[11].mxu1  ;;  %v1001_v50 = vadd.f32 %v3294_v48, %v1000_v3 }
 0x633   :  { %v2626_v39 = vmul.f32 -1.442695, %v1078_v6 }
 0x634   :  { %v1163_v40 = vpop.f32.mrb[12].mxu0  ;;  %v1264_v41 = vpop.f32.mrb[12].mxu1 }
 0x635   :  { %2919 = vpow2.f32 %v2626_v39  ;;  %v2791_v42 = vpop.f32.mrb[13].mxu0  ;;  %v2796_v43 = vpop.f32.mrb[13].mxu1  ;;  %v1164_v0 = vadd.f32 %v3304_v59, %v1163_v40  ;;  %v1265_v11 = vadd.f32 %v3304_v59, %v1264_v41 }
 0x636   :  { %2921 = vtanh.f32 %v1001_v50 }
 0x638   :  { %v1356_v44 = vpop.f32.mrb[14].mxu0  ;;  %v1480_v45 = vpop.f32.mrb[14].mxu1 }
 0x639   :  { %v2801_v46 = vpop.f32.mrb[15].mxu0  ;;  %v2806_v47 = vpop.f32.mrb[15].mxu1  ;;  %v1357_v12 = vadd.f32 %v3304_v59, %v1356_v44 }
 0x63c   :  { %v1553_v49 = vpop.f32.mrb[16].mxu0 }
 0x63d   :  { %v2811_v51 = vpop.f32.mrb[17].mxu0  ;;  %2813 = vmatpush3.msra.mxu1 %v1553_v49 }
 0x63e   :  { %2815 = vmatmul.mubr.msk.f32.vlgmr.msra.gmra.mrb[16].mxu1 %vm91_vm1, %v1480_v45  ;;  %2822 = vmatprep.subr.mxu1 %v2952_v2 }
 0x63f   :  { %v2920_v52 = vpop.eup %2919  ;;  %2824 = vmatprep.mubr.msk.f32.mxu1 %vm2953_vm0, %v2952_v2 }
 0x640   :  { %v1084_v53 = vadd.f32 1.0, %v2920_v52  ;;  %v2922_v60 = vpop.eup %2921 }
 0x642   :  { %2923 = vrcp.f32 %v1084_v53 }
 0x64c   :  { %v2924_v63 = vpop.eup %2923 }
 0x64d   :  { %v1087_v1 = vmul.f32 %v2924_v63, %v2922_v60 }
 0x64f   :  { %v3309_v13 = vadd.f32 %v1265_v11, %v1087_v1  ;;  %v3311_v15 = vadd.f32 %v1357_v12, %v1087_v1  ;;  %v3313_v17 = vadd.f32 %v1164_v0, %v1087_v1 }
 0x651   :  { %v1168_v22 = vmax.f32 %v3313_v17, 0.0  ;;  %v1361_v23 = vmax.f32 %v3311_v15, 0.0  ;;  %v1269_v27 = vmax.f32 %v3309_v13, 0.0 }
 0x653   :  { %v1169_v25 = vsel %vm91_vm1, %v1168_v22, 0.0  ;;  %v1362_v26 = vsel %vm91_vm1, %v1361_v23, 0.0  ;;  %v1270_v28 = vsel %vm91_vm1, %v1269_v27, 0.0 }
 0x654   :  { %1170 = vadd.xlane.f32.xlu1 %v1169_v25  ;;  %1363 = vadd.xlane.f32.xlu0 %v1362_v26 }
 0x658   :  { %1271 = vadd.xlane.f32.xlu1 %v1270_v28 }
 0x711   :  { %v1626_v30 = vpop.f32.mrb[16].mxu1 }
 0x712   :  { %v1627_v31 = vadd.f32 %v1626_v30, %v3127_v14  ;;  %v2816_v32 = vpop.f32.mrb[17].mxu1 }
 0x714   :  { %v2641_v33 = vmul.f32 -1.442695, %v1627_v31 }
 0x716   :  { %2925 = vpow2.f32 %v2641_v33 }
 0x720   :  { %v2926_v34 = vpop.eup %2925 }
 0x721   :  { %v1633_v35 = vadd.f32 1.0, %v2926_v34 }
 0x723   :  { %2927 = vrcp.f32 %v1633_v35 }
 0x72d   :  { %v2928_v36 = vpop.eup %2927 }
 0x72e   :  { %2818 = vmatpush3.msk.msra.mxu0 %vm352_vm4, %v2928_v36 }
 0x72f   :  { %2820 = vmatmul.mubr.msk.f32.vlgmr.msra.gmra.mrb[18].mxu0 %vm348_vm5, %v3133_v21  ;;  %2827 = vmatprep.subr.mxu0 %v2952_v2 }
 0x730   :  { %2828 = vmatpush3.msra.mxu0 %v3178_v57  ;;  %2829 = vmatprep.mubr.msk.f32.mxu0 %vm2953_vm0, %v2952_v2 }
 0x731   :  { %2837 = vmatprep.subr.mxu0 %v2952_v2 }
 0x802   :  { %v1705_v14 = vpop.f32.mrb[18].mxu0 }
 0x803   :  { %v1709_v37 = vsel %vm426_vm6, %v1705_v14, -inf  ;;  %v2821_v3 = vpop.f32.mrb[19].mxu0 }
 0x804   :  { %v1710_v5 = vrot.slane %v1709_v37, 4 }
 0x806   :  { %v1711_v6 = vmax.f32 %v1709_v37, %v1710_v5 }
 0x808   :  { %v1712_v7 = vrot.slane %v1711_v6, 2 }
 0x80a   :  { %v1713_v61 = vmax.f32 %v1711_v6, %v1712_v7 }
 0x80c   :  { %v1714_v39 = vrot.slane %v1713_v61, 1 }
 0x80e   :  { %v1715_v40 = vmax.f32 %v1713_v61, %v1714_v39 }
 0x810   :  { %v1716_v21 = vsub.f32 %v1705_v14, %v1715_v40 }
 0x812   :  { %v1717_v41 = vmul.f32 1.442695, %v1716_v21 }
 0x814   :  { %2929 = vpow2.f32 %v1717_v41 }
 0x81e   :  { %v2930_v42 = vpop.eup %2929 }
 0x81f   :  { %v1719_v57 = vsel %vm426_vm6, %v2930_v42, 0.0 }
 0x820   :  { %v1720_v43 = vrot.slane %v1719_v57, 4 }
 0x822   :  { %v1721_v44 = vadd.f32 %v1720_v43, %v1719_v57 }
 0x824   :  { %v1722_v45 = vrot.slane %v1721_v44, 2 }
 0x826   :  { %v1723_v46 = vadd.f32 %v1722_v45, %v1721_v44 }
 0x828   :  { %v1724_v47 = vrot.slane %v1723_v46, 1 }
 0x82a   :  { %v1725_v49 = vadd.f32 %v1724_v47, %v1723_v46  ;;  %v1171_v46 = vpop.xlane.xlu1 %1170 }
 0x82c   :  { %2931 = vrcp.f32 %v1725_v49 }
 0x836   :  { %v2932_v50 = vpop.eup %2931 }
 0x837   :  { %v1727_v51 = vmul.f32 %v2932_v50, %v2930_v42 }
 0x839   :  { %2899 = vpush %v1727_v51  ;;  %v1733_v52 = vrot.slane %v1727_v51, 1  ;;  %v1739_v53 = vrot.slane %v1727_v51, 2 }
 0x83b   :  { %2901 = vpush %v1733_v52  ;;  %v1173_v52 = vmul.f32 0.125, %v1171_v46 }
 0x83c   :  { %2903 = vpush %v1739_v53 }
 0x86a   :  { %s2900_s11 = spop %2899 }
 0x86b   :  { %v1730_v60 = vstv %s2900_s11 }
 0x86c   :  { %s2902_s14 = spop %2901  ;;  %v1732_v0 = vmul.f32 %v3091_v8, %v1730_v60  ;;  %v1272_v60 = vpop.xlane.xlu1 %1271 }
 0x86d   :  { %v1735_v63 = vstv %s2902_s14  ;;  %s2904_s24 = spop %2903 }
 0x86e   :  { %v1737_v1 = vmul.f32 %v3096_v9, %v1735_v63  ;;  %v1741_v11 = vstv %s2904_s24  ;;  %v1174_v63 = vsub.f32 %v1168_v22, %v1173_v52 }
 0x86f   :  { %v1743_v25 = vmul.f32 %v3101_v10, %v1741_v11  ;;  %v1364_v11 = vpop.xlane.xlu0 %1363 }
 0x870   :  { %v1738_v12 = vadd.f32 %v1737_v1, %v1732_v0  ;;  %v1273_v0 = vmul.f32 0.125, %v1272_v60 }
 0x872   :  { %v1744_v26 = vadd.f32 %v1743_v25, %v1738_v12  ;;  %v1365_v12 = vmul.f32 0.125, %v1364_v11  ;;  %v1274_v25 = vsub.f32 %v1269_v27, %v1273_v0 }
 0x874   :  { %2823 = vmatpush3.msra.mxu1 %v1744_v26  ;;  %v1275_v22 = vmul.f32 %v1274_v25, %v1274_v25 }
 0x875   :  { %2825 = vmatmul.mubr.msk.f32.vlgmr.msra.gmra.mrb[18].mxu1 %vm91_vm1, %v3149_v54  ;;  %2832 = vmatprep.subr.mxu1 %v2952_v2 }
 0x876   :  { %2833 = vmatpush3.msra.mxu1 %v1744_v26  ;;  %2834 = vmatprep.mubr.msk.f32.mxu1 %vm2953_vm0, %v2952_v2 }
 0x877   :  { %2842 = vmatprep.subr.mxu1 %v2952_v2 }
 0x879   :  { %2835 = vmatmul.mubr.msk.f32.vlgmr.msra.gmra.mrb[20].mxu1 %vm91_vm1, %v3159_v55 }
 0x87a   :  { %2843 = vmatpush3.msra.mxu1 %v1744_v26  ;;  %2844 = vmatprep.mubr.msk.f32.mxu1 %vm2953_vm0, %v2952_v2 }
 0x87b   :  { %2887 = vmatprep.subr.bf16.mxu1 %v2955_v18 }
 0x87d   :  { %2845 = vmatmul.mubr.msk.f32.vlgmr.msra.gmra.mrb[22].mxu1 %vm91_vm1, %v3169_v56 }
 0x87e   :  { %2889 = vmatpush3.bf16.msra.mxu1 %v3213_v16  ;;  %2856 = vmatprep.mubr.msk.f32.mxu1 %vm2953_vm0, %v2952_v2 }
 0x87f   :  { %2866 = vmatprep.subr.mxu1 %v2952_v2 }
 0x948   :  { %v1811_v54 = vpop.f32.mrb[18].mxu1 }
 0x949   :  { %2830 = vmatmul.mubr.msk.f32.vlgmr.msra.gmra.mrb[20].mxu0 %vm91_vm1, %v1811_v54  ;;  %v2826_v55 = vpop.f32.mrb[19].mxu1  ;;  %v1175_v54 = vmul.f32 %v1174_v63, %v1174_v63 }
 0x94a   :  { %2838 = vmatpush3.msra.mxu0 %v3185_v58  ;;  %2839 = vmatprep.mubr.msk.f32.mxu0 %vm2953_vm0, %v2952_v2  ;;  %v1366_v55 = vsub.f32 %v1361_v23, %v1365_v12 }
 0x94b   :  { %2847 = vmatprep.subr.mxu0 %v2952_v2  ;;  %v1176_v17 = vsel %vm91_vm1, %v1175_v54, 0.0 }
 0x94c   :  { %v1955_v28 = vpop.f32.mrb[20].mxu1 }
 0x94d   :  { %2840 = vmatmul.mubr.msk.f32.vlgmr.msra.gmra.mrb[22].mxu0 %vm91_vm1, %v1955_v28  ;;  %v2836_v56 = vpop.f32.mrb[21].mxu1  ;;  %v1276_v28 = vsel %vm91_vm1, %v1275_v22, 0.0 }
 0x94e   :  { %2848 = vmatpush3.msra.mxu0 %v3195_v62  ;;  %2849 = vmatprep.mubr.msk.f32.mxu0 %vm2953_vm0, %v2952_v2  ;;  %v1367_v56 = vmul.f32 %v1366_v55, %v1366_v55 }
 0x94f   :  { %2890 = vmatprep.subr.bf16.mxu0 %v2955_v18 }
 0x950   :  { %v2100_v16 = vpop.f32.mrb[22].mxu1 }
 0x951   :  { %2850 = vmatmul.mubr.msk.f32.vlgmr.msra.gmra.mrb[24].mxu0 %vm91_vm1, %v2100_v16  ;;  %v2846_v58 = vpop.f32.mrb[23].mxu1  ;;  %v1368_v16 = vsel %vm91_vm1, %v1367_v56, 0.0 }
 0x952   :  { %2892 = vmatpush3.bf16.msra.mxu0 %v3220_v19  ;;  %2863 = vmatprep.mubr.msk.f32.mxu0 %vm2953_vm0, %v2952_v2 }
 0x953   :  { %2871 = vmatprep.subr.mxu0 %v2952_v2 }
 0xa1c   :  { %v1884_v30 = vpop.f32.mrb[20].mxu0 }
 0xa1d   :  { %v2831_v31 = vpop.f32.mrb[21].mxu0  ;;  %v1885_v62 = vadd.f32 %v3229_v20, %v1884_v30 }
 0xa1f   :  { %v1888_v18 = vmax.f32 %v1885_v62, 0.0 }
 0xa20   :  { %v2028_v32 = vpop.f32.mrb[22].mxu0 }
 0xa21   :  { %v2029_v33 = vadd.f32 %v3234_v24, %v2028_v32  ;;  %v2841_v34 = vpop.f32.mrb[23].mxu0 }
 0xa23   :  { %v2032_v35 = vmax.f32 %v2029_v33, 0.0 }
 0xa24   :  { %v2173_v36 = vpop.f32.mrb[24].mxu0 }
 0xa25   :  { %v2033_v14 = vadd.f32 %v2032_v35, %v1888_v18  ;;  %v2174_v37 = vadd.f32 %v3241_v29, %v2173_v36  ;;  %v2851_v19 = vpop.f32.mrb[25].mxu0 }
 0xa27   :  { %v2177_v3 = vmax.f32 %v2174_v37, 0.0 }
 0xa29   :  { %v2178_v5 = vadd.f32 %v2177_v3, %v2033_v14 }
 0xa2b   :  { %2857 = vmatmul.mubr.msk.f32.vlgmr.msra.gmra.mrb[24].mxu1 %vm930_vm7, %v2178_v5  ;;  %2864 = vmatmul.mubr.msk.f32.vlgmr.msra.gmra.mrb[26].mxu0 %vm930_vm7, %v2178_v5 }
 0xa2c   :  { %2867 = vmatpush3.msra.mxu1 %v3247_v38  ;;  %2868 = vmatprep.mubr.msk.f32.mxu1 %vm2953_vm0, %v2952_v2 }
 0xa2d   :  { %2876 = vmatprep.subr.mxu1 %v2952_v2  ;;  %2872 = vmatpush3.msra.mxu0 %v3247_v38 }
 0xa2e   :  { %2873 = vmatprep.mubr.msk.f32.mxu0 %vm2953_vm0, %v2952_v2 }
 0xa2f   :  { %2869 = vmatmul.mubr.msk.f32.vlgmr.msra.gmra.mrb[26].mxu1 %vm91_vm1, %v3091_v8  ;;  %2874 = vmatmul.mubr.msk.f32.vlgmr.msra.gmra.mrb[28].mxu0 %vm91_vm1, %v3096_v9 }
 0xa30   :  { %2877 = vmatpush3.msra.mxu1 %v3247_v38  ;;  %2878 = vmatprep.mubr.msk.f32.mxu1 %vm2953_vm0, %v2952_v2 }
 0xa33   :  { %2879 = vmatmul.mubr.msk.f32.vlgmr.msra.gmra.mrb[28].mxu1 %vm91_vm1, %v3101_v10 }
 0xafe   :  { %v2248_v20 = vpop.f32.mrb[24].mxu1  ;;  %v2319_v24 = vpop.f32.mrb[26].mxu0 }
 0xaff   :  { %v2320_v29 = vadd.f32 %v3288_v4, %v2319_v24  ;;  %v2858_v6 = vpop.f32.mrb[25].mxu1  ;;  %v2865_v7 = vpop.f32.mrb[27].mxu0  ;;  %v2249_v41 = vadd.f32 %v3294_v48, %v2248_v20 }
 0xb01   :  { %v2652_v61 = vmul.f32 -1.442695, %v2320_v29 }
 0xb02   :  { %v2399_v39 = vpop.f32.mrb[26].mxu1  ;;  %v2488_v8 = vpop.f32.mrb[28].mxu0 }
 0xb03   :  { %2933 = vpow2.f32 %v2652_v61  ;;  %v2870_v40 = vpop.f32.mrb[27].mxu1  ;;  %v2875_v9 = vpop.f32.mrb[29].mxu0  ;;  %v2400_v57 = vadd.f32 %v3304_v59, %v2399_v39  ;;  %v2489_v4 = vadd.f32 %v3304_v59, %v2488_v8  ;;  %v2629_v39 = vld [vmem:[%s3459_s15] ss:$0 sm:$0xff] }
 0xb04   :  { %2935 = vtanh.f32 %v2249_v41  ;;  %v2630_v40 = vld [vmem:[%s3460_s16] ss:$0 sm:$0xff] }
 0xb06   :  { %v2580_v21 = vpop.f32.mrb[28].mxu1 }
 0xb07   :  { %v2880_v38 = vpop.f32.mrb[29].mxu1  ;;  %v2581_v43 = vadd.f32 %v3304_v59, %v2580_v21 }
 0xb0d   :  { %v2934_v2 = vpop.eup %2933 }
 0xb0e   :  { %v2326_v42 = vadd.f32 1.0, %v2934_v2  ;;  %v2936_v10 = vpop.eup %2935 }
 0xb10   :  { %2937 = vrcp.f32 %v2326_v42 }
 0xb1a   :  { %v2938_v44 = vpop.eup %2937 }
 0xb1b   :  { %v2329_v45 = vmul.f32 %v2938_v44, %v2936_v10 }
 0xb1d   :  { %v2403_v47 = vadd.f32 %v2400_v57, %v2329_v45  ;;  %v2492_v49 = vadd.f32 %v2489_v4, %v2329_v45  ;;  %v2584_v50 = vadd.f32 %v2581_v43, %v2329_v45 }
 0xb1f   :  { %v2404_v51 = vmax.f32 %v2403_v47, 0.0  ;;  %v2493_v53 = vmax.f32 %v2492_v49, 0.0  ;;  %v2585_v59 = vmax.f32 %v2584_v50, 0.0 }
 0xb21   :  { %v2405_v48 = vsel %vm91_vm1, %v2404_v51, 0.0  ;;  %v2494_v1 = vsel %vm91_vm1, %v2493_v53, 0.0  ;;  %v2586_v26 = vsel %vm91_vm1, %v2585_v59, 0.0 }
 0xb22   :  { %2406 = vadd.xlane.f32.xlu1 %v2405_v48 }
 0xb26   :  { %2495 = vadd.xlane.f32.xlu1 %v2494_v1 }
 0xb2a   :  { %2587 = vadd.xlane.f32.xlu1 %v2586_v26 }
 0xb2e   :  { %1177 = vadd.xlane.f32.xlu1 %v1176_v17 }
 0xb32   :  { %1277 = vadd.xlane.f32.xlu1 %v1276_v28 }
 0xb36   :  { %1369 = vadd.xlane.f32.xlu1 %v1368_v16 }
 0xbaf   :  { %v2407_v13 = vpop.xlane.xlu1 %2406 }
 0xbb0   :  { %v2408_v27 = vmul.f32 0.125, %v2407_v13 }
 0xbb2   :  { %v2409_v58 = vsub.f32 %v2404_v51, %v2408_v27 }
 0xbb3   :  { %v2496_v30 = vpop.xlane.xlu1 %2495 }
 0xbb4   :  { %v2497_v31 = vmul.f32 0.125, %v2496_v30  ;;  %v2410_v62 = vmul.f32 %v2409_v58, %v2409_v58 }
 0xbb6   :  { %v2498_v32 = vsub.f32 %v2493_v53, %v2497_v31  ;;  %v2411_v15 = vsel %vm91_vm1, %v2410_v62, 0.0 }
 0xbb7   :  { %2412 = vadd.xlane.f32.xlu1 %v2411_v15  ;;  %v2588_v23 = vpop.xlane.xlu1 %2587 }
 0xbb8   :  { %v2589_v33 = vmul.f32 0.125, %v2588_v23  ;;  %v2499_v34 = vmul.f32 %v2498_v32, %v2498_v32 }
 0xbba   :  { %v2590_v18 = vsub.f32 %v2585_v59, %v2589_v33  ;;  %v2500_v35 = vsel %vm91_vm1, %v2499_v34, 0.0 }
 0xbbb   :  { %2501 = vadd.xlane.f32.xlu1 %v2500_v35  ;;  %v1178_v36 = vpop.xlane.xlu1 %1177 }
 0xbbc   :  { %v1179_v14 = vmul.f32 0.125, %v1178_v36  ;;  %v2591_v37 = vmul.f32 %v2590_v18, %v2590_v18 }
 0xbbe   :  { %v1180_v19 = vadd.f32 1e-05, %v1179_v14  ;;  %v2592_v3 = vsel %vm91_vm1, %v2591_v37, 0.0 }
 0xbbf   :  { %2593 = vadd.xlane.f32.xlu0 %v2592_v3  ;;  %v1278_v5 = vpop.xlane.xlu1 %1277 }
 0xbc0   :  { %2939 = vrsqrt.f32 %v1180_v19  ;;  %v1279_v20 = vmul.f32 0.125, %v1278_v5 }
 0xbc2   :  { %v1280_v24 = vadd.f32 1e-05, %v1279_v20 }
 0xbc3   :  { %v1370_v29 = vpop.xlane.xlu1 %1369 }
 0xbc4   :  { %2941 = vrsqrt.f32 %v1280_v24  ;;  %v1371_v6 = vmul.f32 0.125, %v1370_v29 }
 0xbc6   :  { %v1372_v7 = vadd.f32 1e-05, %v1371_v6 }
 0xbc8   :  { %2943 = vrsqrt.f32 %v1372_v7 }
 0xbca   :  { %v2940_v61 = vpop.eup %2939 }
 0xbcb   :  { %v1182_v8 = vmul.f32 %v2940_v61, %v1174_v63 }
 0xbcd   :  { %v1189_v9 = vmul.f32 %v2629_v39, %v1182_v8 }
 0xbce   :  { %v2942_v21 = vpop.eup %2941 }
 0xbcf   :  { %v1196_v38 = vadd.f32 %v2630_v40, %v1189_v9  ;;  %v1282_v41 = vmul.f32 %v2942_v21, %v1274_v25 }
 0xbd1   :  { %1197 = vst.msk [vmem:[%s3461_s17] sm:$0xff] %vm91_vm1, %v1196_v38  ;;  %v1283_v2 = vmul.f32 %v2629_v39, %v1282_v41 }
 0xbd2   :  { %v2944_v42 = vpop.eup %2943 }
 0xbd3   :  { %v1284_v10 = vadd.f32 %v2630_v40, %v1283_v2  ;;  %v1374_v57 = vmul.f32 %v2944_v42, %v1366_v55 }
 0xbd5   :  { %2632 = vst.msk [vmem:[%s3461_s17 + $0x8] sm:$0xff] %vm91_vm1, %v1284_v10  ;;  %v1375_v4 = vmul.f32 %v2629_v39, %v1374_v57 }
 0xbd7   :  { %v1376_v43 = vadd.f32 %v2630_v40, %v1375_v4 }
 0xbd9   :  { %2634 = vst.msk [vmem:[%s3461_s17 + $0x10] sm:$0xff] %vm91_vm1, %v1376_v43 }
 0xc44   :  { %v2413_v44 = vpop.xlane.xlu1 %2412 }
 0xc45   :  { %v2414_v45 = vmul.f32 0.125, %v2413_v44 }
 0xc47   :  { %v2415_v46 = vadd.f32 1e-05, %v2414_v45 }
 0xc48   :  { %v2502_v47 = vpop.xlane.xlu1 %2501 }
 0xc49   :  { %2945 = vrsqrt.f32 %v2415_v46  ;;  %v2503_v49 = vmul.f32 0.125, %v2502_v47 }
 0xc4b   :  { %v2504_v50 = vadd.f32 1e-05, %v2503_v49 }
 0xc4c   :  { %v2594_v51 = vpop.xlane.xlu0 %2593 }
 0xc4d   :  { %2947 = vrsqrt.f32 %v2504_v50  ;;  %v2595_v52 = vmul.f32 0.125, %v2594_v51 }
 0xc4f   :  { %v2596_v48 = vadd.f32 1e-05, %v2595_v52 }
 0xc51   :  { %2949 = vrsqrt.f32 %v2596_v48 }
 0xc53   :  { %v2946_v53 = vpop.eup %2945 }
 0xc54   :  { %v2417_v60 = vmul.f32 %v2946_v53, %v2409_v58 }
 0xc56   :  { %v2418_v63 = vmul.f32 %v2629_v39, %v2417_v60 }
 0xc57   :  { %v2948_v0 = vpop.eup %2947 }
 0xc58   :  { %v2419_v1 = vadd.f32 %v2630_v40, %v2418_v63  ;;  %v2506_v59 = vmul.f32 %v2948_v0, %v2498_v32 }
 0xc5a   :  { %2654 = vst.msk [vmem:[%s3461_s17 + $0x18] sm:$0xff] %vm91_vm1, %v2419_v1  ;;  %v2507_v11 = vmul.f32 %v2629_v39, %v2506_v59 }
 0xc5b   :  { %v2950_v12 = vpop.eup %2949 }
 0xc5c   :  { %v2508_v25 = vadd.f32 %v2630_v40, %v2507_v11  ;;  %v2598_v26 = vmul.f32 %v2950_v12, %v2590_v18 }
 0xc5e   :  { %2656 = vst.msk [vmem:[%s3461_s17 + $0x20] sm:$0xff] %vm91_vm1, %v2508_v25  ;;  %v2599_v54 = vmul.f32 %v2629_v39, %v2598_v26 }
 0xc60   :  { %v2600_v55 = vadd.f32 %v2630_v40, %v2599_v54 }
 0xc62   :  { %2658 = vst.msk [vmem:[%s3461_s17 + $0x28] sm:$0xff] %vm91_vm1, %v2600_v55 }

</bundles_post_ra>
